<compile_context>
chip_gen: v5e
topology: v5e:2x2
jax: 0.10.0
libtpu: 0.0.40
codegen_flags: <defaults>
</compile_context>

<pallas_src>
import functools

import jax
import jax.numpy as jnp
import numpy as np
from jax.experimental import pallas as pl
from jax.experimental.pallas import tpu as pltpu


# ----------------------------------------------------------------------------
# Fused (matmul + shift + activation) Pallas kernel, transposed layout.
#   out[OC, Mt] = act( W[OC, K] @ A[K, Mt] + shift[OC, 1] )
# ----------------------------------------------------------------------------
def _fused_matmul_kernel(w_ref, a_ref, s_ref, o_ref, *, act):
    acc = jnp.dot(w_ref[...], a_ref[...], preferred_element_type=jnp.float32)
    y = acc + s_ref[...]                      # [OC, 1] broadcasts along lanes
    if act == "relu":
        y = jnp.maximum(y, 0.0)
    elif act == "sigmoid":
        y = jax.nn.sigmoid(y)
    o_ref[...] = y.astype(o_ref.dtype)


def fused_matmul_T(w_t, a_t, shift, act, out_dtype):
    """w_t: [OC, K] bf16, a_t: [K, M] bf16, shift: [OC, 1] f32 -> [OC, M]."""
    OC, K = w_t.shape
    M = a_t.shape[1]
    # Two lane-aligned blocks along M when possible (keeps both v7x TensorCores
    # busy and stays well inside VMEM); otherwise one full-array block, which is
    # always legal for any M (no divisibility assert needed).
    grid_m = 2 if (M % 256 == 0) else 1
    mt = M // grid_m
    return pl.pallas_call(
        functools.partial(_fused_matmul_kernel, act=act),
        out_shape=jax.ShapeDtypeStruct((OC, M), out_dtype),
        grid_spec=pltpu.PrefetchScalarGridSpec(
            num_scalar_prefetch=0,
            grid=(grid_m,),
            in_specs=[
                pl.BlockSpec((OC, K), lambda i: (0, 0)),   # weights (whole)
                pl.BlockSpec((K, mt), lambda i: (0, i)),   # im2col block (lane-dense)
                pl.BlockSpec((OC, 1), lambda i: (0, 0)),   # folded bias/BN shift
            ],
            out_specs=pl.BlockSpec((OC, mt), lambda i: (0, i)),  # lane-dense store
        ),
        compiler_params=pltpu.CompilerParams(dimension_semantics=("parallel",)),
    )(w_t, a_t, shift)


# ----------------------------------------------------------------------------
# Glue: transposed im2col (XLA, bf16) + BN/bias folding
# ----------------------------------------------------------------------------
def _round_up(x, m):
    return (x + m - 1) // m * m


def _im2col_T(x, k, stride, pad):
    """x: [C, N, H, W] -> (A[k*k*C, N*OH*OW] with (kh, kw, c) row order, (N, OH, OW))."""
    if pad > 0:
        x = jnp.pad(x, ((0, 0), (0, 0), (pad, pad), (pad, pad)))
    C, N, H, W = x.shape
    OH = (H - k) // stride + 1
    OW = (W - k) // stride + 1
    cols = []
    for kh in range(k):
        for kw in range(k):
            cols.append(x[:, :, kh:kh + stride * OH:stride,
                          kw:kw + stride * OW:stride])        # [C, N, OH, OW]
    a = jnp.stack(cols, axis=0)                               # [k*k, C, N, OH, OW]
    return a.reshape(k * k * C, N * OH * OW), (N, OH, OW)


def conv_block(x, weight, bias, *, stride, pad, bn=None, act="relu",
               out_dtype=jnp.bfloat16):
    """weight: [OC, IC, KH, KW] (PyTorch layout); x: [IC, N, H, W] (bf16).

    Returns [OC, N, OH, OW] in `out_dtype`.
    """
    OC, IC, KH, KW = weight.shape
    # Fold conv bias + BatchNorm running stats into a per-OC scale/shift; the
    # scale is folded into the weights so the kernel epilogue is only an add.
    if bn is None:
        scale = jnp.ones((OC,), jnp.float32)
        shift = bias.astype(jnp.float32)
    else:
        gamma, beta, mean, var, eps = bn
        scale = gamma * jax.lax.rsqrt(var + eps)
        shift = beta + (bias - mean) * scale
    w_t = jnp.transpose(weight, (0, 2, 3, 1)).reshape(OC, KH * KW * IC)
    w_t = w_t * scale[:, None]

    a_t, (N, OH, OW) = _im2col_T(x, KH, stride, pad)
    K = KH * KW * IC
    Kp = _round_up(K, 32)     # contraction dim sublane/lane aligned (27 -> 32)
    OCp = _round_up(OC, 8)    # output channels sublane aligned (1 -> 8)
    a_t = jnp.pad(a_t, ((0, Kp - K), (0, 0)))
    w_t = jnp.pad(w_t, ((0, OCp - OC), (0, Kp - K)))
    shift = jnp.pad(shift, (0, OCp - OC))

    y = fused_matmul_T(w_t.astype(jnp.bfloat16), a_t.astype(jnp.bfloat16),
                       shift.reshape(OCp, 1).astype(jnp.float32), act, out_dtype)
    return y[:OC].reshape(OC, N, OH, OW)


# ----------------------------------------------------------------------------
# Deterministic parameter construction (shapes from the module __init__)
# ----------------------------------------------------------------------------
def init_params(key, nc, ndf):
    specs = [
        ("conv1", nc, ndf, 3),
        ("conv2", ndf, ndf, 4),
        ("conv3", ndf, ndf * 2, 4),
        ("conv4", ndf * 2, ndf * 4, 4),
        ("conv5", ndf * 4, ndf * 8, 4),
        ("last", ndf * 8, 1, 4),
    ]
    params = {}
    for i, (name, cin, cout, k) in enumerate(specs):
        kw, kb = jax.random.split(jax.random.fold_in(key, i))
        params[name] = {
            "w": 0.1 * jax.random.normal(kw, (cout, cin, k, k), jnp.float32),
            "b": 0.1 * jax.random.normal(kb, (cout,), jnp.float32),
        }
    for idx, c in zip((2, 3, 4, 5), (ndf, ndf * 2, ndf * 4, ndf * 8)):
        params[f"bn{idx}"] = {
            "gamma": jnp.ones((c,), jnp.float32),
            "beta": jnp.zeros((c,), jnp.float32),
            "mean": jnp.zeros((c,), jnp.float32),
            "var": jnp.ones((c,), jnp.float32),
        }
    return params


# ----------------------------------------------------------------------------
# Full forward (Pallas path) and a pure-JAX f32 reference
# ----------------------------------------------------------------------------
def discriminator_forward(params, x_nchw):
    eps = 1e-5
    # NCHW -> [C, N, H, W]: spatial pixels land on the dense lane axis of every
    # im2col matrix and every kernel output.
    x = jnp.transpose(x_nchw, (1, 0, 2, 3)).astype(jnp.bfloat16)
    x = conv_block(x, params["conv1"]["w"], params["conv1"]["b"],
                   stride=1, pad=0, bn=None, act="relu")
    for name, bnname in (("conv2", "bn2"), ("conv3", "bn3"),
                         ("conv4", "bn4"), ("conv5", "bn5")):
        bn = params[bnname]
        x = conv_block(x, params[name]["w"], params[name]["b"],
                       stride=2, pad=1,
                       bn=(bn["gamma"], bn["beta"], bn["mean"], bn["var"], eps),
                       act="relu")
    y = conv_block(x, params["last"]["w"], params["last"]["b"],
                   stride=1, pad=0, bn=None, act="sigmoid",
                   out_dtype=jnp.float32)          # [1, N, 1, 1]
    return y.reshape(-1)                           # .view(-1, 1).squeeze(1)


def reference_forward(params, x_nchw):
    def conv(x, w, b, stride, pad):
        y = jax.lax.conv_general_dilated(
            x, w, (stride, stride), [(pad, pad), (pad, pad)],
            dimension_numbers=("NCHW", "OIHW", "NCHW"))
        return y + b.reshape(1, -1, 1, 1)

    eps = 1e-5
    x = jnp.maximum(conv(x_nchw, params["conv1"]["w"], params["conv1"]["b"], 1, 0), 0.0)
    for name, bnname in (("conv2", "bn2"), ("conv3", "bn3"),
                         ("conv4", "bn4"), ("conv5", "bn5")):
        bn = params[bnname]
        y = conv(x, params[name]["w"], params[name]["b"], 2, 1)
        y = (y - bn["mean"].reshape(1, -1, 1, 1)) / jnp.sqrt(
            bn["var"].reshape(1, -1, 1, 1) + eps)
        y = y * bn["gamma"].reshape(1, -1, 1, 1) + bn["beta"].reshape(1, -1, 1, 1)
        x = jnp.maximum(y, 0.0)
    y = conv(x, params["last"]["w"], params["last"]["b"], 1, 0)
    return jax.nn.sigmoid(y).reshape(-1)


if __name__ == "__main__":
    # Minimum spatial size that survives the 5 conv stages down to a 1x1 map is 66.
    nc, ndf, batch, hw = 3, 8, 2, 66
    key = jax.random.PRNGKey(0)
    kx, kp = jax.random.split(key)
    params = init_params(kp, nc, ndf)
    x = jax.random.normal(kx, (batch, nc, hw, hw), jnp.float32)

    fwd = jax.jit(discriminator_forward)
    out = jax.block_until_ready(fwd(params, x))
    assert out.shape == (batch,)

    ref = jax.block_until_ready(jax.jit(reference_forward)(params, x))
    # bf16 MXU operands / bf16 inter-layer activations (per perf review) vs. a
    # pure-f32 XLA reference -> compare with a bf16-appropriate tolerance.
    np.testing.assert_allclose(np.asarray(out), np.asarray(ref),
                               rtol=2e-2, atol=2e-2)

    print("KERNEL_OK")
</pallas_src>

<mosaic_0001>
module attributes {stable_mosaic.version = 11 : i64} {
  func.func @_fused_matmul_kernel(%arg0: i32, %arg1: memref<8x32xbf16, #tpu.memory_space<vmem>>, %arg2: memref<32x4096xbf16, #tpu.memory_space<vmem>>, %arg3: memref<8x1xf32, #tpu.memory_space<vmem>>, %arg4: memref<8x4096xbf16, #tpu.memory_space<vmem>>) attributes {dimension_semantics = [#tpu.dimension_semantics<parallel>], iteration_bounds = array<i64: 2>, scalar_prefetch = 0 : i64, scratch_operands = 0 : i64, tpu.core_type = #tpu.core_type<tc>, window_params = [{pipeline_mode = #tpu.pipeline_mode<synchronous>, transform_indices = @transform_0, window_bounds = array<i64: 8, 32>}, {transform_indices = @transform_1, window_bounds = array<i64: 32, 4096>}, {pipeline_mode = #tpu.pipeline_mode<synchronous>, transform_indices = @transform_2, window_bounds = array<i64: 8, 1>}, {transform_indices = @transform_3, window_bounds = array<i64: 8, 4096>}]} {
    %c0 = arith.constant 0 : index
    %c0_0 = arith.constant 0 : index
    %0 = vector.load %arg1[%c0, %c0_0] : memref<8x32xbf16, #tpu.memory_space<vmem>>, vector<8x32xbf16>
    %c0_1 = arith.constant 0 : index
    %c0_2 = arith.constant 0 : index
    %1 = vector.load %arg2[%c0_1, %c0_2] : memref<32x4096xbf16, #tpu.memory_space<vmem>>, vector<32x4096xbf16>
    %cst = arith.constant dense<0.000000e+00> : vector<8x4096xf32>
    %2 = tpu.matmul %0, %1, %cst {dimension_numbers = #tpu.dot_dimension_numbers<[1], [0], [0], [1], [0, 0, 1, 1], [], []>} : vector<8x32xbf16>, vector<32x4096xbf16>, vector<8x4096xf32> -> vector<8x4096xf32>
    %c0_3 = arith.constant 0 : index
    %c0_4 = arith.constant 0 : index
    %3 = vector.load %arg3[%c0_3, %c0_4] : memref<8x1xf32, #tpu.memory_space<vmem>>, vector<8x1xf32>
    %4 = vector.broadcast %3 : vector<8x1xf32> to vector<8x4096xf32>
    %5 = arith.addf %2, %4 : vector<8x4096xf32>
    %cst_5 = arith.constant 0.000000e+00 : f32
    %6 = vector.broadcast %cst_5 : f32 to vector<8x4096xf32>
    %7 = arith.maximumf %5, %6 : vector<8x4096xf32>
    %8 = arith.truncf %7 : vector<8x4096xf32> to vector<8x4096xbf16>
    %c0_6 = arith.constant 0 : index
    %c0_7 = arith.constant 0 : index
    %9 = vector.load %arg4[%c0_6, %c0_7] : memref<8x4096xbf16, #tpu.memory_space<vmem>>, vector<8x4096xbf16>
    tpu.vector_store %arg4[%c0_6, %c0_7], %8 {strides = array<i32>} : memref<8x4096xbf16, #tpu.memory_space<vmem>>, vector<8x4096xbf16>,
    return
  }
  func.func @transform_0(%arg0: i32) -> (i32, i32) {
    %c0_i32 = arith.constant 0 : i32
    %c0_i32_0 = arith.constant 0 : i32
    %c0_i32_1 = arith.constant 0 : i32
    return %c0_i32, %c0_i32_0 : i32, i32
  }
  func.func @transform_1(%arg0: i32) -> (i32, i32) {
    %c0_i32 = arith.constant 0 : i32
    %c0_i32_0 = arith.constant 0 : i32
    return %c0_i32, %arg0 : i32, i32
  }
  func.func @transform_2(%arg0: i32) -> (i32, i32) {
    %c0_i32 = arith.constant 0 : i32
    %c0_i32_0 = arith.constant 0 : i32
    %c0_i32_1 = arith.constant 0 : i32
    return %c0_i32, %c0_i32_0 : i32, i32
  }
  func.func @transform_3(%arg0: i32) -> (i32, i32) {
    %c0_i32 = arith.constant 0 : i32
    %c0_i32_0 = arith.constant 0 : i32
    return %c0_i32, %arg0 : i32, i32
  }
}

module attributes {stable_mosaic.version = 11 : i64} {
  func.func @_fused_matmul_kernel(%arg0: i32, %arg1: memref<8x128xbf16, #tpu.memory_space<vmem>>, %arg2: memref<128x1024xbf16, #tpu.memory_space<vmem>>, %arg3: memref<8x1xf32, #tpu.memory_space<vmem>>, %arg4: memref<8x1024xbf16, #tpu.memory_space<vmem>>) attributes {dimension_semantics = [#tpu.dimension_semantics<parallel>], iteration_bounds = array<i64: 2>, scalar_prefetch = 0 : i64, scratch_operands = 0 : i64, tpu.core_type = #tpu.core_type<tc>, window_params = [{pipeline_mode = #tpu.pipeline_mode<synchronous>, transform_indices = @transform_0, window_bounds = array<i64: 8, 128>}, {transform_indices = @transform_1, window_bounds = array<i64: 128, 1024>}, {pipeline_mode = #tpu.pipeline_mode<synchronous>, transform_indices = @transform_2, window_bounds = array<i64: 8, 1>}, {transform_indices = @transform_3, window_bounds = array<i64: 8, 1024>}]} {
    %c0 = arith.constant 0 : index
    %c0_0 = arith.constant 0 : index
    %0 = vector.load %arg1[%c0, %c0_0] : memref<8x128xbf16, #tpu.memory_space<vmem>>, vector<8x128xbf16>
    %c0_1 = arith.constant 0 : index
    %c0_2 = arith.constant 0 : index
    %1 = vector.load %arg2[%c0_1, %c0_2] : memref<128x1024xbf16, #tpu.memory_space<vmem>>, vector<128x1024xbf16>
    %cst = arith.constant dense<0.000000e+00> : vector<8x1024xf32>
    %2 = tpu.matmul %0, %1, %cst {dimension_numbers = #tpu.dot_dimension_numbers<[1], [0], [0], [1], [0, 0, 1, 1], [], []>} : vector<8x128xbf16>, vector<128x1024xbf16>, vector<8x1024xf32> -> vector<8x1024xf32>
    %c0_3 = arith.constant 0 : index
    %c0_4 = arith.constant 0 : index
    %3 = vector.load %arg3[%c0_3, %c0_4] : memref<8x1xf32, #tpu.memory_space<vmem>>, vector<8x1xf32>
    %4 = vector.broadcast %3 : vector<8x1xf32> to vector<8x1024xf32>
    %5 = arith.addf %2, %4 : vector<8x1024xf32>
    %cst_5 = arith.constant 0.000000e+00 : f32
    %6 = vector.broadcast %cst_5 : f32 to vector<8x1024xf32>
    %7 = arith.maximumf %5, %6 : vector<8x1024xf32>
    %8 = arith.truncf %7 : vector<8x1024xf32> to vector<8x1024xbf16>
    %c0_6 = arith.constant 0 : index
    %c0_7 = arith.constant 0 : index
    %9 = vector.load %arg4[%c0_6, %c0_7] : memref<8x1024xbf16, #tpu.memory_space<vmem>>, vector<8x1024xbf16>
    tpu.vector_store %arg4[%c0_6, %c0_7], %8 {strides = array<i32>} : memref<8x1024xbf16, #tpu.memory_space<vmem>>, vector<8x1024xbf16>,
    return
  }
  func.func @transform_0(%arg0: i32) -> (i32, i32) {
    %c0_i32 = arith.constant 0 : i32
    %c0_i32_0 = arith.constant 0 : i32
    %c0_i32_1 = arith.constant 0 : i32
    return %c0_i32, %c0_i32_0 : i32, i32
  }
  func.func @transform_1(%arg0: i32) -> (i32, i32) {
    %c0_i32 = arith.constant 0 : i32
    %c0_i32_0 = arith.constant 0 : i32
    return %c0_i32, %arg0 : i32, i32
  }
  func.func @transform_2(%arg0: i32) -> (i32, i32) {
    %c0_i32 = arith.constant 0 : i32
    %c0_i32_0 = arith.constant 0 : i32
    %c0_i32_1 = arith.constant 0 : i32
    return %c0_i32, %c0_i32_0 : i32, i32
  }
  func.func @transform_3(%arg0: i32) -> (i32, i32) {
    %c0_i32 = arith.constant 0 : i32
    %c0_i32_0 = arith.constant 0 : i32
    return %c0_i32, %arg0 : i32, i32
  }
}

module attributes {stable_mosaic.version = 11 : i64} {
  func.func @_fused_matmul_kernel(%arg0: i32, %arg1: memref<16x128xbf16, #tpu.memory_space<vmem>>, %arg2: memref<128x256xbf16, #tpu.memory_space<vmem>>, %arg3: memref<16x1xf32, #tpu.memory_space<vmem>>, %arg4: memref<16x256xbf16, #tpu.memory_space<vmem>>) attributes {dimension_semantics = [#tpu.dimension_semantics<parallel>], iteration_bounds = array<i64: 2>, scalar_prefetch = 0 : i64, scratch_operands = 0 : i64, tpu.core_type = #tpu.core_type<tc>, window_params = [{pipeline_mode = #tpu.pipeline_mode<synchronous>, transform_indices = @transform_0, window_bounds = array<i64: 16, 128>}, {transform_indices = @transform_1, window_bounds = array<i64: 128, 256>}, {pipeline_mode = #tpu.pipeline_mode<synchronous>, transform_indices = @transform_2, window_bounds = array<i64: 16, 1>}, {transform_indices = @transform_3, window_bounds = array<i64: 16, 256>}]} {
    %c0 = arith.constant 0 : index
    %c0_0 = arith.constant 0 : index
    %0 = vector.load %arg1[%c0, %c0_0] : memref<16x128xbf16, #tpu.memory_space<vmem>>, vector<16x128xbf16>
    %c0_1 = arith.constant 0 : index
    %c0_2 = arith.constant 0 : index
    %1 = vector.load %arg2[%c0_1, %c0_2] : memref<128x256xbf16, #tpu.memory_space<vmem>>, vector<128x256xbf16>
    %cst = arith.constant dense<0.000000e+00> : vector<16x256xf32>
    %2 = tpu.matmul %0, %1, %cst {dimension_numbers = #tpu.dot_dimension_numbers<[1], [0], [0], [1], [0, 0, 1, 1], [], []>} : vector<16x128xbf16>, vector<128x256xbf16>, vector<16x256xf32> -> vector<16x256xf32>
    %c0_3 = arith.constant 0 : index
    %c0_4 = arith.constant 0 : index
    %3 = vector.load %arg3[%c0_3, %c0_4] : memref<16x1xf32, #tpu.memory_space<vmem>>, vector<16x1xf32>
    %4 = vector.broadcast %3 : vector<16x1xf32> to vector<16x256xf32>
    %5 = arith.addf %2, %4 : vector<16x256xf32>
    %cst_5 = arith.constant 0.000000e+00 : f32
    %6 = vector.broadcast %cst_5 : f32 to vector<16x256xf32>
    %7 = arith.maximumf %5, %6 : vector<16x256xf32>
    %8 = arith.truncf %7 : vector<16x256xf32> to vector<16x256xbf16>
    %c0_6 = arith.constant 0 : index
    %c0_7 = arith.constant 0 : index
    %9 = vector.load %arg4[%c0_6, %c0_7] : memref<16x256xbf16, #tpu.memory_space<vmem>>, vector<16x256xbf16>
    tpu.vector_store %arg4[%c0_6, %c0_7], %8 {strides = array<i32>} : memref<16x256xbf16, #tpu.memory_space<vmem>>, vector<16x256xbf16>,
    return
  }
  func.func @transform_0(%arg0: i32) -> (i32, i32) {
    %c0_i32 = arith.constant 0 : i32
    %c0_i32_0 = arith.constant 0 : i32
    %c0_i32_1 = arith.constant 0 : i32
    return %c0_i32, %c0_i32_0 : i32, i32
  }
  func.func @transform_1(%arg0: i32) -> (i32, i32) {
    %c0_i32 = arith.constant 0 : i32
    %c0_i32_0 = arith.constant 0 : i32
    return %c0_i32, %arg0 : i32, i32
  }
  func.func @transform_2(%arg0: i32) -> (i32, i32) {
    %c0_i32 = arith.constant 0 : i32
    %c0_i32_0 = arith.constant 0 : i32
    %c0_i32_1 = arith.constant 0 : i32
    return %c0_i32, %c0_i32_0 : i32, i32
  }
  func.func @transform_3(%arg0: i32) -> (i32, i32) {
    %c0_i32 = arith.constant 0 : i32
    %c0_i32_0 = arith.constant 0 : i32
    return %c0_i32, %arg0 : i32, i32
  }
}

module attributes {stable_mosaic.version = 11 : i64} {
  func.func @_fused_matmul_kernel(%arg0: i32, %arg1: memref<32x256xbf16, #tpu.memory_space<vmem>>, %arg2: memref<256x128xbf16, #tpu.memory_space<vmem>>, %arg3: memref<32x1xf32, #tpu.memory_space<vmem>>, %arg4: memref<32x128xbf16, #tpu.memory_space<vmem>>) attributes {dimension_semantics = [#tpu.dimension_semantics<parallel>], iteration_bounds = array<i64: 1>, scalar_prefetch = 0 : i64, scratch_operands = 0 : i64, tpu.core_type = #tpu.core_type<tc>, window_params = [{pipeline_mode = #tpu.pipeline_mode<synchronous>, transform_indices = @transform_0, window_bounds = array<i64: 32, 256>}, {transform_indices = @transform_1, window_bounds = array<i64: 256, 128>}, {pipeline_mode = #tpu.pipeline_mode<synchronous>, transform_indices = @transform_2, window_bounds = array<i64: 32, 1>}, {transform_indices = @transform_3, window_bounds = array<i64: 32, 128>}]} {
    %c0 = arith.constant 0 : index
    %c0_0 = arith.constant 0 : index
    %0 = vector.load %arg1[%c0, %c0_0] : memref<32x256xbf16, #tpu.memory_space<vmem>>, vector<32x256xbf16>
    %c0_1 = arith.constant 0 : index
    %c0_2 = arith.constant 0 : index
    %1 = vector.load %arg2[%c0_1, %c0_2] : memref<256x128xbf16, #tpu.memory_space<vmem>>, vector<256x128xbf16>
    %cst = arith.constant dense<0.000000e+00> : vector<32x128xf32>
    %2 = tpu.matmul %0, %1, %cst {dimension_numbers = #tpu.dot_dimension_numbers<[1], [0], [0], [1], [0, 0, 1, 1], [], []>} : vector<32x256xbf16>, vector<256x128xbf16>, vector<32x128xf32> -> vector<32x128xf32>
    %c0_3 = arith.constant 0 : index
    %c0_4 = arith.constant 0 : index
    %3 = vector.load %arg3[%c0_3, %c0_4] : memref<32x1xf32, #tpu.memory_space<vmem>>, vector<32x1xf32>
    %4 = vector.broadcast %3 : vector<32x1xf32> to vector<32x128xf32>
    %5 = arith.addf %2, %4 : vector<32x128xf32>
    %cst_5 = arith.constant 0.000000e+00 : f32
    %6 = vector.broadcast %cst_5 : f32 to vector<32x128xf32>
    %7 = arith.maximumf %5, %6 : vector<32x128xf32>
    %8 = arith.truncf %7 : vector<32x128xf32> to vector<32x128xbf16>
    %c0_6 = arith.constant 0 : index
    %c0_7 = arith.constant 0 : index
    %9 = vector.load %arg4[%c0_6, %c0_7] : memref<32x128xbf16, #tpu.memory_space<vmem>>, vector<32x128xbf16>
    tpu.vector_store %arg4[%c0_6, %c0_7], %8 {strides = array<i32>} : memref<32x128xbf16, #tpu.memory_space<vmem>>, vector<32x128xbf16>,
    return
  }
  func.func @transform_0(%arg0: i32) -> (i32, i32) {
    %c0_i32 = arith.constant 0 : i32
    %c0_i32_0 = arith.constant 0 : i32
    %c0_i32_1 = arith.constant 0 : i32
    return %c0_i32, %c0_i32_0 : i32, i32
  }
  func.func @transform_1(%arg0: i32) -> (i32, i32) {
    %c0_i32 = arith.constant 0 : i32
    %c0_i32_0 = arith.constant 0 : i32
    return %c0_i32, %arg0 : i32, i32
  }
  func.func @transform_2(%arg0: i32) -> (i32, i32) {
    %c0_i32 = arith.constant 0 : i32
    %c0_i32_0 = arith.constant 0 : i32
    %c0_i32_1 = arith.constant 0 : i32
    return %c0_i32, %c0_i32_0 : i32, i32
  }
  func.func @transform_3(%arg0: i32) -> (i32, i32) {
    %c0_i32 = arith.constant 0 : i32
    %c0_i32_0 = arith.constant 0 : i32
    return %c0_i32, %arg0 : i32, i32
  }
}

module attributes {stable_mosaic.version = 11 : i64} {
  func.func @_fused_matmul_kernel(%arg0: i32, %arg1: memref<64x512xbf16, #tpu.memory_space<vmem>>, %arg2: memref<512x32xbf16, #tpu.memory_space<vmem>>, %arg3: memref<64x1xf32, #tpu.memory_space<vmem>>, %arg4: memref<64x32xbf16, #tpu.memory_space<vmem>>) attributes {dimension_semantics = [#tpu.dimension_semantics<parallel>], iteration_bounds = array<i64: 1>, scalar_prefetch = 0 : i64, scratch_operands = 0 : i64, tpu.core_type = #tpu.core_type<tc>, window_params = [{pipeline_mode = #tpu.pipeline_mode<synchronous>, transform_indices = @transform_0, window_bounds = array<i64: 64, 512>}, {transform_indices = @transform_1, window_bounds = array<i64: 512, 32>}, {pipeline_mode = #tpu.pipeline_mode<synchronous>, transform_indices = @transform_2, window_bounds = array<i64: 64, 1>}, {transform_indices = @transform_3, window_bounds = array<i64: 64, 32>}]} {
    %c0 = arith.constant 0 : index
    %c0_0 = arith.constant 0 : index
    %0 = vector.load %arg1[%c0, %c0_0] : memref<64x512xbf16, #tpu.memory_space<vmem>>, vector<64x512xbf16>
    %c0_1 = arith.constant 0 : index
    %c0_2 = arith.constant 0 : index
    %1 = vector.load %arg2[%c0_1, %c0_2] : memref<512x32xbf16, #tpu.memory_space<vmem>>, vector<512x32xbf16>
    %cst = arith.constant dense<0.000000e+00> : vector<64x32xf32>
    %2 = tpu.matmul %0, %1, %cst {dimension_numbers = #tpu.dot_dimension_numbers<[1], [0], [0], [1], [0, 0, 1, 1], [], []>} : vector<64x512xbf16>, vector<512x32xbf16>, vector<64x32xf32> -> vector<64x32xf32>
    %c0_3 = arith.constant 0 : index
    %c0_4 = arith.constant 0 : index
    %3 = vector.load %arg3[%c0_3, %c0_4] : memref<64x1xf32, #tpu.memory_space<vmem>>, vector<64x1xf32>
    %4 = vector.broadcast %3 : vector<64x1xf32> to vector<64x32xf32>
    %5 = arith.addf %2, %4 : vector<64x32xf32>
    %cst_5 = arith.constant 0.000000e+00 : f32
    %6 = vector.broadcast %cst_5 : f32 to vector<64x32xf32>
    %7 = arith.maximumf %5, %6 : vector<64x32xf32>
    %8 = arith.truncf %7 : vector<64x32xf32> to vector<64x32xbf16>
    %c0_6 = arith.constant 0 : index
    %c0_7 = arith.constant 0 : index
    %9 = vector.load %arg4[%c0_6, %c0_7] : memref<64x32xbf16, #tpu.memory_space<vmem>>, vector<64x32xbf16>
    tpu.vector_store %arg4[%c0_6, %c0_7], %8 {strides = array<i32>} : memref<64x32xbf16, #tpu.memory_space<vmem>>, vector<64x32xbf16>,
    return
  }
  func.func @transform_0(%arg0: i32) -> (i32, i32) {
    %c0_i32 = arith.constant 0 : i32
    %c0_i32_0 = arith.constant 0 : i32
    %c0_i32_1 = arith.constant 0 : i32
    return %c0_i32, %c0_i32_0 : i32, i32
  }
  func.func @transform_1(%arg0: i32) -> (i32, i32) {
    %c0_i32 = arith.constant 0 : i32
    %c0_i32_0 = arith.constant 0 : i32
    return %c0_i32, %arg0 : i32, i32
  }
  func.func @transform_2(%arg0: i32) -> (i32, i32) {
    %c0_i32 = arith.constant 0 : i32
    %c0_i32_0 = arith.constant 0 : i32
    %c0_i32_1 = arith.constant 0 : i32
    return %c0_i32, %c0_i32_0 : i32, i32
  }
  func.func @transform_3(%arg0: i32) -> (i32, i32) {
    %c0_i32 = arith.constant 0 : i32
    %c0_i32_0 = arith.constant 0 : i32
    return %c0_i32, %arg0 : i32, i32
  }
}

module attributes {stable_mosaic.version = 11 : i64} {
  func.func @_fused_matmul_kernel(%arg0: i32, %arg1: memref<8x1024xbf16, #tpu.memory_space<vmem>>, %arg2: memref<1024x2xbf16, #tpu.memory_space<vmem>>, %arg3: memref<8x1xf32, #tpu.memory_space<vmem>>, %arg4: memref<8x2xf32, #tpu.memory_space<vmem>>) attributes {dimension_semantics = [#tpu.dimension_semantics<parallel>], iteration_bounds = array<i64: 1>, scalar_prefetch = 0 : i64, scratch_operands = 0 : i64, tpu.core_type = #tpu.core_type<tc>, window_params = [{pipeline_mode = #tpu.pipeline_mode<synchronous>, transform_indices = @transform_0, window_bounds = array<i64: 8, 1024>}, {transform_indices = @transform_1, window_bounds = array<i64: 1024, 2>}, {pipeline_mode = #tpu.pipeline_mode<synchronous>, transform_indices = @transform_2, window_bounds = array<i64: 8, 1>}, {transform_indices = @transform_3, window_bounds = array<i64: 8, 2>}]} {
    %c0 = arith.constant 0 : index
    %c0_0 = arith.constant 0 : index
    %0 = vector.load %arg1[%c0, %c0_0] : memref<8x1024xbf16, #tpu.memory_space<vmem>>, vector<8x1024xbf16>
    %c0_1 = arith.constant 0 : index
    %c0_2 = arith.constant 0 : index
    %1 = vector.load %arg2[%c0_1, %c0_2] : memref<1024x2xbf16, #tpu.memory_space<vmem>>, vector<1024x2xbf16>
    %cst = arith.constant dense<0.000000e+00> : vector<8x2xf32>
    %2 = tpu.matmul %0, %1, %cst {dimension_numbers = #tpu.dot_dimension_numbers<[1], [0], [0], [1], [0, 0, 1, 1], [], []>} : vector<8x1024xbf16>, vector<1024x2xbf16>, vector<8x2xf32> -> vector<8x2xf32>
    %c0_3 = arith.constant 0 : index
    %c0_4 = arith.constant 0 : index
    %3 = vector.load %arg3[%c0_3, %c0_4] : memref<8x1xf32, #tpu.memory_space<vmem>>, vector<8x1xf32>
    %4 = vector.broadcast %3 : vector<8x1xf32> to vector<8x2xf32>
    %5 = arith.addf %2, %4 : vector<8x2xf32>
    %6 = arith.negf %5 : vector<8x2xf32>
    %7 = math.exp %6 : vector<8x2xf32>
    %cst_5 = arith.constant 1.000000e+00 : f32
    %8 = vector.broadcast %cst_5 : f32 to vector<8x2xf32>
    %9 = arith.addf %8, %7 : vector<8x2xf32>
    %10 = arith.divf %8, %9 : vector<8x2xf32>
    %c0_6 = arith.constant 0 : index
    %c0_7 = arith.constant 0 : index
    %11 = vector.load %arg4[%c0_6, %c0_7] : memref<8x2xf32, #tpu.memory_space<vmem>>, vector<8x2xf32>
    tpu.vector_store %arg4[%c0_6, %c0_7], %10 {strides = array<i32>} : memref<8x2xf32, #tpu.memory_space<vmem>>, vector<8x2xf32>,
    return
  }
  func.func @transform_0(%arg0: i32) -> (i32, i32) {
    %c0_i32 = arith.constant 0 : i32
    %c0_i32_0 = arith.constant 0 : i32
    %c0_i32_1 = arith.constant 0 : i32
    return %c0_i32, %c0_i32_0 : i32, i32
  }
  func.func @transform_1(%arg0: i32) -> (i32, i32) {
    %c0_i32 = arith.constant 0 : i32
    %c0_i32_0 = arith.constant 0 : i32
    return %c0_i32, %arg0 : i32, i32
  }
  func.func @transform_2(%arg0: i32) -> (i32, i32) {
    %c0_i32 = arith.constant 0 : i32
    %c0_i32_0 = arith.constant 0 : i32
    %c0_i32_1 = arith.constant 0 : i32
    return %c0_i32, %c0_i32_0 : i32, i32
  }
  func.func @transform_3(%arg0: i32) -> (i32, i32) {
    %c0_i32 = arith.constant 0 : i32
    %c0_i32_0 = arith.constant 0 : i32
    return %c0_i32, %arg0 : i32, i32
  }
}

</mosaic_0001>

<bundles_post_ra>
// kernel: discriminator_forward.6
= control target key start
LH: loop header
LB: loop body
LE: loop exit
PB: predicated region body
PF: predicated region fallthrough
CT: control target
= control target key end

     0   :  { %s1694_s12 = smov 0   ;;  %s1696_s13 = smov 0   ;;  %s2132_s0 = inlined_call_operand.vmem [shape: bf16[8,32], index: 0, kind: input, shape index: {}]   ;;  %s2133_s1 = inlined_call_operand.vmem [shape: bf16[32,8192], index: 1, kind: input, shape index: {}]   ;;  %s2134_s2 = inlined_call_operand.vmem [shape: f32[8,1], index: 2, kind: input, shape index: {}]   ;;  %s2135_s3 = inlined_call_operand.vmem [shape: bf16[8,8192], index: 3, kind: output, shape index: {}]  }
   0x1   :  { %s1698_s14 = smov 0  }
   0x2 LB: > { %s1257_s15 = sadd.s32 4294967295, %s1671_s14   ;;  %s1711_s16 = sadd.s32 1, %s1671_s14   ;;  %s1671_s14 = sphi %s1698_s14, %s2138_s14   ;;  %s1667_s13 = sphi %s1696_s13, %s2137_s13   ;;  %s1663_s12 = sphi %s1694_s12, %s2136_s12  }
   0x3   : > { %s38_s17 = ssub.s32 %s1671_s14, %s1711_s16  ;;  %s41_s18 = sadd.s32 1, %s1667_s13 }
   0x4   : > { %p39_p0 = scmp.eq.s32.totalorder %s38_s17, 0  ;;  %p48_p1 = scmp.ne.s32.totalorder %s1667_s13, %s1663_s12 }
   0x5   : > { %p49_p2 = scmp.eq.s32.totalorder %s1671_s14, 0  ;;  %p1260_p4 = scmp.ge.s32.totalorder %s1671_s14, 2 }
   0x6   : > { %s1720_s19 = scalar_select %p39_p0, %s1667_s13, %s41_s18  }
   0x7   : > { %p50_p3 = por %p49_p2, %p48_p1  ;;  %127 = sbr.rel (%p1260_p4) target bundleno = 80 (0x50), region = 24 }
   0xc   : > { %130 = sbr.rel (!%p50_p3) target bundleno = 80 (0x50), region = 28  ;;  %s132_s20 = sand.u32 (%p50_p3), 1, %s1667_s13  }
   0xd   : > { %s1558_s21 = sshll.u32 (%p50_p3), %s1671_s14, 7  ;;  %s1261_s22 = sshll.u32 (%p50_p3), %s132_s20, 9 }
   0xe   : > { %s1728_s25 = scalar_lea.vmem (%p50_p3), %s2133_s1, %s1558_s21  ;;  %s1733_s26 = scalar_lea.vmem (%p50_p3), [#allocation2], %s1261_s22 }
   0xf   : > { %v150_v0 = vld [vmem:[%s1728_s25] sm:$0xff] (%p50_p3)  ;;  %v152_v1 = vld [vmem:[%s1728_s25 + $0x8] sm:$0xff] (%p50_p3)  ;;  %v154_v2 = vld [vmem:[%s1728_s25 + $0x10] sm:$0xff] (%p50_p3) }
  0x10   : > { %151 = vst [vmem:[%s1733_s26] sm:$0xff] (%p50_p3), %v150_v0  ;;  %v156_v3 = vld [vmem:[%s1728_s25 + $0x18] sm:$0xff] (%p50_p3)  ;;  %v158_v4 = vld [vmem:[%s1728_s25 + $0x20] sm:$0xff] (%p50_p3)  ;;  %v160_v5 = vld [vmem:[%s1728_s25 + $0x28] sm:$0xff] (%p50_p3) }
  0x11   : > { %153 = vst [vmem:[%s1733_s26 + $0x8] sm:$0xff] %v152_v1  ;;  %v162_v6 = vld [vmem:[%s1728_s25 + $0x30] sm:$0xff]  ;;  %v164_v7 = vld [vmem:[%s1728_s25 + $0x38] sm:$0xff]  ;;  %v166_v8 = vld [vmem:[%s1728_s25 + $0x40] sm:$0xff] }
  0x12   : > { %155 = vst [vmem:[%s1733_s26 + $0x10] sm:$0xff] %v154_v2  ;;  %v168_v9 = vld [vmem:[%s1728_s25 + $0x48] sm:$0xff]  ;;  %v170_v10 = vld [vmem:[%s1728_s25 + $0x50] sm:$0xff]  ;;  %v172_v11 = vld [vmem:[%s1728_s25 + $0x58] sm:$0xff] }
  0x13   : > { %157 = vst [vmem:[%s1733_s26 + $0x18] sm:$0xff] %v156_v3  ;;  %v174_v12 = vld [vmem:[%s1728_s25 + $0x60] sm:$0xff]  ;;  %v176_v13 = vld [vmem:[%s1728_s25 + $0x68] sm:$0xff]  ;;  %v178_v14 = vld [vmem:[%s1728_s25 + $0x70] sm:$0xff] }
  0x14   : > { %159 = vst [vmem:[%s1733_s26 + $0x20] sm:$0xff] %v158_v4  ;;  %v180_v15 = vld [vmem:[%s1728_s25 + $0x78] sm:$0xff]  ;;  %v182_v16 = vld [vmem:[%s1728_s25 + $0x100] sm:$0xff]  ;;  %v184_v17 = vld [vmem:[%s1728_s25 + $0x108] sm:$0xff] }
  0x15   : > { %161 = vst [vmem:[%s1733_s26 + $0x28] sm:$0xff] %v160_v5  ;;  %v186_v18 = vld [vmem:[%s1728_s25 + $0x110] sm:$0xff]  ;;  %v188_v19 = vld [vmem:[%s1728_s25 + $0x118] sm:$0xff]  ;;  %v190_v20 = vld [vmem:[%s1728_s25 + $0x120] sm:$0xff] }
  0x16   : > { %163 = vst [vmem:[%s1733_s26 + $0x30] sm:$0xff] %v162_v6  ;;  %v192_v21 = vld [vmem:[%s1728_s25 + $0x128] sm:$0xff]  ;;  %v194_v22 = vld [vmem:[%s1728_s25 + $0x130] sm:$0xff]  ;;  %v196_v23 = vld [vmem:[%s1728_s25 + $0x138] sm:$0xff] }
  0x17   : > { %165 = vst [vmem:[%s1733_s26 + $0x38] sm:$0xff] %v164_v7  ;;  %v198_v24 = vld [vmem:[%s1728_s25 + $0x140] sm:$0xff]  ;;  %v200_v25 = vld [vmem:[%s1728_s25 + $0x148] sm:$0xff]  ;;  %v202_v26 = vld [vmem:[%s1728_s25 + $0x150] sm:$0xff] }
  0x18   : > { %167 = vst [vmem:[%s1733_s26 + $0x40] sm:$0xff] %v166_v8  ;;  %v204_v27 = vld [vmem:[%s1728_s25 + $0x158] sm:$0xff]  ;;  %v206_v28 = vld [vmem:[%s1728_s25 + $0x160] sm:$0xff]  ;;  %v208_v29 = vld [vmem:[%s1728_s25 + $0x168] sm:$0xff] }
  0x19   : > { %169 = vst [vmem:[%s1733_s26 + $0x48] sm:$0xff] %v168_v9  ;;  %v210_v30 = vld [vmem:[%s1728_s25 + $0x170] sm:$0xff]  ;;  %v212_v31 = vld [vmem:[%s1728_s25 + $0x178] sm:$0xff]  ;;  %v214_v32 = vld [vmem:[%s1728_s25 + $0x200] sm:$0xff] }
  0x1a   : > { %171 = vst [vmem:[%s1733_s26 + $0x50] sm:$0xff] %v170_v10  ;;  %v216_v33 = vld [vmem:[%s1728_s25 + $0x208] sm:$0xff]  ;;  %v218_v34 = vld [vmem:[%s1728_s25 + $0x210] sm:$0xff]  ;;  %v220_v35 = vld [vmem:[%s1728_s25 + $0x218] sm:$0xff] }
  0x1b   : > { %173 = vst [vmem:[%s1733_s26 + $0x58] sm:$0xff] %v172_v11  ;;  %v222_v36 = vld [vmem:[%s1728_s25 + $0x220] sm:$0xff]  ;;  %v224_v37 = vld [vmem:[%s1728_s25 + $0x228] sm:$0xff]  ;;  %v226_v38 = vld [vmem:[%s1728_s25 + $0x230] sm:$0xff] }
  0x1c   : > { %175 = vst [vmem:[%s1733_s26 + $0x60] sm:$0xff] %v174_v12  ;;  %v228_v39 = vld [vmem:[%s1728_s25 + $0x238] sm:$0xff]  ;;  %v230_v40 = vld [vmem:[%s1728_s25 + $0x240] sm:$0xff]  ;;  %v232_v41 = vld [vmem:[%s1728_s25 + $0x248] sm:$0xff] }
  0x1d   : > { %177 = vst [vmem:[%s1733_s26 + $0x68] sm:$0xff] %v176_v13  ;;  %v234_v42 = vld [vmem:[%s1728_s25 + $0x250] sm:$0xff]  ;;  %v236_v43 = vld [vmem:[%s1728_s25 + $0x258] sm:$0xff]  ;;  %v238_v44 = vld [vmem:[%s1728_s25 + $0x260] sm:$0xff] }
  0x1e   : > { %179 = vst [vmem:[%s1733_s26 + $0x70] sm:$0xff] %v178_v14  ;;  %v240_v45 = vld [vmem:[%s1728_s25 + $0x268] sm:$0xff]  ;;  %v242_v46 = vld [vmem:[%s1728_s25 + $0x270] sm:$0xff]  ;;  %v244_v47 = vld [vmem:[%s1728_s25 + $0x278] sm:$0xff] }
  0x1f   : > { %181 = vst [vmem:[%s1733_s26 + $0x78] sm:$0xff] %v180_v15  ;;  %v246_v48 = vld [vmem:[%s1728_s25 + $0x300] sm:$0xff]  ;;  %v248_v49 = vld [vmem:[%s1728_s25 + $0x308] sm:$0xff]  ;;  %v250_v50 = vld [vmem:[%s1728_s25 + $0x310] sm:$0xff] }
  0x20   : > { %183 = vst [vmem:[%s1733_s26 + $0x80] sm:$0xff] %v182_v16  ;;  %v252_v51 = vld [vmem:[%s1728_s25 + $0x318] sm:$0xff]  ;;  %v254_v52 = vld [vmem:[%s1728_s25 + $0x320] sm:$0xff]  ;;  %v256_v53 = vld [vmem:[%s1728_s25 + $0x328] sm:$0xff] }
  0x21   : > { %185 = vst [vmem:[%s1733_s26 + $0x88] sm:$0xff] %v184_v17  ;;  %v258_v54 = vld [vmem:[%s1728_s25 + $0x330] sm:$0xff]  ;;  %v260_v55 = vld [vmem:[%s1728_s25 + $0x338] sm:$0xff]  ;;  %v262_v56 = vld [vmem:[%s1728_s25 + $0x340] sm:$0xff] }
  0x22   : > { %187 = vst [vmem:[%s1733_s26 + $0x90] sm:$0xff] %v186_v18  ;;  %v264_v57 = vld [vmem:[%s1728_s25 + $0x348] sm:$0xff]  ;;  %v266_v58 = vld [vmem:[%s1728_s25 + $0x350] sm:$0xff]  ;;  %v268_v59 = vld [vmem:[%s1728_s25 + $0x358] sm:$0xff] }
  0x23   : > { %189 = vst [vmem:[%s1733_s26 + $0x98] sm:$0xff] %v188_v19  ;;  %v270_v60 = vld [vmem:[%s1728_s25 + $0x360] sm:$0xff]  ;;  %v272_v61 = vld [vmem:[%s1728_s25 + $0x368] sm:$0xff]  ;;  %v274_v62 = vld [vmem:[%s1728_s25 + $0x370] sm:$0xff] }
  0x24   : > { %191 = vst [vmem:[%s1733_s26 + $0xa0] sm:$0xff] %v190_v20  ;;  %v276_v63 = vld [vmem:[%s1728_s25 + $0x378] sm:$0xff] }
  0x25   : > { %193 = vst [vmem:[%s1733_s26 + $0xa8] sm:$0xff] %v192_v21 }
  0x26   : > { %195 = vst [vmem:[%s1733_s26 + $0xb0] sm:$0xff] %v194_v22 }
  0x27   : > { %197 = vst [vmem:[%s1733_s26 + $0xb8] sm:$0xff] %v196_v23 }
  0x28   : > { %199 = vst [vmem:[%s1733_s26 + $0xc0] sm:$0xff] %v198_v24 }
  0x29   : > { %201 = vst [vmem:[%s1733_s26 + $0xc8] sm:$0xff] %v200_v25 }
  0x2a   : > { %203 = vst [vmem:[%s1733_s26 + $0xd0] sm:$0xff] %v202_v26 }
  0x2b   : > { %205 = vst [vmem:[%s1733_s26 + $0xd8] sm:$0xff] %v204_v27 }
  0x2c   : > { %207 = vst [vmem:[%s1733_s26 + $0xe0] sm:$0xff] %v206_v28 }
  0x2d   : > { %209 = vst [vmem:[%s1733_s26 + $0xe8] sm:$0xff] %v208_v29 }
  0x2e   : > { %211 = vst [vmem:[%s1733_s26 + $0xf0] sm:$0xff] %v210_v30 }
  0x2f   : > { %213 = vst [vmem:[%s1733_s26 + $0xf8] sm:$0xff] %v212_v31 }
  0x30   : > { %215 = vst [vmem:[%s1733_s26 + $0x100] sm:$0xff] %v214_v32 }
  0x31   : > { %217 = vst [vmem:[%s1733_s26 + $0x108] sm:$0xff] %v216_v33 }
  0x32   : > { %219 = vst [vmem:[%s1733_s26 + $0x110] sm:$0xff] %v218_v34 }
  0x33   : > { %221 = vst [vmem:[%s1733_s26 + $0x118] sm:$0xff] %v220_v35 }
  0x34   : > { %223 = vst [vmem:[%s1733_s26 + $0x120] sm:$0xff] %v222_v36 }
  0x35   : > { %225 = vst [vmem:[%s1733_s26 + $0x128] sm:$0xff] %v224_v37 }
  0x36   : > { %227 = vst [vmem:[%s1733_s26 + $0x130] sm:$0xff] %v226_v38 }
  0x37   : > { %229 = vst [vmem:[%s1733_s26 + $0x138] sm:$0xff] %v228_v39 }
  0x38   : > { %231 = vst [vmem:[%s1733_s26 + $0x140] sm:$0xff] %v230_v40 }
  0x39   : > { %233 = vst [vmem:[%s1733_s26 + $0x148] sm:$0xff] %v232_v41 }
  0x3a   : > { %235 = vst [vmem:[%s1733_s26 + $0x150] sm:$0xff] %v234_v42 }
  0x3b   : > { %237 = vst [vmem:[%s1733_s26 + $0x158] sm:$0xff] %v236_v43 }
  0x3c   : > { %239 = vst [vmem:[%s1733_s26 + $0x160] sm:$0xff] %v238_v44 }
  0x3d   : > { %241 = vst [vmem:[%s1733_s26 + $0x168] sm:$0xff] %v240_v45 }
  0x3e   : > { %243 = vst [vmem:[%s1733_s26 + $0x170] sm:$0xff] %v242_v46 }
  0x3f   : > { %245 = vst [vmem:[%s1733_s26 + $0x178] sm:$0xff] %v244_v47 }
  0x40   : > { %247 = vst [vmem:[%s1733_s26 + $0x180] sm:$0xff] %v246_v48 }
  0x41   : > { %249 = vst [vmem:[%s1733_s26 + $0x188] sm:$0xff] %v248_v49 }
  0x42   : > { %251 = vst [vmem:[%s1733_s26 + $0x190] sm:$0xff] %v250_v50 }
  0x43   : > { %253 = vst [vmem:[%s1733_s26 + $0x198] sm:$0xff] %v252_v51 }
  0x44   : > { %255 = vst [vmem:[%s1733_s26 + $0x1a0] sm:$0xff] %v254_v52 }
  0x45   : > { %257 = vst [vmem:[%s1733_s26 + $0x1a8] sm:$0xff] %v256_v53 }
  0x46   : > { %259 = vst [vmem:[%s1733_s26 + $0x1b0] sm:$0xff] %v258_v54 }
  0x47   : > { %261 = vst [vmem:[%s1733_s26 + $0x1b8] sm:$0xff] %v260_v55 }
  0x48   : > { %263 = vst [vmem:[%s1733_s26 + $0x1c0] sm:$0xff] %v262_v56 }
  0x49   : > { %265 = vst [vmem:[%s1733_s26 + $0x1c8] sm:$0xff] %v264_v57 }
  0x4a   : > { %267 = vst [vmem:[%s1733_s26 + $0x1d0] sm:$0xff] %v266_v58 }
  0x4b   : > { %269 = vst [vmem:[%s1733_s26 + $0x1d8] sm:$0xff] %v268_v59 }
  0x4c   : > { %271 = vst [vmem:[%s1733_s26 + $0x1e0] sm:$0xff] %v270_v60 }
  0x4d   : > { %273 = vst [vmem:[%s1733_s26 + $0x1e8] sm:$0xff] %v272_v61 }
  0x4e   : > { %275 = vst [vmem:[%s1733_s26 + $0x1f0] sm:$0xff] %v274_v62 }
  0x4f   : > { %277 = vst [vmem:[%s1733_s26 + $0x1f8] sm:$0xff] %v276_v63 }
  0x50 PF: > { %p1264_p5 = scmp.ge.s32.totalorder %s1671_s14, 1  ;;  %p282_p6 = scmp.lt.s32.totalorder %s1671_s14, 3 }
  0x52   : > { %p283_p7 = pnand %p1264_p5, %p282_p6 }
  0x53   : > { %s289_s27 = sand.u32 (!%p283_p7), 1, %s1663_s12   ;;  %s1266_s7 = sshll.u32 (!%p283_p7), %s1257_s15, 5 }
  0x54   : > { %286 = sbr.rel (%p283_p7) target bundleno = 354 (0x162), region = 51  ;;  %s1265_s30 = sshll.u32 (!%p283_p7), %s289_s27, 9 }
  0x55   : > { %s1866_s4 = scalar_lea.vmem (!%p283_p7), [#allocation2], %s1265_s30  ;;  %p314_p8 = scmp.lt.s32.totalorder (!%p283_p7), %s1266_s7, 63 }
  0x59   : > { %v385_v0 = vld [vmem:[%s2134_s2] sm:$0xff]  ;;  %v1673_v1 = vmov 0   ;;  %vm711_vm0 = vcmask 261120   ;;  %v1406_v7 = vld [vmem:[%s1866_s4 + $0x108] sm:$0xf]  ;;  %s2140_s7 = smov (!%p314_p8, %s1266_s7), 63 }
  0x5a   : > { %1648 = vset.pattern.permute.xlu0 %v1673_v1  ;;  %v1398_v2 = vld [vmem:[%s1866_s4 + $0x100] sm:$0xf]  ;;  %v1591_v4 = vld [vmem:[%s1866_s4 + $0x104] sm:$0xf]  ;;  %v1608_v8 = vld [vmem:[%s1866_s4 + $0x184] sm:$0xf0] }
  0x5b   : > { %388 = vperm.xlu0 %1648, %v385_v0   ;;  %v1607_v3 = vld [vmem:[%s1866_s4 + $0x17c] sm:$0xf0]  ;;  %v1400_v6 = vld [vmem:[%s1866_s4 + $0x180] sm:$0xf0]  ;;  %v1407_v10 = vor.u32 %v1608_v8, %v1406_v7  ;;  %v1592_v11 = vld [vmem:[%s1866_s4 + $0x10c] sm:$0xf] }
  0x5c   : > { %v1399_v5 = vor.u32 %v1607_v3, %v1398_v2  ;;  %v1403_v9 = vor.u32 %v1591_v4, %v1400_v6  ;;  %v1408_v12 = vld [vmem:[%s1866_s4 + $0x188] sm:$0xf0]  ;;  %v1270_v13 = vld [vmem:[%s1866_s4] sm:$0xf]  ;;  %v1559_v16 = vld [vmem:[%s1866_s4 + $0x4] sm:$0xf] }
  0x5d   : > { %v1411_v14 = vor.u32 %v1592_v11, %v1408_v12  ;;  %v1575_v15 = vld [vmem:[%s1866_s4 + $0x7c] sm:$0xf0]  ;;  %v1272_v17 = vld [vmem:[%s1866_s4 + $0x80] sm:$0xf0]  ;;  %747 = vmatpush.bf16.msra.mxu2 %v1407_v10  ;;  %v1278_v20 = vld [vmem:[%s1866_s4 + $0x8] sm:$0xf] }
  0x5e   : > { %721 = vmatpush.bf16.msra.mxu0 %v1399_v5  ;;  %734 = vmatpush.bf16.msra.mxu1 %v1403_v9  ;;  %v1271_v18 = vor.u32 %v1575_v15, %v1270_v13  ;;  %v1275_v19 = vor.u32 %v1559_v16, %v1272_v17  ;;  %v1576_v21 = vld [vmem:[%s1866_s4 + $0x84] sm:$0xf0]  ;;  %v1560_v22 = vld [vmem:[%s1866_s4 + $0xc] sm:$0xf]  ;;  %v1887_v25 = vld [vmem:[%s2132_s0] sm:$0xf] }
  0x5f   : > { %760 = vmatpush.bf16.msra.mxu3 %v1411_v14  ;;  %v1279_v23 = vor.u32 %v1576_v21, %v1278_v20  ;;  %v1280_v24 = vld [vmem:[%s1866_s4 + $0x88] sm:$0xf0]  ;;  %v1422_v26 = vld [vmem:[%s1866_s4 + $0x118] sm:$0xf]  ;;  %v1594_v30 = vld [vmem:[%s1866_s4 + $0x11c] sm:$0xf] }
  0x60   : > { %v1610_v27 = vld [vmem:[%s1866_s4 + $0x194] sm:$0xf0]  ;;  %v1283_v28 = vor.u32 %v1560_v22, %v1280_v24  ;;  %v1424_v31 = vld [vmem:[%s1866_s4 + $0x198] sm:$0xf0]  ;;  %v1414_v32 = vld [vmem:[%s1866_s4 + $0x110] sm:$0xf] }
  0x61   : > { %v1423_v29 = vor.u32 %v1610_v27, %v1422_v26  ;;  %v1427_v33 = vor.u32 %v1594_v30, %v1424_v31  ;;  %v1609_v34 = vld [vmem:[%s1866_s4 + $0x18c] sm:$0xf0]  ;;  %v1593_v35 = vld [vmem:[%s1866_s4 + $0x114] sm:$0xf]  ;;  %748 = vmatpush.bf16.msra.mxu2 %v1279_v23  ;;  %v1294_v38 = vld [vmem:[%s1866_s4 + $0x18] sm:$0xf] }
  0x62   : > { %722 = vmatpush.bf16.msra.mxu0 %v1271_v18  ;;  %v1416_v36 = vld [vmem:[%s1866_s4 + $0x190] sm:$0xf0]  ;;  %735 = vmatpush.bf16.msra.mxu1 %v1275_v19  ;;  %v1415_v37 = vor.u32 %v1609_v34, %v1414_v32  ;;  %v1578_v39 = vld [vmem:[%s1866_s4 + $0x94] sm:$0xf0]  ;;  %v1562_v40 = vld [vmem:[%s1866_s4 + $0x1c] sm:$0xf] }
  0x63   : > { %761 = vmatpush.bf16.msra.mxu3 %v1283_v28  ;;  %v1419_v41 = vor.u32 %v1593_v35, %v1416_v36  ;;  %v1295_v42 = vor.u32 %v1578_v39, %v1294_v38  ;;  %v1296_v43 = vld [vmem:[%s1866_s4 + $0x98] sm:$0xf0]  ;;  %v1286_v44 = vld [vmem:[%s1866_s4 + $0x10] sm:$0xf]  ;;  %v1561_v47 = vld [vmem:[%s1866_s4 + $0x14] sm:$0xf] }
  0x64   : > { %v1577_v45 = vld [vmem:[%s1866_s4 + $0x8c] sm:$0xf0]  ;;  %v1299_v46 = vor.u32 %v1562_v40, %v1296_v43  ;;  %v1288_v48 = vld [vmem:[%s1866_s4 + $0x90] sm:$0xf0]  ;;  %v1438_v49 = vld [vmem:[%s1866_s4 + $0x128] sm:$0xf]  ;;  %1526 = vmatmul.msk.bf16.vlgmr.msra.gmra.mxu2 %vm711_vm0, %v1887_v25 }
  0x65   : > { %799 = vmatpush.bf16.msrb.mxu2 %v1423_v29  ;;  %1524 = vmatmul.msk.bf16.vlgmr.msra.gmra.mxu0 %vm711_vm0, %v1887_v25  ;;  %v1612_v50 = vld [vmem:[%s1866_s4 + $0x1a4] sm:$0xf0]  ;;  %v1596_v51 = vld [vmem:[%s1866_s4 + $0x12c] sm:$0xf]  ;;  %v1287_v53 = vor.u32 %v1577_v45, %v1286_v44  ;;  %v1430_v56 = vld [vmem:[%s1866_s4 + $0x120] sm:$0xf]  ;;  %v1291_v59 = vor.u32 %v1561_v47, %v1288_v48 }
  0x66   : > { %1525 = vmatmul.msk.bf16.vlgmr.msra.gmra.mxu1 %vm711_vm0, %v1887_v25  ;;  %v1440_v52 = vld [vmem:[%s1866_s4 + $0x1a8] sm:$0xf0]  ;;  %1527 = vmatmul.msk.bf16.vlgmr.msra.gmra.mxu3 %vm711_vm0, %v1887_v25  ;;  %v1439_v54 = vor.u32 %v1612_v50, %v1438_v49  ;;  %v1611_v57 = vld [vmem:[%s1866_s4 + $0x19c] sm:$0xf0]  ;;  %v1595_v58 = vld [vmem:[%s1866_s4 + $0x124] sm:$0xf] }
  0x67   : > { %812 = vmatpush.bf16.msrb.mxu3 %v1427_v33  ;;  %773 = vmatpush.bf16.msrb.mxu0 %v1415_v37  ;;  %v1443_v55 = vor.u32 %v1596_v51, %v1440_v52  ;;  %v1431_v60 = vor.u32 %v1611_v57, %v1430_v56  ;;  %v1432_v61 = vld [vmem:[%s1866_s4 + $0x1a0] sm:$0xf0]  ;;  %v1310_v62 = vld [vmem:[%s1866_s4 + $0x28] sm:$0xf]  ;;  %v1564_v2 = vld [vmem:[%s1866_s4 + $0x2c] sm:$0xf] }
  0x68   : > { %786 = vmatpush.bf16.msrb.mxu1 %v1419_v41  ;;  %v1580_v63 = vld [vmem:[%s1866_s4 + $0xa4] sm:$0xf0]  ;;  %v1435_v0 = vor.u32 %v1595_v58, %v1432_v61  ;;  %v1312_v3 = vld [vmem:[%s1866_s4 + $0xa8] sm:$0xf0]  ;;  %v1302_v4 = vld [vmem:[%s1866_s4 + $0x20] sm:$0xf] }
  0x69   : > { %800 = vmatpush.bf16.msrb.mxu2 %v1295_v42  ;;  %v1311_v1 = vor.u32 %v1580_v63, %v1310_v62  ;;  %v1315_v5 = vor.u32 %v1564_v2, %v1312_v3  ;;  %v1579_v6 = vld [vmem:[%s1866_s4 + $0x9c] sm:$0xf0]  ;;  %v1563_v7 = vld [vmem:[%s1866_s4 + $0x24] sm:$0xf]  ;;  %v1454_v11 = vld [vmem:[%s1866_s4 + $0x138] sm:$0xf] }
  0x6a   : > { %v1304_v8 = vld [vmem:[%s1866_s4 + $0xa0] sm:$0xf0]  ;;  %v1303_v9 = vor.u32 %v1579_v6, %v1302_v4  ;;  %v1614_v12 = vld [vmem:[%s1866_s4 + $0x1b4] sm:$0xf0]  ;;  %v1598_v13 = vld [vmem:[%s1866_s4 + $0x13c] sm:$0xf] }
  0x6b   : > { %813 = vmatpush.bf16.msrb.mxu3 %v1299_v46  ;;  %774 = vmatpush.bf16.msrb.mxu0 %v1287_v53  ;;  %v1307_v10 = vor.u32 %v1563_v7, %v1304_v8  ;;  %v1456_v14 = vld [vmem:[%s1866_s4 + $0x1b8] sm:$0xf0]  ;;  %v1446_v15 = vld [vmem:[%s1866_s4 + $0x130] sm:$0xf]  ;;  %v1597_v17 = vld [vmem:[%s1866_s4 + $0x134] sm:$0xf]  ;;  %v1455_v19 = vor.u32 %v1614_v12, %v1454_v11 }
  0x6c   : > { %787 = vmatpush.bf16.msrb.mxu1 %v1291_v59  ;;  %v1613_v16 = vld [vmem:[%s1866_s4 + $0x1ac] sm:$0xf0]  ;;  %v1448_v18 = vld [vmem:[%s1866_s4 + $0x1b0] sm:$0xf0]  ;;  %v1459_v20 = vor.u32 %v1598_v13, %v1456_v14  ;;  %v1326_v22 = vld [vmem:[%s1866_s4 + $0x38] sm:$0xf] }
  0x6d   : > { %851 = vmatpush.bf16.msra.mxu2 %v1439_v54  ;;  %v1447_v21 = vor.u32 %v1613_v16, %v1446_v15  ;;  %v1582_v23 = vld [vmem:[%s1866_s4 + $0xb4] sm:$0xf0]  ;;  %v1566_v24 = vld [vmem:[%s1866_s4 + $0x3c] sm:$0xf]  ;;  %v1451_v26 = vor.u32 %v1597_v17, %v1448_v18  ;;  %v1318_v28 = vld [vmem:[%s1866_s4 + $0x30] sm:$0xf] }
  0x6e   : > { %v1328_v27 = vld [vmem:[%s1866_s4 + $0xb8] sm:$0xf0]  ;;  %v1581_v29 = vld [vmem:[%s1866_s4 + $0xac] sm:$0xf0]  ;;  %v1565_v30 = vld [vmem:[%s1866_s4 + $0x34] sm:$0xf]  ;;  %v1327_v32 = vor.u32 %v1582_v23, %v1326_v22 }
  0x6f   : > { %864 = vmatpush.bf16.msra.mxu3 %v1443_v55  ;;  %825 = vmatpush.bf16.msra.mxu0 %v1431_v60  ;;  %v1320_v31 = vld [vmem:[%s1866_s4 + $0xb0] sm:$0xf0]  ;;  %v1331_v33 = vor.u32 %v1566_v24, %v1328_v27  ;;  %v1319_v34 = vor.u32 %v1581_v29, %v1318_v28  ;;  %v1470_v36 = vld [vmem:[%s1866_s4 + $0x148] sm:$0xf]  ;;  %v1600_v38 = vld [vmem:[%s1866_s4 + $0x14c] sm:$0xf] }
  0x70   : > { %838 = vmatpush.bf16.msra.mxu1 %v1435_v0  ;;  %v1323_v35 = vor.u32 %v1565_v30, %v1320_v31  ;;  %v1616_v37 = vld [vmem:[%s1866_s4 + $0x1c4] sm:$0xf0]  ;;  %v1472_v39 = vld [vmem:[%s1866_s4 + $0x1c8] sm:$0xf0]  ;;  %v1462_v40 = vld [vmem:[%s1866_s4 + $0x140] sm:$0xf] }
  0x71   : > { %852 = vmatpush.bf16.msra.mxu2 %v1311_v1  ;;  %v1615_v41 = vld [vmem:[%s1866_s4 + $0x1bc] sm:$0xf0]  ;;  %v1599_v42 = vld [vmem:[%s1866_s4 + $0x144] sm:$0xf]  ;;  %v1471_v44 = vor.u32 %v1616_v37, %v1470_v36  ;;  %v1475_v45 = vor.u32 %v1600_v38, %v1472_v39  ;;  %v1342_v47 = vld [vmem:[%s1866_s4 + $0x48] sm:$0xf] }
  0x72   : > { %v1464_v43 = vld [vmem:[%s1866_s4 + $0x1c0] sm:$0xf0]  ;;  %v1463_v46 = vor.u32 %v1615_v41, %v1462_v40  ;;  %v1584_v48 = vld [vmem:[%s1866_s4 + $0xc4] sm:$0xf0]  ;;  %v1568_v49 = vld [vmem:[%s1866_s4 + $0x4c] sm:$0xf] }
  0x73   : > { %865 = vmatpush.bf16.msra.mxu3 %v1315_v5  ;;  %826 = vmatpush.bf16.msra.mxu0 %v1303_v9  ;;  %v1467_v50 = vor.u32 %v1599_v42, %v1464_v43  ;;  %v1344_v51 = vld [vmem:[%s1866_s4 + $0xc8] sm:$0xf0]  ;;  %v1334_v52 = vld [vmem:[%s1866_s4 + $0x40] sm:$0xf]  ;;  %v1567_v54 = vld [vmem:[%s1866_s4 + $0x44] sm:$0xf]  ;;  %v1343_v56 = vor.u32 %v1584_v48, %v1342_v47 }
  0x74   : > { %839 = vmatpush.bf16.msra.mxu1 %v1307_v10  ;;  %1530 = vmatmul.msk.bf16.vlgmr.msrb.gmra.mxu2 %vm711_vm0, %v1887_v25  ;;  %v1583_v53 = vld [vmem:[%s1866_s4 + $0xbc] sm:$0xf0]  ;;  %v1336_v55 = vld [vmem:[%s1866_s4 + $0xc0] sm:$0xf0]  ;;  %v1347_v57 = vor.u32 %v1568_v49, %v1344_v51  ;;  %v1486_v60 = vld [vmem:[%s1866_s4 + $0x158] sm:$0xf] }
  0x75   : > { %1528 = vmatmul.msk.bf16.vlgmr.msrb.gmra.mxu0 %vm711_vm0, %v1887_v25  ;;  %903 = vmatpush.bf16.msrb.mxu2 %v1455_v19  ;;  %v1335_v58 = vor.u32 %v1583_v53, %v1334_v52  ;;  %v1339_v59 = vor.u32 %v1567_v54, %v1336_v55  ;;  %v1618_v61 = vld [vmem:[%s1866_s4 + $0x1d4] sm:$0xf0]  ;;  %v1602_v62 = vld [vmem:[%s1866_s4 + $0x15c] sm:$0xf]  ;;  %v1478_v0 = vld [vmem:[%s1866_s4 + $0x150] sm:$0xf] }
  0x76   : > { %1529 = vmatmul.msk.bf16.vlgmr.msrb.gmra.mxu1 %vm711_vm0, %v1887_v25  ;;  %1531 = vmatmul.msk.bf16.vlgmr.msrb.gmra.mxu3 %vm711_vm0, %v1887_v25  ;;  %v1488_v63 = vld [vmem:[%s1866_s4 + $0x1d8] sm:$0xf0]  ;;  %v1617_v1 = vld [vmem:[%s1866_s4 + $0x1cc] sm:$0xf0]  ;;  %v1601_v2 = vld [vmem:[%s1866_s4 + $0x154] sm:$0xf]  ;;  %v1487_v4 = vor.u32 %v1618_v61, %v1486_v60 }
  0x77   : > { %916 = vmatpush.bf16.msrb.mxu3 %v1459_v20  ;;  %877 = vmatpush.bf16.msrb.mxu0 %v1447_v21  ;;  %v1480_v3 = vld [vmem:[%s1866_s4 + $0x1d0] sm:$0xf0]  ;;  %v1491_v5 = vor.u32 %v1602_v62, %v1488_v63  ;;  %v1479_v6 = vor.u32 %v1617_v1, %v1478_v0  ;;  %v1358_v7 = vld [vmem:[%s1866_s4 + $0x58] sm:$0xf]  ;;  %v1570_v9 = vld [vmem:[%s1866_s4 + $0x5c] sm:$0xf] }
  0x78   : > { %890 = vmatpush.bf16.msrb.mxu1 %v1451_v26  ;;  %v1586_v8 = vld [vmem:[%s1866_s4 + $0xd4] sm:$0xf0]  ;;  %v1483_v10 = vor.u32 %v1601_v2, %v1480_v3  ;;  %v1360_v11 = vld [vmem:[%s1866_s4 + $0xd8] sm:$0xf0]  ;;  %v1350_v12 = vld [vmem:[%s1866_s4 + $0x50] sm:$0xf] }
  0x79   : > { %904 = vmatpush.bf16.msrb.mxu2 %v1327_v32  ;;  %v1585_v13 = vld [vmem:[%s1866_s4 + $0xcc] sm:$0xf0]  ;;  %v1569_v14 = vld [vmem:[%s1866_s4 + $0x54] sm:$0xf]  ;;  %v1359_v16 = vor.u32 %v1586_v8, %v1358_v7  ;;  %v1363_v17 = vor.u32 %v1570_v9, %v1360_v11  ;;  %v1502_v20 = vld [vmem:[%s1866_s4 + $0x168] sm:$0xf] }
  0x7a   : > { %v1352_v15 = vld [vmem:[%s1866_s4 + $0xd0] sm:$0xf0]  ;;  %v1351_v18 = vor.u32 %v1585_v13, %v1350_v12  ;;  %v1620_v21 = vld [vmem:[%s1866_s4 + $0x1e4] sm:$0xf0]  ;;  %v1604_v22 = vld [vmem:[%s1866_s4 + $0x16c] sm:$0xf] }
  0x7b   : > { %917 = vmatpush.bf16.msrb.mxu3 %v1331_v33  ;;  %878 = vmatpush.bf16.msrb.mxu0 %v1319_v34  ;;  %v1355_v19 = vor.u32 %v1569_v14, %v1352_v15  ;;  %v1504_v23 = vld [vmem:[%s1866_s4 + $0x1e8] sm:$0xf0]  ;;  %v1494_v24 = vld [vmem:[%s1866_s4 + $0x160] sm:$0xf]  ;;  %v1603_v27 = vld [vmem:[%s1866_s4 + $0x164] sm:$0xf]  ;;  %v1503_v29 = vor.u32 %v1620_v21, %v1502_v20 }
  0x7c   : > { %891 = vmatpush.bf16.msrb.mxu1 %v1323_v35  ;;  %v1619_v26 = vld [vmem:[%s1866_s4 + $0x1dc] sm:$0xf0]  ;;  %v1496_v28 = vld [vmem:[%s1866_s4 + $0x1e0] sm:$0xf0]  ;;  %v1507_v30 = vor.u32 %v1604_v22, %v1504_v23  ;;  %v1374_v32 = vld [vmem:[%s1866_s4 + $0x68] sm:$0xf] }
  0x7d   : > { %v1495_v31 = vor.u32 %v1619_v26, %v1494_v24  ;;  %v1588_v33 = vld [vmem:[%s1866_s4 + $0xe4] sm:$0xf0]  ;;  %v1572_v34 = vld [vmem:[%s1866_s4 + $0x6c] sm:$0xf]  ;;  %v1499_v35 = vor.u32 %v1603_v27, %v1496_v28  ;;  %v1366_v37 = vld [vmem:[%s1866_s4 + $0x60] sm:$0xf] }
  0x7e   : > { %v1376_v36 = vld [vmem:[%s1866_s4 + $0xe8] sm:$0xf0]  ;;  %v1587_v38 = vld [vmem:[%s1866_s4 + $0xdc] sm:$0xf0]  ;;  %v1571_v39 = vld [vmem:[%s1866_s4 + $0x64] sm:$0xf]  ;;  %v1375_v41 = vor.u32 %v1588_v33, %v1374_v32 }
  0x7f   : > { %v1368_v40 = vld [vmem:[%s1866_s4 + $0xe0] sm:$0xf0]  ;;  %v1379_v42 = vor.u32 %v1572_v34, %v1376_v36  ;;  %v1367_v43 = vor.u32 %v1587_v38, %v1366_v37  ;;  %v1606_v47 = vld [vmem:[%s1866_s4 + $0x17c] sm:$0xf]  ;;  %v1510_v49 = vld [vmem:[%s1866_s4 + $0x170] sm:$0xf] }
  0x80   : > { %v1520_v48 = vld [vmem:[%s1866_s4 + $0x1f8] sm:$0xf0]  ;;  %v1605_v51 = vld [vmem:[%s1866_s4 + $0x174] sm:$0xf]  ;;  %v1382_v61 = vld [vmem:[%s1866_s4 + $0x70] sm:$0xf] }
  0x81   : > { %v1512_v52 = vld [vmem:[%s1866_s4 + $0x1f0] sm:$0xf0]  ;;  %v1523_v54 = vor.u32 %v1606_v47, %v1520_v48  ;;  %v1392_v60 = vld [vmem:[%s1866_s4 + $0xf8] sm:$0xf0]  ;;  %v1589_v62 = vld [vmem:[%s1866_s4 + $0xec] sm:$0xf0] }
  0x82   : > { %v1573_v63 = vld [vmem:[%s1866_s4 + $0x74] sm:$0xf]  ;;  %v1383_v3 = vor.u32 %v1589_v62, %v1382_v61  ;;  %s1267_s8 = sshll.u32 %s2140_s7, 2 }
  0x83   : > { %v1384_v0 = vld [vmem:[%s1866_s4 + $0xf0] sm:$0xf0]  ;;  %s2074_s11 = scalar_lea.vmem %s2135_s3, %s1267_s8 }
  0x84   : > { %1534 = vmatmul.msk.bf16.vlgmr.msra.gmra.mxu2 %vm711_vm0, %v1887_v25 }
  0x85   : > { %1532 = vmatmul.msk.bf16.vlgmr.msra.gmra.mxu0 %vm711_vm0, %v1887_v25  ;;  %955 = vmatpush.bf16.msra.mxu2 %v1471_v44  ;;  %v1371_v44 = vor.u32 %v1571_v39, %v1368_v40 }
  0x86   : > { %1533 = vmatmul.msk.bf16.vlgmr.msra.gmra.mxu1 %vm711_vm0, %v1887_v25  ;;  %1535 = vmatmul.msk.bf16.vlgmr.msra.gmra.mxu3 %vm711_vm0, %v1887_v25 }
  0x87   : > { %968 = vmatpush.bf16.msra.mxu3 %v1475_v45  ;;  %929 = vmatpush.bf16.msra.mxu0 %v1463_v46  ;;  %v1518_v45 = vld [vmem:[%s1866_s4 + $0x178] sm:$0xf] }
  0x88   : > { %942 = vmatpush.bf16.msra.mxu1 %v1467_v50  ;;  %v1622_v46 = vld [vmem:[%s1866_s4 + $0x1f4] sm:$0xf0]  ;;  %v1621_v50 = vld [vmem:[%s1866_s4 + $0x1ec] sm:$0xf0] }
  0x89   : > { %956 = vmatpush.bf16.msra.mxu2 %v1343_v56  ;;  %v1519_v53 = vor.u32 %v1622_v46, %v1518_v45  ;;  %v1511_v55 = vor.u32 %v1621_v50, %v1510_v49  ;;  %v1390_v56 = vld [vmem:[%s1866_s4 + $0x78] sm:$0xf] }
  0x8b   : > { %969 = vmatpush.bf16.msra.mxu3 %v1347_v57  ;;  %930 = vmatpush.bf16.msra.mxu0 %v1335_v58  ;;  %v1590_v57 = vld [vmem:[%s1866_s4 + $0xf4] sm:$0xf0]  ;;  %v1574_v58 = vld [vmem:[%s1866_s4 + $0x7c] sm:$0xf] }
  0x8c   : > { %943 = vmatpush.bf16.msra.mxu1 %v1339_v59  ;;  %v1515_v59 = vor.u32 %v1605_v51, %v1512_v52  ;;  %v1391_v1 = vor.u32 %v1590_v57, %v1390_v56  ;;  %v1395_v2 = vor.u32 %v1574_v58, %v1392_v60 }
  0x94   : > { %1538 = vmatmul.msk.bf16.vlgmr.msrb.gmra.mxu2 %vm711_vm0, %v1887_v25 }
  0x95   : > { %1536 = vmatmul.msk.bf16.vlgmr.msrb.gmra.mxu0 %vm711_vm0, %v1887_v25  ;;  %1007 = vmatpush.bf16.msrb.mxu2 %v1487_v4  ;;  %v1387_v4 = vor.u32 %v1573_v63, %v1384_v0 }
  0x96   : > { %1537 = vmatmul.msk.bf16.vlgmr.msrb.gmra.mxu1 %vm711_vm0, %v1887_v25  ;;  %1539 = vmatmul.msk.bf16.vlgmr.msrb.gmra.mxu3 %vm711_vm0, %v1887_v25 }
  0x97   : > { %1020 = vmatpush.bf16.msrb.mxu3 %v1491_v5  ;;  %981 = vmatpush.bf16.msrb.mxu0 %v1479_v6 }
  0x98   : > { %994 = vmatpush.bf16.msrb.mxu1 %v1483_v10 }
  0x99   : > { %1008 = vmatpush.bf16.msrb.mxu2 %v1359_v16 }
  0x9b   : > { %1021 = vmatpush.bf16.msrb.mxu3 %v1363_v17  ;;  %982 = vmatpush.bf16.msrb.mxu0 %v1351_v18 }
  0x9c   : > { %995 = vmatpush.bf16.msrb.mxu1 %v1355_v19 }
  0xa4   : > { %1542 = vmatmul.msk.bf16.vlgmr.msra.gmra.mxu2 %vm711_vm0, %v1887_v25 }
  0xa5   : > { %1540 = vmatmul.msk.bf16.vlgmr.msra.gmra.mxu0 %vm711_vm0, %v1887_v25  ;;  %1059 = vmatpush.bf16.msra.mxu2 %v1503_v29 }
  0xa6   : > { %1541 = vmatmul.msk.bf16.vlgmr.msra.gmra.mxu1 %vm711_vm0, %v1887_v25  ;;  %1543 = vmatmul.msk.bf16.vlgmr.msra.gmra.mxu3 %vm711_vm0, %v1887_v25 }
  0xa7   : > { %1072 = vmatpush.bf16.msra.mxu3 %v1507_v30  ;;  %1033 = vmatpush.bf16.msra.mxu0 %v1495_v31 }
  0xa8   : > { %1046 = vmatpush.bf16.msra.mxu1 %v1499_v35 }
  0xa9   : > { %1060 = vmatpush.bf16.msra.mxu2 %v1375_v41 }
  0xab   : > { %1073 = vmatpush.bf16.msra.mxu3 %v1379_v42  ;;  %1034 = vmatpush.bf16.msra.mxu0 %v1367_v43 }
  0xac   : > { %1047 = vmatpush.bf16.msra.mxu1 %v1371_v44 }
  0xb4   : > { %1546 = vmatmul.msk.bf16.vlgmr.msrb.gmra.mxu2 %vm711_vm0, %v1887_v25 }
  0xb5   : > { %1544 = vmatmul.msk.bf16.vlgmr.msrb.gmra.mxu0 %vm711_vm0, %v1887_v25  ;;  %1111 = vmatpush.bf16.msrb.mxu2 %v1519_v53 }
  0xb6   : > { %1545 = vmatmul.msk.bf16.vlgmr.msrb.gmra.mxu1 %vm711_vm0, %v1887_v25  ;;  %1547 = vmatmul.msk.bf16.vlgmr.msrb.gmra.mxu3 %vm711_vm0, %v1887_v25 }
  0xb7   : > { %1124 = vmatpush.bf16.msrb.mxu3 %v1523_v54  ;;  %1085 = vmatpush.bf16.msrb.mxu0 %v1511_v55 }
  0xb8   : > { %1098 = vmatpush.bf16.msrb.mxu1 %v1515_v59 }
  0xb9   : > { %1112 = vmatpush.bf16.msrb.mxu2 %v1391_v1 }
  0xbb   : > { %1125 = vmatpush.bf16.msrb.mxu3 %v1395_v2  ;;  %1086 = vmatpush.bf16.msrb.mxu0 %v1383_v3 }
  0xbc   : > { %1099 = vmatpush.bf16.msrb.mxu1 %v1387_v4 }
  0xc4   : > { %1550 = vmatmul.msk.bf16.vlgmr.msra.gmra.mxu2 %vm711_vm0, %v1887_v25 }
  0xc5   : > { %1548 = vmatmul.msk.bf16.vlgmr.msra.gmra.mxu0 %vm711_vm0, %v1887_v25 }
  0xc6   : > { %1549 = vmatmul.msk.bf16.vlgmr.msra.gmra.mxu1 %vm711_vm0, %v1887_v25  ;;  %1551 = vmatmul.msk.bf16.vlgmr.msra.gmra.mxu3 %vm711_vm0, %v1887_v25 }
  0xcd   : > { %v2067_v5 = vpop.permute.xlu0 %388 }
  0xd4   : > { %1554 = vmatmul.msk.bf16.vlgmr.msrb.gmra.mxu2 %vm711_vm0, %v1887_v25 }
  0xd5   : > { %1552 = vmatmul.msk.bf16.vlgmr.msrb.gmra.mxu0 %vm711_vm0, %v1887_v25 }
  0xd6   : > { %1553 = vmatmul.msk.bf16.vlgmr.msrb.gmra.mxu1 %vm711_vm0, %v1887_v25  ;;  %1555 = vmatmul.msk.bf16.vlgmr.msrb.gmra.mxu3 %vm711_vm0, %v1887_v25 }
  0xe2   : > { %v724_v6 = vpop.f32.mrf.mxu0 }
  0xe3   : > { %v737_v7 = vpop.f32.mrf.mxu1  ;;  %v725_v8 = vadd.f32 %v724_v6, %v2067_v5 }
  0xe4   : > { %v738_v9 = vadd.f32 %v737_v7, %v2067_v5 }
  0xe5   : > { %v1131_v10 = vmax.f32 %v725_v8, 0.0 }
  0xe6   : > { %v1132_v11 = vmax.f32 %v738_v9, 0.0 }
  0xe7   : > { %v750_v12 = vpop.f32.mrf.mxu2 }
  0xe8   : > { %v1163_v25 = vpack.c.bf16 %v1132_v11, %v1131_v10  ;;  %v751_v13 = vadd.f32 %v750_v12, %v2067_v5 }
  0xe9   : > { %v763_v14 = vpop.f32.mrf.mxu3 }
  0xea   : > { %1179 = vst [vmem:[%s2074_s11] sm:$0xff] %v1163_v25  ;;  %v726_v15 = vpop.f32.mrf.mxu0  ;;  %v764_v16 = vadd.f32 %v763_v14, %v2067_v5  ;;  %v1133_v18 = vmax.f32 %v751_v13, 0.0 }
  0xeb   : > { %v739_v17 = vpop.f32.mrf.mxu1 }
  0xec   : > { %v1134_v19 = vmax.f32 %v764_v16, 0.0 }
  0xee   : > { %v1164_v20 = vpack.c.bf16 %v1134_v19, %v1133_v18 }
  0xef   : > { %v752_v21 = vpop.f32.mrf.mxu2 }
  0xf0   : > { %1180 = vst [vmem:[%s2074_s11 + $0x8] sm:$0xff] %v1164_v20 }
  0xf1   : > { %v765_v22 = vpop.f32.mrf.mxu3 }
  0xf2   : > { %v776_v23 = vpop.f32.mrf.mxu0 }
  0xf3   : > { %v777_v24 = vadd.f32 %v776_v23, %v2067_v5  ;;  %v789_v26 = vpop.f32.mrf.mxu1 }
  0xf4   : > { %v790_v27 = vadd.f32 %v789_v26, %v2067_v5 }
  0xf5   : > { %v1135_v28 = vmax.f32 %v777_v24, 0.0 }
  0xf6   : > { %v1136_v29 = vmax.f32 %v790_v27, 0.0 }
  0xf7   : > { %v802_v31 = vpop.f32.mrf.mxu2 }
  0xf8   : > { %v1165_v30 = vpack.c.bf16 %v1136_v29, %v1135_v28  ;;  %v803_v32 = vadd.f32 %v802_v31, %v2067_v5 }
  0xf9   : > { %v815_v33 = vpop.f32.mrf.mxu3 }
  0xfa   : > { %1181 = vst [vmem:[%s2074_s11 + $0x10] sm:$0xff] %v1165_v30  ;;  %v778_v34 = vpop.f32.mrf.mxu0  ;;  %v816_v35 = vadd.f32 %v815_v33, %v2067_v5  ;;  %v1137_v37 = vmax.f32 %v803_v32, 0.0 }
  0xfb   : > { %v791_v36 = vpop.f32.mrf.mxu1 }
  0xfc   : > { %v1138_v38 = vmax.f32 %v816_v35, 0.0 }
  0xfe   : > { %v1166_v39 = vpack.c.bf16 %v1138_v38, %v1137_v37 }
  0xff   : > { %v804_v40 = vpop.f32.mrf.mxu2 }
 0x100   : > { %1182 = vst [vmem:[%s2074_s11 + $0x18] sm:$0xff] %v1166_v39 }
 0x101   : > { %v817_v41 = vpop.f32.mrf.mxu3 }
 0x102   : > { %v828_v42 = vpop.f32.mrf.mxu0 }
 0x103   : > { %v829_v43 = vadd.f32 %v828_v42, %v2067_v5  ;;  %v841_v44 = vpop.f32.mrf.mxu1 }
 0x104   : > { %v842_v45 = vadd.f32 %v841_v44, %v2067_v5 }
 0x105   : > { %v1139_v46 = vmax.f32 %v829_v43, 0.0 }
 0x106   : > { %v1140_v47 = vmax.f32 %v842_v45, 0.0 }
 0x107   : > { %v854_v49 = vpop.f32.mrf.mxu2 }
 0x108   : > { %v1167_v48 = vpack.c.bf16 %v1140_v47, %v1139_v46  ;;  %v855_v50 = vadd.f32 %v854_v49, %v2067_v5 }
 0x109   : > { %v867_v51 = vpop.f32.mrf.mxu3 }
 0x10a   : > { %1183 = vst [vmem:[%s2074_s11 + $0x20] sm:$0xff] %v1167_v48  ;;  %v830_v52 = vpop.f32.mrf.mxu0  ;;  %v868_v53 = vadd.f32 %v867_v51, %v2067_v5  ;;  %v1141_v55 = vmax.f32 %v855_v50, 0.0 }
 0x10b   : > { %v843_v54 = vpop.f32.mrf.mxu1 }
 0x10c   : > { %v1142_v56 = vmax.f32 %v868_v53, 0.0 }
 0x10e   : > { %v1168_v57 = vpack.c.bf16 %v1142_v56, %v1141_v55 }
 0x10f   : > { %v856_v58 = vpop.f32.mrf.mxu2 }
 0x110   : > { %1184 = vst [vmem:[%s2074_s11 + $0x28] sm:$0xff] %v1168_v57 }
 0x111   : > { %v869_v59 = vpop.f32.mrf.mxu3 }
 0x112   : > { %v880_v60 = vpop.f32.mrf.mxu0 }
 0x113   : > { %v881_v61 = vadd.f32 %v880_v60, %v2067_v5  ;;  %v893_v62 = vpop.f32.mrf.mxu1 }
 0x114   : > { %v894_v63 = vadd.f32 %v893_v62, %v2067_v5 }
 0x115   : > { %v1143_v0 = vmax.f32 %v881_v61, 0.0 }
 0x116   : > { %v1144_v1 = vmax.f32 %v894_v63, 0.0 }
 0x117   : > { %v906_v3 = vpop.f32.mrf.mxu2 }
 0x118   : > { %v1169_v2 = vpack.c.bf16 %v1144_v1, %v1143_v0  ;;  %v907_v4 = vadd.f32 %v906_v3, %v2067_v5 }
 0x119   : > { %v919_v6 = vpop.f32.mrf.mxu3 }
 0x11a   : > { %1185 = vst [vmem:[%s2074_s11 + $0x30] sm:$0xff] %v1169_v2  ;;  %v882_v7 = vpop.f32.mrf.mxu0  ;;  %v920_v8 = vadd.f32 %v919_v6, %v2067_v5  ;;  %v1145_v10 = vmax.f32 %v907_v4, 0.0 }
 0x11b   : > { %v895_v9 = vpop.f32.mrf.mxu1 }
 0x11c   : > { %v1146_v11 = vmax.f32 %v920_v8, 0.0 }
 0x11e   : > { %v1170_v25 = vpack.c.bf16 %v1146_v11, %v1145_v10 }
 0x11f   : > { %v908_v12 = vpop.f32.mrf.mxu2 }
 0x120   : > { %1186 = vst [vmem:[%s2074_s11 + $0x38] sm:$0xff] %v1170_v25 }
 0x121   : > { %v921_v13 = vpop.f32.mrf.mxu3 }
 0x122   : > { %v932_v14 = vpop.f32.mrf.mxu0 }
 0x123   : > { %v933_v15 = vadd.f32 %v932_v14, %v2067_v5  ;;  %v945_v16 = vpop.f32.mrf.mxu1 }
 0x124   : > { %v946_v17 = vadd.f32 %v945_v16, %v2067_v5 }
 0x125   : > { %v1147_v18 = vmax.f32 %v933_v15, 0.0 }
 0x126   : > { %v1148_v19 = vmax.f32 %v946_v17, 0.0 }
 0x127   : > { %v958_v21 = vpop.f32.mrf.mxu2 }
 0x128   : > { %v1171_v20 = vpack.c.bf16 %v1148_v19, %v1147_v18  ;;  %v959_v22 = vadd.f32 %v958_v21, %v2067_v5 }
 0x129   : > { %v971_v23 = vpop.f32.mrf.mxu3 }
 0x12a   : > { %1187 = vst [vmem:[%s2074_s11 + $0x40] sm:$0xff] %v1171_v20  ;;  %v934_v24 = vpop.f32.mrf.mxu0  ;;  %v972_v26 = vadd.f32 %v971_v23, %v2067_v5  ;;  %v1149_v28 = vmax.f32 %v959_v22, 0.0 }
 0x12b   : > { %v947_v27 = vpop.f32.mrf.mxu1 }
 0x12c   : > { %v1150_v29 = vmax.f32 %v972_v26, 0.0 }
 0x12e   : > { %v1172_v30 = vpack.c.bf16 %v1150_v29, %v1149_v28 }
 0x12f   : > { %v960_v31 = vpop.f32.mrf.mxu2 }
 0x130   : > { %1188 = vst [vmem:[%s2074_s11 + $0x48] sm:$0xff] %v1172_v30 }
 0x131   : > { %v973_v32 = vpop.f32.mrf.mxu3 }
 0x132   : > { %v984_v33 = vpop.f32.mrf.mxu0 }
 0x133   : > { %v985_v34 = vadd.f32 %v984_v33, %v2067_v5  ;;  %v997_v35 = vpop.f32.mrf.mxu1 }
 0x134   : > { %v998_v36 = vadd.f32 %v997_v35, %v2067_v5 }
 0x135   : > { %v1151_v37 = vmax.f32 %v985_v34, 0.0 }
 0x136   : > { %v1152_v38 = vmax.f32 %v998_v36, 0.0 }
 0x137   : > { %v1010_v40 = vpop.f32.mrf.mxu2 }
 0x138   : > { %v1173_v39 = vpack.c.bf16 %v1152_v38, %v1151_v37  ;;  %v1011_v41 = vadd.f32 %v1010_v40, %v2067_v5 }
 0x139   : > { %v1023_v42 = vpop.f32.mrf.mxu3 }
 0x13a   : > { %1189 = vst [vmem:[%s2074_s11 + $0x50] sm:$0xff] %v1173_v39  ;;  %v986_v43 = vpop.f32.mrf.mxu0  ;;  %v1024_v44 = vadd.f32 %v1023_v42, %v2067_v5  ;;  %v1153_v46 = vmax.f32 %v1011_v41, 0.0 }
 0x13b   : > { %v999_v45 = vpop.f32.mrf.mxu1 }
 0x13c   : > { %v1154_v47 = vmax.f32 %v1024_v44, 0.0 }
 0x13e   : > { %v1174_v48 = vpack.c.bf16 %v1154_v47, %v1153_v46 }
 0x13f   : > { %v1012_v49 = vpop.f32.mrf.mxu2 }
 0x140   : > { %1190 = vst [vmem:[%s2074_s11 + $0x58] sm:$0xff] %v1174_v48 }
 0x141   : > { %v1025_v50 = vpop.f32.mrf.mxu3 }
 0x142   : > { %v1036_v51 = vpop.f32.mrf.mxu0 }
 0x143   : > { %v1037_v52 = vadd.f32 %v1036_v51, %v2067_v5  ;;  %v1049_v53 = vpop.f32.mrf.mxu1 }
 0x144   : > { %v1050_v54 = vadd.f32 %v1049_v53, %v2067_v5 }
 0x145   : > { %v1155_v55 = vmax.f32 %v1037_v52, 0.0 }
 0x146   : > { %v1156_v56 = vmax.f32 %v1050_v54, 0.0 }
 0x147   : > { %v1062_v58 = vpop.f32.mrf.mxu2 }
 0x148   : > { %v1175_v57 = vpack.c.bf16 %v1156_v56, %v1155_v55  ;;  %v1063_v59 = vadd.f32 %v1062_v58, %v2067_v5 }
 0x149   : > { %v1075_v60 = vpop.f32.mrf.mxu3 }
 0x14a   : > { %1191 = vst [vmem:[%s2074_s11 + $0x60] sm:$0xff] %v1175_v57  ;;  %v1038_v61 = vpop.f32.mrf.mxu0  ;;  %v1076_v62 = vadd.f32 %v1075_v60, %v2067_v5  ;;  %v1157_v0 = vmax.f32 %v1063_v59, 0.0 }
 0x14b   : > { %v1051_v63 = vpop.f32.mrf.mxu1 }
 0x14c   : > { %v1158_v1 = vmax.f32 %v1076_v62, 0.0 }
 0x14e   : > { %v1176_v2 = vpack.c.bf16 %v1158_v1, %v1157_v0 }
 0x14f   : > { %v1064_v3 = vpop.f32.mrf.mxu2 }
 0x150   : > { %1192 = vst [vmem:[%s2074_s11 + $0x68] sm:$0xff] %v1176_v2 }
 0x151   : > { %v1077_v4 = vpop.f32.mrf.mxu3 }
 0x152   : > { %v1088_v6 = vpop.f32.mrf.mxu0 }
 0x153   : > { %v1089_v7 = vadd.f32 %v1088_v6, %v2067_v5  ;;  %v1101_v8 = vpop.f32.mrf.mxu1 }
 0x154   : > { %v1102_v9 = vadd.f32 %v1101_v8, %v2067_v5 }
 0x155   : > { %v1159_v10 = vmax.f32 %v1089_v7, 0.0 }
 0x156   : > { %v1160_v11 = vmax.f32 %v1102_v9, 0.0 }
 0x157   : > { %v1114_v12 = vpop.f32.mrf.mxu2 }
 0x158   : > { %v1177_v25 = vpack.c.bf16 %v1160_v11, %v1159_v10  ;;  %v1115_v13 = vadd.f32 %v1114_v12, %v2067_v5 }
 0x159   : > { %v1127_v14 = vpop.f32.mrf.mxu3 }
 0x15a   : > { %1193 = vst [vmem:[%s2074_s11 + $0x70] sm:$0xff] %v1177_v25  ;;  %v1090_v15 = vpop.f32.mrf.mxu0  ;;  %v1128_v16 = vadd.f32 %v1127_v14, %v2067_v5  ;;  %v1161_v18 = vmax.f32 %v1115_v13, 0.0 }
 0x15b   : > { %v1103_v17 = vpop.f32.mrf.mxu1 }
 0x15c   : > { %v1162_v19 = vmax.f32 %v1128_v16, 0.0 }
 0x15e   : > { %v1178_v20 = vpack.c.bf16 %v1162_v19, %v1161_v18 }
 0x15f   : > { %v1116_v21 = vpop.f32.mrf.mxu2 }
 0x160   : > { %1194 = vst [vmem:[%s2074_s11 + $0x78] sm:$0xff] %v1178_v20 }
 0x161   : > { %v1129_v22 = vpop.f32.mrf.mxu3 }
 0x162 PF: > { %p10_p9 = scmp.ge.s32.totalorder %s1711_s16, 4   ;;  %s2136_s12 = smov %s1667_s13 }
 0x163   : > { %s2137_s13 = smov %s1720_s19  ;;  %s2138_s14 = smov %s1711_s16 }
 0x164   :  { %12 = sbr.rel (!%p10_p9) target bundleno = 2 (0x2), region = 90 }

// kernel: discriminator_forward.7
= control target key start
LH: loop header
LB: loop body
LE: loop exit
PB: predicated region body
PF: predicated region fallthrough
CT: control target
= control target key end

     0   :  { %s1297_s12 = smov 0   ;;  %s1299_s13 = smov 0   ;;  %s1633_s0 = inlined_call_operand.vmem [shape: bf16[8,128], index: 0, kind: input, shape index: {}]   ;;  %s1634_s1 = inlined_call_operand.vmem [shape: bf16[128,2048], index: 1, kind: input, shape index: {}]   ;;  %s1635_s2 = inlined_call_operand.vmem [shape: f32[8,1], index: 2, kind: input, shape index: {}]   ;;  %s1636_s3 = inlined_call_operand.vmem [shape: bf16[8,2048], index: 3, kind: output, shape index: {}]  }
   0x1   :  { %s1301_s14 = smov 0  }
   0x2 LB: > { %s892_s15 = sadd.s32 4294967295, %s1274_s14   ;;  %s1314_s16 = sadd.s32 1, %s1274_s14   ;;  %s1274_s14 = sphi %s1301_s14, %s1639_s14   ;;  %s1270_s13 = sphi %s1299_s13, %s1638_s13   ;;  %s1266_s12 = sphi %s1297_s12, %s1637_s12  }
   0x3   : > { %s38_s17 = ssub.s32 %s1274_s14, %s1314_s16  ;;  %s41_s18 = sadd.s32 1, %s1270_s13 }
   0x4   : > { %p39_p0 = scmp.eq.s32.totalorder %s38_s17, 0  ;;  %p48_p1 = scmp.ne.s32.totalorder %s1270_s13, %s1266_s12 }
   0x5   : > { %p49_p2 = scmp.eq.s32.totalorder %s1274_s14, 0  ;;  %p895_p4 = scmp.ge.s32.totalorder %s1274_s14, 2 }
   0x6   : > { %s1323_s19 = scalar_select %p39_p0, %s1270_s13, %s41_s18  }
   0x7   : > { %p50_p3 = por %p49_p2, %p48_p1  ;;  %127 = sbr.rel (%p895_p4) target bundleno = 80 (0x50), region = 24 }
   0xc   : > { %130 = sbr.rel (!%p50_p3) target bundleno = 80 (0x50), region = 28  ;;  %s132_s20 = sand.u32 (%p50_p3), 1, %s1270_s13  }
   0xd   : > { %s1161_s21 = sshll.u32 (%p50_p3), %s1274_s14, 5  ;;  %s896_s22 = sshll.u32 (%p50_p3), %s132_s20, 9 }
   0xe   : > { %s1331_s25 = scalar_lea.vmem (%p50_p3), %s1634_s1, %s1161_s21  ;;  %s1336_s26 = scalar_lea.vmem (%p50_p3), [#allocation2], %s896_s22 }
   0xf   : > { %v150_v0 = vld [vmem:[%s1331_s25] sm:$0xff] (%p50_p3)  ;;  %v152_v1 = vld [vmem:[%s1331_s25 + $0x8] sm:$0xff] (%p50_p3)  ;;  %v154_v2 = vld [vmem:[%s1331_s25 + $0x10] sm:$0xff] (%p50_p3) }
  0x10   : > { %151 = vst [vmem:[%s1336_s26] sm:$0xff] (%p50_p3), %v150_v0  ;;  %v156_v3 = vld [vmem:[%s1331_s25 + $0x18] sm:$0xff] (%p50_p3)  ;;  %v158_v4 = vld [vmem:[%s1331_s25 + $0x40] sm:$0xff] (%p50_p3)  ;;  %v160_v5 = vld [vmem:[%s1331_s25 + $0x48] sm:$0xff] (%p50_p3) }
  0x11   : > { %153 = vst [vmem:[%s1336_s26 + $0x8] sm:$0xff] %v152_v1  ;;  %v162_v6 = vld [vmem:[%s1331_s25 + $0x50] sm:$0xff]  ;;  %v164_v7 = vld [vmem:[%s1331_s25 + $0x58] sm:$0xff]  ;;  %v166_v8 = vld [vmem:[%s1331_s25 + $0x80] sm:$0xff] }
  0x12   : > { %155 = vst [vmem:[%s1336_s26 + $0x10] sm:$0xff] %v154_v2  ;;  %v168_v9 = vld [vmem:[%s1331_s25 + $0x88] sm:$0xff]  ;;  %v170_v10 = vld [vmem:[%s1331_s25 + $0x90] sm:$0xff]  ;;  %v172_v11 = vld [vmem:[%s1331_s25 + $0x98] sm:$0xff] }
  0x13   : > { %157 = vst [vmem:[%s1336_s26 + $0x18] sm:$0xff] %v156_v3  ;;  %v174_v12 = vld [vmem:[%s1331_s25 + $0xc0] sm:$0xff]  ;;  %v176_v13 = vld [vmem:[%s1331_s25 + $0xc8] sm:$0xff]  ;;  %v178_v14 = vld [vmem:[%s1331_s25 + $0xd0] sm:$0xff] }
  0x14   : > { %159 = vst [vmem:[%s1336_s26 + $0x20] sm:$0xff] %v158_v4  ;;  %v180_v15 = vld [vmem:[%s1331_s25 + $0xd8] sm:$0xff]  ;;  %v182_v16 = vld [vmem:[%s1331_s25 + $0x100] sm:$0xff]  ;;  %v184_v17 = vld [vmem:[%s1331_s25 + $0x108] sm:$0xff] }
  0x15   : > { %161 = vst [vmem:[%s1336_s26 + $0x28] sm:$0xff] %v160_v5  ;;  %v186_v18 = vld [vmem:[%s1331_s25 + $0x110] sm:$0xff]  ;;  %v188_v19 = vld [vmem:[%s1331_s25 + $0x118] sm:$0xff]  ;;  %v190_v20 = vld [vmem:[%s1331_s25 + $0x140] sm:$0xff] }
  0x16   : > { %163 = vst [vmem:[%s1336_s26 + $0x30] sm:$0xff] %v162_v6  ;;  %v192_v21 = vld [vmem:[%s1331_s25 + $0x148] sm:$0xff]  ;;  %v194_v22 = vld [vmem:[%s1331_s25 + $0x150] sm:$0xff]  ;;  %v196_v23 = vld [vmem:[%s1331_s25 + $0x158] sm:$0xff] }
  0x17   : > { %165 = vst [vmem:[%s1336_s26 + $0x38] sm:$0xff] %v164_v7  ;;  %v198_v24 = vld [vmem:[%s1331_s25 + $0x180] sm:$0xff]  ;;  %v200_v25 = vld [vmem:[%s1331_s25 + $0x188] sm:$0xff]  ;;  %v202_v26 = vld [vmem:[%s1331_s25 + $0x190] sm:$0xff] }
  0x18   : > { %167 = vst [vmem:[%s1336_s26 + $0x40] sm:$0xff] %v166_v8  ;;  %v204_v27 = vld [vmem:[%s1331_s25 + $0x198] sm:$0xff]  ;;  %v206_v28 = vld [vmem:[%s1331_s25 + $0x1c0] sm:$0xff]  ;;  %v208_v29 = vld [vmem:[%s1331_s25 + $0x1c8] sm:$0xff] }
  0x19   : > { %169 = vst [vmem:[%s1336_s26 + $0x48] sm:$0xff] %v168_v9  ;;  %v210_v30 = vld [vmem:[%s1331_s25 + $0x1d0] sm:$0xff]  ;;  %v212_v31 = vld [vmem:[%s1331_s25 + $0x1d8] sm:$0xff]  ;;  %v214_v32 = vld [vmem:[%s1331_s25 + $0x200] sm:$0xff] }
  0x1a   : > { %171 = vst [vmem:[%s1336_s26 + $0x50] sm:$0xff] %v170_v10  ;;  %v216_v33 = vld [vmem:[%s1331_s25 + $0x208] sm:$0xff]  ;;  %v218_v34 = vld [vmem:[%s1331_s25 + $0x210] sm:$0xff]  ;;  %v220_v35 = vld [vmem:[%s1331_s25 + $0x218] sm:$0xff] }
  0x1b   : > { %173 = vst [vmem:[%s1336_s26 + $0x58] sm:$0xff] %v172_v11  ;;  %v222_v36 = vld [vmem:[%s1331_s25 + $0x240] sm:$0xff]  ;;  %v224_v37 = vld [vmem:[%s1331_s25 + $0x248] sm:$0xff]  ;;  %v226_v38 = vld [vmem:[%s1331_s25 + $0x250] sm:$0xff] }
  0x1c   : > { %175 = vst [vmem:[%s1336_s26 + $0x60] sm:$0xff] %v174_v12  ;;  %v228_v39 = vld [vmem:[%s1331_s25 + $0x258] sm:$0xff]  ;;  %v230_v40 = vld [vmem:[%s1331_s25 + $0x280] sm:$0xff]  ;;  %v232_v41 = vld [vmem:[%s1331_s25 + $0x288] sm:$0xff] }
  0x1d   : > { %177 = vst [vmem:[%s1336_s26 + $0x68] sm:$0xff] %v176_v13  ;;  %v234_v42 = vld [vmem:[%s1331_s25 + $0x290] sm:$0xff]  ;;  %v236_v43 = vld [vmem:[%s1331_s25 + $0x298] sm:$0xff]  ;;  %v238_v44 = vld [vmem:[%s1331_s25 + $0x2c0] sm:$0xff] }
  0x1e   : > { %179 = vst [vmem:[%s1336_s26 + $0x70] sm:$0xff] %v178_v14  ;;  %v240_v45 = vld [vmem:[%s1331_s25 + $0x2c8] sm:$0xff]  ;;  %v242_v46 = vld [vmem:[%s1331_s25 + $0x2d0] sm:$0xff]  ;;  %v244_v47 = vld [vmem:[%s1331_s25 + $0x2d8] sm:$0xff] }
  0x1f   : > { %181 = vst [vmem:[%s1336_s26 + $0x78] sm:$0xff] %v180_v15  ;;  %v246_v48 = vld [vmem:[%s1331_s25 + $0x300] sm:$0xff]  ;;  %v248_v49 = vld [vmem:[%s1331_s25 + $0x308] sm:$0xff]  ;;  %v250_v50 = vld [vmem:[%s1331_s25 + $0x310] sm:$0xff] }
  0x20   : > { %183 = vst [vmem:[%s1336_s26 + $0x80] sm:$0xff] %v182_v16  ;;  %v252_v51 = vld [vmem:[%s1331_s25 + $0x318] sm:$0xff]  ;;  %v254_v52 = vld [vmem:[%s1331_s25 + $0x340] sm:$0xff]  ;;  %v256_v53 = vld [vmem:[%s1331_s25 + $0x348] sm:$0xff] }
  0x21   : > { %185 = vst [vmem:[%s1336_s26 + $0x88] sm:$0xff] %v184_v17  ;;  %v258_v54 = vld [vmem:[%s1331_s25 + $0x350] sm:$0xff]  ;;  %v260_v55 = vld [vmem:[%s1331_s25 + $0x358] sm:$0xff]  ;;  %v262_v56 = vld [vmem:[%s1331_s25 + $0x380] sm:$0xff] }
  0x22   : > { %187 = vst [vmem:[%s1336_s26 + $0x90] sm:$0xff] %v186_v18  ;;  %v264_v57 = vld [vmem:[%s1331_s25 + $0x388] sm:$0xff]  ;;  %v266_v58 = vld [vmem:[%s1331_s25 + $0x390] sm:$0xff]  ;;  %v268_v59 = vld [vmem:[%s1331_s25 + $0x398] sm:$0xff] }
  0x23   : > { %189 = vst [vmem:[%s1336_s26 + $0x98] sm:$0xff] %v188_v19  ;;  %v270_v60 = vld [vmem:[%s1331_s25 + $0x3c0] sm:$0xff]  ;;  %v272_v61 = vld [vmem:[%s1331_s25 + $0x3c8] sm:$0xff]  ;;  %v274_v62 = vld [vmem:[%s1331_s25 + $0x3d0] sm:$0xff] }
  0x24   : > { %191 = vst [vmem:[%s1336_s26 + $0xa0] sm:$0xff] %v190_v20  ;;  %v276_v63 = vld [vmem:[%s1331_s25 + $0x3d8] sm:$0xff] }
  0x25   : > { %193 = vst [vmem:[%s1336_s26 + $0xa8] sm:$0xff] %v192_v21 }
  0x26   : > { %195 = vst [vmem:[%s1336_s26 + $0xb0] sm:$0xff] %v194_v22 }
  0x27   : > { %197 = vst [vmem:[%s1336_s26 + $0xb8] sm:$0xff] %v196_v23 }
  0x28   : > { %199 = vst [vmem:[%s1336_s26 + $0xc0] sm:$0xff] %v198_v24 }
  0x29   : > { %201 = vst [vmem:[%s1336_s26 + $0xc8] sm:$0xff] %v200_v25 }
  0x2a   : > { %203 = vst [vmem:[%s1336_s26 + $0xd0] sm:$0xff] %v202_v26 }
  0x2b   : > { %205 = vst [vmem:[%s1336_s26 + $0xd8] sm:$0xff] %v204_v27 }
  0x2c   : > { %207 = vst [vmem:[%s1336_s26 + $0xe0] sm:$0xff] %v206_v28 }
  0x2d   : > { %209 = vst [vmem:[%s1336_s26 + $0xe8] sm:$0xff] %v208_v29 }
  0x2e   : > { %211 = vst [vmem:[%s1336_s26 + $0xf0] sm:$0xff] %v210_v30 }
  0x2f   : > { %213 = vst [vmem:[%s1336_s26 + $0xf8] sm:$0xff] %v212_v31 }
  0x30   : > { %215 = vst [vmem:[%s1336_s26 + $0x100] sm:$0xff] %v214_v32 }
  0x31   : > { %217 = vst [vmem:[%s1336_s26 + $0x108] sm:$0xff] %v216_v33 }
  0x32   : > { %219 = vst [vmem:[%s1336_s26 + $0x110] sm:$0xff] %v218_v34 }
  0x33   : > { %221 = vst [vmem:[%s1336_s26 + $0x118] sm:$0xff] %v220_v35 }
  0x34   : > { %223 = vst [vmem:[%s1336_s26 + $0x120] sm:$0xff] %v222_v36 }
  0x35   : > { %225 = vst [vmem:[%s1336_s26 + $0x128] sm:$0xff] %v224_v37 }
  0x36   : > { %227 = vst [vmem:[%s1336_s26 + $0x130] sm:$0xff] %v226_v38 }
  0x37   : > { %229 = vst [vmem:[%s1336_s26 + $0x138] sm:$0xff] %v228_v39 }
  0x38   : > { %231 = vst [vmem:[%s1336_s26 + $0x140] sm:$0xff] %v230_v40 }
  0x39   : > { %233 = vst [vmem:[%s1336_s26 + $0x148] sm:$0xff] %v232_v41 }
  0x3a   : > { %235 = vst [vmem:[%s1336_s26 + $0x150] sm:$0xff] %v234_v42 }
  0x3b   : > { %237 = vst [vmem:[%s1336_s26 + $0x158] sm:$0xff] %v236_v43 }
  0x3c   : > { %239 = vst [vmem:[%s1336_s26 + $0x160] sm:$0xff] %v238_v44 }
  0x3d   : > { %241 = vst [vmem:[%s1336_s26 + $0x168] sm:$0xff] %v240_v45 }
  0x3e   : > { %243 = vst [vmem:[%s1336_s26 + $0x170] sm:$0xff] %v242_v46 }
  0x3f   : > { %245 = vst [vmem:[%s1336_s26 + $0x178] sm:$0xff] %v244_v47 }
  0x40   : > { %247 = vst [vmem:[%s1336_s26 + $0x180] sm:$0xff] %v246_v48 }
  0x41   : > { %249 = vst [vmem:[%s1336_s26 + $0x188] sm:$0xff] %v248_v49 }
  0x42   : > { %251 = vst [vmem:[%s1336_s26 + $0x190] sm:$0xff] %v250_v50 }
  0x43   : > { %253 = vst [vmem:[%s1336_s26 + $0x198] sm:$0xff] %v252_v51 }
  0x44   : > { %255 = vst [vmem:[%s1336_s26 + $0x1a0] sm:$0xff] %v254_v52 }
  0x45   : > { %257 = vst [vmem:[%s1336_s26 + $0x1a8] sm:$0xff] %v256_v53 }
  0x46   : > { %259 = vst [vmem:[%s1336_s26 + $0x1b0] sm:$0xff] %v258_v54 }
  0x47   : > { %261 = vst [vmem:[%s1336_s26 + $0x1b8] sm:$0xff] %v260_v55 }
  0x48   : > { %263 = vst [vmem:[%s1336_s26 + $0x1c0] sm:$0xff] %v262_v56 }
  0x49   : > { %265 = vst [vmem:[%s1336_s26 + $0x1c8] sm:$0xff] %v264_v57 }
  0x4a   : > { %267 = vst [vmem:[%s1336_s26 + $0x1d0] sm:$0xff] %v266_v58 }
  0x4b   : > { %269 = vst [vmem:[%s1336_s26 + $0x1d8] sm:$0xff] %v268_v59 }
  0x4c   : > { %271 = vst [vmem:[%s1336_s26 + $0x1e0] sm:$0xff] %v270_v60 }
  0x4d   : > { %273 = vst [vmem:[%s1336_s26 + $0x1e8] sm:$0xff] %v272_v61 }
  0x4e   : > { %275 = vst [vmem:[%s1336_s26 + $0x1f0] sm:$0xff] %v274_v62 }
  0x4f   : > { %277 = vst [vmem:[%s1336_s26 + $0x1f8] sm:$0xff] %v276_v63 }
  0x50 PF: > { %p899_p5 = scmp.ge.s32.totalorder %s1274_s14, 1  ;;  %p282_p6 = scmp.lt.s32.totalorder %s1274_s14, 3 }
  0x52   : > { %p283_p7 = pnand %p899_p5, %p282_p6 }
  0x53   : > { %s289_s27 = sand.u32 (!%p283_p7), 1, %s1266_s12   ;;  %s901_s7 = sshll.u32 (!%p283_p7), %s892_s15, 3 }
  0x54   : > { %286 = sbr.rel (%p283_p7) target bundleno = 298 (0x12a), region = 51  ;;  %s900_s28 = sshll.u32 (!%p283_p7), %s289_s27, 9 }
  0x55   : > { %s1466_s29 = scalar_lea.vmem (!%p283_p7), [#allocation2], %s900_s28  ;;  %p314_p8 = scmp.lt.s32.totalorder (!%p283_p7), %s901_s7, 15 }
  0x59   : > { %v1129_v0 = vld [vmem:[%s1466_s29 + $0x1c0] sm:$0xf]  ;;  %v1218_v2 = vld [vmem:[%s1466_s29 + $0x1c4] sm:$0xf]  ;;  %v1137_v5 = vld [vmem:[%s1466_s29 + $0x1c8] sm:$0xf] }
  0x5a   : > { %v1222_v1 = vld [vmem:[%s1466_s29 + $0x1dc] sm:$0xf0]  ;;  %v1131_v4 = vld [vmem:[%s1466_s29 + $0x1e0] sm:$0xf0]  ;;  %v1223_v6 = vld [vmem:[%s1466_s29 + $0x1e4] sm:$0xf0] }
  0x5b   : > { %v1130_v3 = vor.u32 %v1222_v1, %v1129_v0  ;;  %v1134_v7 = vor.u32 %v1218_v2, %v1131_v4  ;;  %v1138_v8 = vor.u32 %v1223_v6, %v1137_v5  ;;  %v1219_v9 = vld [vmem:[%s1466_s29 + $0x1cc] sm:$0xf]  ;;  %v1097_v11 = vld [vmem:[%s1466_s29 + $0x180] sm:$0xf]  ;;  %v1210_v14 = vld [vmem:[%s1466_s29 + $0x184] sm:$0xf] }
  0x5c   : > { %v1139_v10 = vld [vmem:[%s1466_s29 + $0x1e8] sm:$0xf0]  ;;  %v1214_v13 = vld [vmem:[%s1466_s29 + $0x19c] sm:$0xf0]  ;;  %v1099_v15 = vld [vmem:[%s1466_s29 + $0x1a0] sm:$0xf0] }
  0x5d   : > { %710 = vmatpush.bf16.msra.mxu0 %v1130_v3  ;;  %v1142_v12 = vor.u32 %v1219_v9, %v1139_v10  ;;  %723 = vmatpush.bf16.msra.mxu1 %v1134_v7  ;;  %v1098_v16 = vor.u32 %v1214_v13, %v1097_v11  ;;  %v1102_v17 = vor.u32 %v1210_v14, %v1099_v15  ;;  %v1105_v18 = vld [vmem:[%s1466_s29 + $0x188] sm:$0xf]  ;;  %v1211_v20 = vld [vmem:[%s1466_s29 + $0x18c] sm:$0xf]  ;;  %v1065_v23 = vld [vmem:[%s1466_s29 + $0x140] sm:$0xf] }
  0x5e   : > { %736 = vmatpush.bf16.msra.mxu2 %v1138_v8  ;;  %v1215_v19 = vld [vmem:[%s1466_s29 + $0x1a4] sm:$0xf0]  ;;  %v1107_v22 = vld [vmem:[%s1466_s29 + $0x1a8] sm:$0xf0]  ;;  %v1206_v24 = vld [vmem:[%s1466_s29 + $0x15c] sm:$0xf0] }
  0x5f   : > { %749 = vmatpush.bf16.msra.mxu3 %v1142_v12  ;;  %v1106_v21 = vor.u32 %v1215_v19, %v1105_v18  ;;  %v1110_v25 = vor.u32 %v1211_v20, %v1107_v22  ;;  %v1202_v26 = vld [vmem:[%s1466_s29 + $0x144] sm:$0xf]  ;;  %v1073_v28 = vld [vmem:[%s1466_s29 + $0x148] sm:$0xf]  ;;  %v1066_v29 = vor.u32 %v1206_v24, %v1065_v23  ;;  %v1203_v31 = vld [vmem:[%s1466_s29 + $0x14c] sm:$0xf] }
  0x60   : > { %v1067_v27 = vld [vmem:[%s1466_s29 + $0x160] sm:$0xf0]  ;;  %v1207_v30 = vld [vmem:[%s1466_s29 + $0x164] sm:$0xf0]  ;;  %v1075_v32 = vld [vmem:[%s1466_s29 + $0x168] sm:$0xf0] }
  0x61   : > { %711 = vmatpush.bf16.msra.mxu0 %v1098_v16  ;;  %724 = vmatpush.bf16.msra.mxu1 %v1102_v17  ;;  %v1070_v33 = vor.u32 %v1202_v26, %v1067_v27  ;;  %v1074_v34 = vor.u32 %v1207_v30, %v1073_v28  ;;  %v1033_v35 = vld [vmem:[%s1466_s29 + $0x100] sm:$0xf]  ;;  %v1194_v37 = vld [vmem:[%s1466_s29 + $0x104] sm:$0xf]  ;;  %v1078_v38 = vor.u32 %v1203_v31, %v1075_v32  ;;  %v1041_v40 = vld [vmem:[%s1466_s29 + $0x108] sm:$0xf] }
  0x62   : > { %737 = vmatpush.bf16.msra.mxu2 %v1106_v21  ;;  %v1198_v36 = vld [vmem:[%s1466_s29 + $0x11c] sm:$0xf0]  ;;  %v1035_v39 = vld [vmem:[%s1466_s29 + $0x120] sm:$0xf0]  ;;  %v1199_v41 = vld [vmem:[%s1466_s29 + $0x124] sm:$0xf0] }
  0x63   : > { %750 = vmatpush.bf16.msra.mxu3 %v1110_v25  ;;  %v1195_v42 = vld [vmem:[%s1466_s29 + $0x10c] sm:$0xf]  ;;  %v1034_v44 = vor.u32 %v1198_v36, %v1033_v35  ;;  %v1038_v45 = vor.u32 %v1194_v37, %v1035_v39  ;;  %v1042_v46 = vor.u32 %v1199_v41, %v1041_v40  ;;  %v1001_v47 = vld [vmem:[%s1466_s29 + $0xc0] sm:$0xf]  ;;  %v1186_v49 = vld [vmem:[%s1466_s29 + $0xc4] sm:$0xf] }
  0x64   : > { %v1043_v43 = vld [vmem:[%s1466_s29 + $0x128] sm:$0xf0]  ;;  %v1190_v48 = vld [vmem:[%s1466_s29 + $0xdc] sm:$0xf0]  ;;  %v1003_v51 = vld [vmem:[%s1466_s29 + $0xe0] sm:$0xf0] }
  0x65   : > { %712 = vmatpush.bf16.msra.mxu0 %v1066_v29  ;;  %725 = vmatpush.bf16.msra.mxu1 %v1070_v33  ;;  %v1046_v50 = vor.u32 %v1195_v42, %v1043_v43  ;;  %v1009_v52 = vld [vmem:[%s1466_s29 + $0xc8] sm:$0xf]  ;;  %v1187_v54 = vld [vmem:[%s1466_s29 + $0xcc] sm:$0xf]  ;;  %v1002_v56 = vor.u32 %v1190_v48, %v1001_v47  ;;  %v1006_v57 = vor.u32 %v1186_v49, %v1003_v51  ;;  %v969_v59 = vld [vmem:[%s1466_s29 + $0x80] sm:$0xf] }
  0x66   : > { %738 = vmatpush.bf16.msra.mxu2 %v1074_v34  ;;  %v1191_v53 = vld [vmem:[%s1466_s29 + $0xe4] sm:$0xf0]  ;;  %v1011_v55 = vld [vmem:[%s1466_s29 + $0xe8] sm:$0xf0]  ;;  %v1182_v60 = vld [vmem:[%s1466_s29 + $0x9c] sm:$0xf0] }
  0x67   : > { %751 = vmatpush.bf16.msra.mxu3 %v1078_v38  ;;  %v1010_v58 = vor.u32 %v1191_v53, %v1009_v52  ;;  %v1178_v61 = vld [vmem:[%s1466_s29 + $0x84] sm:$0xf]  ;;  %v1014_v62 = vor.u32 %v1187_v54, %v1011_v55  ;;  %v977_v0 = vld [vmem:[%s1466_s29 + $0x88] sm:$0xf]  ;;  %v1179_v2 = vld [vmem:[%s1466_s29 + $0x8c] sm:$0xf]  ;;  %v970_v4 = vor.u32 %v1182_v60, %v969_v59 }
  0x68   : > { %v971_v63 = vld [vmem:[%s1466_s29 + $0xa0] sm:$0xf0]  ;;  %v1183_v1 = vld [vmem:[%s1466_s29 + $0xa4] sm:$0xf0]  ;;  %v979_v3 = vld [vmem:[%s1466_s29 + $0xa8] sm:$0xf0] }
  0x69   : > { %713 = vmatpush.bf16.msra.mxu0 %v1034_v44  ;;  %726 = vmatpush.bf16.msra.mxu1 %v1038_v45  ;;  %v974_v5 = vor.u32 %v1178_v61, %v971_v63  ;;  %v978_v6 = vor.u32 %v1183_v1, %v977_v0  ;;  %v937_v7 = vld [vmem:[%s1466_s29 + $0x40] sm:$0xf]  ;;  %v1170_v9 = vld [vmem:[%s1466_s29 + $0x44] sm:$0xf]  ;;  %v982_v10 = vor.u32 %v1179_v2, %v979_v3  ;;  %v945_v12 = vld [vmem:[%s1466_s29 + $0x48] sm:$0xf] }
  0x6a   : > { %739 = vmatpush.bf16.msra.mxu2 %v1042_v46  ;;  %v1174_v8 = vld [vmem:[%s1466_s29 + $0x5c] sm:$0xf0]  ;;  %v939_v11 = vld [vmem:[%s1466_s29 + $0x60] sm:$0xf0]  ;;  %v1175_v13 = vld [vmem:[%s1466_s29 + $0x64] sm:$0xf0] }
  0x6b   : > { %752 = vmatpush.bf16.msra.mxu3 %v1046_v50  ;;  %v1171_v14 = vld [vmem:[%s1466_s29 + $0x4c] sm:$0xf]  ;;  %v938_v16 = vor.u32 %v1174_v8, %v937_v7  ;;  %v905_v17 = vld [vmem:[%s1466_s29] sm:$0xf]  ;;  %v942_v19 = vor.u32 %v1170_v9, %v939_v11  ;;  %v946_v20 = vor.u32 %v1175_v13, %v945_v12  ;;  %v1162_v21 = vld [vmem:[%s1466_s29 + $0x4] sm:$0xf] }
  0x6c   : > { %v947_v15 = vld [vmem:[%s1466_s29 + $0x68] sm:$0xf0]  ;;  %v1166_v18 = vld [vmem:[%s1466_s29 + $0x1c] sm:$0xf0]  ;;  %v907_v22 = vld [vmem:[%s1466_s29 + $0x20] sm:$0xf0] }
  0x6d   : > { %714 = vmatpush.bf16.msra.mxu0 %v1002_v56  ;;  %727 = vmatpush.bf16.msra.mxu1 %v1006_v57  ;;  %v913_v23 = vld [vmem:[%s1466_s29 + $0x8] sm:$0xf]  ;;  %v950_v24 = vor.u32 %v1171_v14, %v947_v15  ;;  %v1163_v26 = vld [vmem:[%s1466_s29 + $0xc] sm:$0xf]  ;;  %v1145_v28 = vld [vmem:[%s1466_s29 + $0x1d0] sm:$0xf]  ;;  %v906_v31 = vor.u32 %v1166_v18, %v905_v17  ;;  %v910_v35 = vor.u32 %v1162_v21, %v907_v22 }
  0x6e   : > { %740 = vmatpush.bf16.msra.mxu2 %v1010_v58  ;;  %v1167_v25 = vld [vmem:[%s1466_s29 + $0x24] sm:$0xf0]  ;;  %v915_v27 = vld [vmem:[%s1466_s29 + $0x28] sm:$0xf0]  ;;  %v1224_v29 = vld [vmem:[%s1466_s29 + $0x1ec] sm:$0xf0] }
  0x6f   : > { %753 = vmatpush.bf16.msra.mxu3 %v1014_v62  ;;  %v1220_v30 = vld [vmem:[%s1466_s29 + $0x1d4] sm:$0xf]  ;;  %v1153_v33 = vld [vmem:[%s1466_s29 + $0x1d8] sm:$0xf]  ;;  %v914_v36 = vor.u32 %v1167_v25, %v913_v23  ;;  %v1221_v37 = vld [vmem:[%s1466_s29 + $0x1dc] sm:$0xf]  ;;  %v918_v39 = vor.u32 %v1163_v26, %v915_v27  ;;  %v1146_v40 = vor.u32 %v1224_v29, %v1145_v28 }
  0x70   : > { %v1147_v32 = vld [vmem:[%s1466_s29 + $0x1f0] sm:$0xf0]  ;;  %v1225_v34 = vld [vmem:[%s1466_s29 + $0x1f4] sm:$0xf0]  ;;  %v1155_v38 = vld [vmem:[%s1466_s29 + $0x1f8] sm:$0xf0] }
  0x71   : > { %715 = vmatpush.bf16.msra.mxu0 %v970_v4  ;;  %728 = vmatpush.bf16.msra.mxu1 %v974_v5  ;;  %v1150_v41 = vor.u32 %v1220_v30, %v1147_v32  ;;  %v1154_v42 = vor.u32 %v1225_v34, %v1153_v33  ;;  %v1113_v43 = vld [vmem:[%s1466_s29 + $0x190] sm:$0xf]  ;;  %v1212_v45 = vld [vmem:[%s1466_s29 + $0x194] sm:$0xf]  ;;  %v1158_v46 = vor.u32 %v1221_v37, %v1155_v38  ;;  %v1121_v48 = vld [vmem:[%s1466_s29 + $0x198] sm:$0xf] }
  0x72   : > { %741 = vmatpush.bf16.msra.mxu2 %v978_v6  ;;  %v1216_v44 = vld [vmem:[%s1466_s29 + $0x1ac] sm:$0xf0]  ;;  %v1115_v47 = vld [vmem:[%s1466_s29 + $0x1b0] sm:$0xf0]  ;;  %v1217_v49 = vld [vmem:[%s1466_s29 + $0x1b4] sm:$0xf0] }
  0x73   : > { %754 = vmatpush.bf16.msra.mxu3 %v982_v10  ;;  %v1213_v50 = vld [vmem:[%s1466_s29 + $0x19c] sm:$0xf]  ;;  %v1551_v52 = vld [vmem:[%s1633_s0] sm:$0xf]  ;;  %v1114_v53 = vor.u32 %v1216_v44, %v1113_v43  ;;  %v1118_v54 = vor.u32 %v1212_v45, %v1115_v47  ;;  %v1122_v55 = vor.u32 %v1217_v49, %v1121_v48  ;;  %v1081_v56 = vld [vmem:[%s1466_s29 + $0x150] sm:$0xf] }
  0x74   : > { %v1123_v51 = vld [vmem:[%s1466_s29 + $0x1b8] sm:$0xf0]  ;;  %v1208_v57 = vld [vmem:[%s1466_s29 + $0x16c] sm:$0xf0]  ;;  %v1204_v58 = vld [vmem:[%s1466_s29 + $0x154] sm:$0xf] }
  0x75   : > { %716 = vmatpush.bf16.msra.mxu0 %v938_v16  ;;  %729 = vmatpush.bf16.msra.mxu1 %v942_v19  ;;  %v1126_v59 = vor.u32 %v1213_v50, %v1123_v51  ;;  %v1083_v60 = vld [vmem:[%s1466_s29 + $0x170] sm:$0xf0]  ;;  %v1089_v61 = vld [vmem:[%s1466_s29 + $0x158] sm:$0xf]  ;;  %v1205_v63 = vld [vmem:[%s1466_s29 + $0x15c] sm:$0xf]  ;;  %v1082_v1 = vor.u32 %v1208_v57, %v1081_v56 }
  0x76   : > { %742 = vmatpush.bf16.msra.mxu2 %v946_v20  ;;  %v1209_v62 = vld [vmem:[%s1466_s29 + $0x174] sm:$0xf0]  ;;  %v1091_v0 = vld [vmem:[%s1466_s29 + $0x178] sm:$0xf0]  ;;  %v1086_v2 = vor.u32 %v1204_v58, %v1083_v60  ;;  %v1049_v4 = vld [vmem:[%s1466_s29 + $0x110] sm:$0xf] }
  0x77   : > { %755 = vmatpush.bf16.msra.mxu3 %v950_v24  ;;  %v1090_v3 = vor.u32 %v1209_v62, %v1089_v61  ;;  %v1200_v5 = vld [vmem:[%s1466_s29 + $0x12c] sm:$0xf0]  ;;  %v1196_v6 = vld [vmem:[%s1466_s29 + $0x114] sm:$0xf]  ;;  %v1094_v7 = vor.u32 %v1205_v63, %v1091_v0  ;;  %v1057_v9 = vld [vmem:[%s1466_s29 + $0x118] sm:$0xf] }
  0x78   : > { %v1051_v8 = vld [vmem:[%s1466_s29 + $0x130] sm:$0xf0]  ;;  %v1201_v10 = vld [vmem:[%s1466_s29 + $0x134] sm:$0xf0]  ;;  %v1197_v11 = vld [vmem:[%s1466_s29 + $0x11c] sm:$0xf]  ;;  %v1050_v13 = vor.u32 %v1200_v5, %v1049_v4 }
  0x79   : > { %717 = vmatpush.bf16.msra.mxu0 %v906_v31  ;;  %730 = vmatpush.bf16.msra.mxu1 %v910_v35  ;;  %v1059_v12 = vld [vmem:[%s1466_s29 + $0x138] sm:$0xf0]  ;;  %v1017_v14 = vld [vmem:[%s1466_s29 + $0xd0] sm:$0xf]  ;;  %v1054_v15 = vor.u32 %v1196_v6, %v1051_v8  ;;  %v1058_v16 = vor.u32 %v1201_v10, %v1057_v9  ;;  %v1188_v18 = vld [vmem:[%s1466_s29 + $0xd4] sm:$0xf] }
  0x7a   : > { %743 = vmatpush.bf16.msra.mxu2 %v914_v36  ;;  %v1192_v17 = vld [vmem:[%s1466_s29 + $0xec] sm:$0xf0]  ;;  %v1019_v19 = vld [vmem:[%s1466_s29 + $0xf0] sm:$0xf0]  ;;  %v1062_v20 = vor.u32 %v1197_v11, %v1059_v12  ;;  %v1025_v21 = vld [vmem:[%s1466_s29 + $0xd8] sm:$0xf] }
  0x7b   : > { %756 = vmatpush.bf16.msra.mxu3 %v918_v39  ;;  %v1193_v22 = vld [vmem:[%s1466_s29 + $0xf4] sm:$0xf0]  ;;  %v384_v23 = vld [vmem:[%s1635_s2] sm:$0xff]  ;;  %v1189_v24 = vld [vmem:[%s1466_s29 + $0xdc] sm:$0xf]  ;;  %v1276_v26 = vmov 0   ;;  %v1018_v27 = vor.u32 %v1192_v17, %v1017_v14  ;;  %v1022_v28 = vor.u32 %v1188_v18, %v1019_v19 }
  0x7c   : > { %718 = vmatmul.bf16.vlgmr.msra.gmra.mxu0 %v1551_v52  ;;  %731 = vmatmul.bf16.vlgmr.msra.gmra.mxu1 %v1551_v52  ;;  %v1027_v25 = vld [vmem:[%s1466_s29 + $0xf8] sm:$0xf0]  ;;  %v1026_v29 = vor.u32 %v1193_v22, %v1025_v21  ;;  %v985_v30 = vld [vmem:[%s1466_s29 + $0x90] sm:$0xf]  ;;  %v1180_v32 = vld [vmem:[%s1466_s29 + $0x94] sm:$0xf] }
  0x7d   : > { %762 = vmatpush.bf16.msrb.mxu0 %v1146_v40  ;;  %775 = vmatpush.bf16.msrb.mxu1 %v1150_v41  ;;  %v1184_v31 = vld [vmem:[%s1466_s29 + $0xac] sm:$0xf0]  ;;  %v1030_v33 = vor.u32 %v1189_v24, %v1027_v25  ;;  %v987_v34 = vld [vmem:[%s1466_s29 + $0xb0] sm:$0xf0]  ;;  %v993_v35 = vld [vmem:[%s1466_s29 + $0x98] sm:$0xf] }
  0x7e   : > { %788 = vmatpush.bf16.msrb.mxu2 %v1154_v42  ;;  %757 = vmatmul.bf16.vlgmr.msra.gmra.mxu3 %v1551_v52  ;;  %v1185_v36 = vld [vmem:[%s1466_s29 + $0xb4] sm:$0xf0]  ;;  %v1181_v37 = vld [vmem:[%s1466_s29 + $0x9c] sm:$0xf]  ;;  %v986_v39 = vor.u32 %v1184_v31, %v985_v30  ;;  %v990_v40 = vor.u32 %v1180_v32, %v987_v34  ;;  %v953_v42 = vld [vmem:[%s1466_s29 + $0x50] sm:$0xf] }
  0x7f   : > { %801 = vmatpush.bf16.msrb.mxu3 %v1158_v46  ;;  %744 = vmatmul.bf16.vlgmr.msra.gmra.mxu2 %v1551_v52  ;;  %v995_v38 = vld [vmem:[%s1466_s29 + $0xb8] sm:$0xf0]  ;;  %v994_v41 = vor.u32 %v1185_v36, %v993_v35  ;;  %v1176_v43 = vld [vmem:[%s1466_s29 + $0x6c] sm:$0xf0]  ;;  %v1172_v44 = vld [vmem:[%s1466_s29 + $0x54] sm:$0xf] }
  0x80   : > { %1251 = vset.pattern.permute.xlu0 %v1276_v26  ;;  %v998_v45 = vor.u32 %v1181_v37, %v995_v38  ;;  %v955_v46 = vld [vmem:[%s1466_s29 + $0x70] sm:$0xf0]  ;;  %v961_v47 = vld [vmem:[%s1466_s29 + $0x58] sm:$0xf]  ;;  %v1173_v49 = vld [vmem:[%s1466_s29 + $0x5c] sm:$0xf]  ;;  %v954_v51 = vor.u32 %v1176_v43, %v953_v42 }
  0x81   : > { %763 = vmatpush.bf16.msrb.mxu0 %v1114_v53  ;;  %776 = vmatpush.bf16.msrb.mxu1 %v1118_v54  ;;  %v1177_v48 = vld [vmem:[%s1466_s29 + $0x74] sm:$0xf0]  ;;  %v963_v50 = vld [vmem:[%s1466_s29 + $0x78] sm:$0xf0]  ;;  %v958_v53 = vor.u32 %v1172_v44, %v955_v46  ;;  %v1168_v56 = vld [vmem:[%s1466_s29 + $0x2c] sm:$0xf0] }
  0x82   : > { %789 = vmatpush.bf16.msrb.mxu2 %v1122_v55  ;;  %387 = vperm.xlu0 %1251, %v384_v23   ;;  %v962_v54 = vor.u32 %v1177_v48, %v961_v47  ;;  %v921_v55 = vld [vmem:[%s1466_s29 + $0x10] sm:$0xf]  ;;  %v1164_v57 = vld [vmem:[%s1466_s29 + $0x14] sm:$0xf]  ;;  %v966_v58 = vor.u32 %v1173_v49, %v963_v50  ;;  %v929_v60 = vld [vmem:[%s1466_s29 + $0x18] sm:$0xf] }
  0x83   : > { %802 = vmatpush.bf16.msrb.mxu3 %v1126_v59  ;;  %v923_v59 = vld [vmem:[%s1466_s29 + $0x30] sm:$0xf0]  ;;  %v1169_v61 = vld [vmem:[%s1466_s29 + $0x34] sm:$0xf0]  ;;  %v1165_v62 = vld [vmem:[%s1466_s29 + $0x1c] sm:$0xf]  ;;  %v922_v0 = vor.u32 %v1168_v56, %v921_v55 }
  0x84   : > { %v931_v63 = vld [vmem:[%s1466_s29 + $0x38] sm:$0xf0]  ;;  %s1641_s7 = smov (!%p314_p8, %s901_s7), 15 }
  0x85   : > { %764 = vmatpush.bf16.msrb.mxu0 %v1082_v1  ;;  %777 = vmatpush.bf16.msrb.mxu1 %v1086_v2  ;;  %v926_v1 = vor.u32 %v1164_v57, %v923_v59  ;;  %v930_v2 = vor.u32 %v1169_v61, %v929_v60  ;;  %s902_s8 = sshll.u32 %s1641_s7, 2 }
  0x86   : > { %790 = vmatpush.bf16.msrb.mxu2 %v1090_v3  ;;  %v934_v3 = vor.u32 %v1165_v62, %v931_v63  ;;  %s1617_s11 = scalar_lea.vmem %s1636_s3, %s902_s8 }
  0x87   : > { %803 = vmatpush.bf16.msrb.mxu3 %v1094_v7 }
  0x89   : > { %765 = vmatpush.bf16.msrb.mxu0 %v1050_v13  ;;  %778 = vmatpush.bf16.msrb.mxu1 %v1054_v15 }
  0x8a   : > { %791 = vmatpush.bf16.msrb.mxu2 %v1058_v16 }
  0x8b   : > { %804 = vmatpush.bf16.msrb.mxu3 %v1062_v20 }
  0x8d   : > { %766 = vmatpush.bf16.msrb.mxu0 %v1018_v27  ;;  %779 = vmatpush.bf16.msrb.mxu1 %v1022_v28 }
  0x8e   : > { %792 = vmatpush.bf16.msrb.mxu2 %v1026_v29 }
  0x8f   : > { %805 = vmatpush.bf16.msrb.mxu3 %v1030_v33 }
  0x91   : > { %767 = vmatpush.bf16.msrb.mxu0 %v986_v39  ;;  %780 = vmatpush.bf16.msrb.mxu1 %v990_v40 }
  0x92   : > { %793 = vmatpush.bf16.msrb.mxu2 %v994_v41 }
  0x93   : > { %806 = vmatpush.bf16.msrb.mxu3 %v998_v45 }
  0x95   : > { %768 = vmatpush.bf16.msrb.mxu0 %v954_v51  ;;  %781 = vmatpush.bf16.msrb.mxu1 %v958_v53 }
  0x96   : > { %794 = vmatpush.bf16.msrb.mxu2 %v962_v54 }
  0x97   : > { %807 = vmatpush.bf16.msrb.mxu3 %v966_v58 }
  0x99   : > { %769 = vmatpush.bf16.msrb.mxu0 %v922_v0  ;;  %782 = vmatpush.bf16.msrb.mxu1 %v926_v1 }
  0x9a   : > { %795 = vmatpush.bf16.msrb.mxu2 %v930_v2 }
  0x9b   : > { %808 = vmatpush.bf16.msrb.mxu3 %v934_v3 }
  0x9c   : > { %770 = vmatmul.bf16.vlgmr.msrb.gmra.mxu0 %v1551_v52  ;;  %783 = vmatmul.bf16.vlgmr.msrb.gmra.mxu1 %v1551_v52 }
  0x9d   : > { %796 = vmatmul.bf16.vlgmr.msrb.gmra.mxu2 %v1551_v52 }
  0x9e   : > { %809 = vmatmul.bf16.vlgmr.msrb.gmra.mxu3 %v1551_v52 }
  0xf4   : > { %v388_v4 = vpop.permute.xlu0 %387 }
  0xf9   : > { %v719_v5 = vpop.f32.mrf.mxu0  ;;  %v732_v6 = vpop.f32.mrf.mxu1 }
  0xfa   : > { %v720_v7 = vadd.f32 %v719_v5, %v388_v4  ;;  %v733_v8 = vadd.f32 %v732_v6, %v388_v4 }
  0xfc   : > { %v814_v9 = vmax.f32 %v720_v7, 0.0  ;;  %v815_v10 = vmax.f32 %v733_v8, 0.0 }
  0xfe   : > { %v822_v13 = vpack.c.bf16 %v815_v10, %v814_v9 }
 0x100   : > { %826 = vst [vmem:[%s1617_s11] sm:$0xff] %v822_v13 }
 0x101   : > { %v758_v52 = vpop.f32.mrf.mxu3  ;;  %v721_v16 = vpop.f32.mrf.mxu0 }
 0x102   : > { %v745_v11 = vpop.f32.mrf.mxu2  ;;  %v759_v14 = vadd.f32 %v758_v52, %v388_v4  ;;  %v734_v18 = vpop.f32.mrf.mxu1 }
 0x103   : > { %v746_v12 = vadd.f32 %v745_v11, %v388_v4 }
 0x104   : > { %v817_v17 = vmax.f32 %v759_v14, 0.0 }
 0x105   : > { %v816_v15 = vmax.f32 %v746_v12, 0.0 }
 0x107   : > { %v823_v19 = vpack.c.bf16 %v817_v17, %v816_v15 }
 0x109   : > { %827 = vst [vmem:[%s1617_s11 + $0x8] sm:$0xff] %v823_v19  ;;  %v760_v21 = vpop.f32.mrf.mxu3 }
 0x10a   : > { %v747_v20 = vpop.f32.mrf.mxu2 }
 0x119   : > { %v771_v22 = vpop.f32.mrf.mxu0  ;;  %v784_v24 = vpop.f32.mrf.mxu1 }
 0x11a   : > { %v772_v23 = vadd.f32 %v771_v22, %v388_v4  ;;  %v785_v25 = vadd.f32 %v784_v24, %v388_v4 }
 0x11c   : > { %v818_v26 = vmax.f32 %v772_v23, 0.0  ;;  %v819_v27 = vmax.f32 %v785_v25, 0.0 }
 0x11e   : > { %v824_v28 = vpack.c.bf16 %v819_v27, %v818_v26 }
 0x120   : > { %v797_v29 = vpop.f32.mrf.mxu2  ;;  %828 = vst [vmem:[%s1617_s11 + $0x10] sm:$0xff] %v824_v28 }
 0x121   : > { %v798_v30 = vadd.f32 %v797_v29, %v388_v4  ;;  %v810_v31 = vpop.f32.mrf.mxu3  ;;  %v773_v32 = vpop.f32.mrf.mxu0 }
 0x122   : > { %v811_v33 = vadd.f32 %v810_v31, %v388_v4  ;;  %v786_v34 = vpop.f32.mrf.mxu1 }
 0x123   : > { %v820_v35 = vmax.f32 %v798_v30, 0.0 }
 0x124   : > { %v821_v36 = vmax.f32 %v811_v33, 0.0 }
 0x126   : > { %v825_v37 = vpack.c.bf16 %v821_v36, %v820_v35 }
 0x128   : > { %829 = vst [vmem:[%s1617_s11 + $0x18] sm:$0xff] %v825_v37  ;;  %v799_v38 = vpop.f32.mrf.mxu2 }
 0x129   : > { %v812_v39 = vpop.f32.mrf.mxu3 }
 0x12a PF: > { %p10_p9 = scmp.ge.s32.totalorder %s1314_s16, 4   ;;  %s1637_s12 = smov %s1270_s13 }
 0x12b   : > { %s1638_s13 = smov %s1323_s19  ;;  %s1639_s14 = smov %s1314_s16 }
 0x12c   :  { %12 = sbr.rel (!%p10_p9) target bundleno = 2 (0x2), region = 90 }

// kernel: discriminator_forward.8
= control target key start
LH: loop header
LB: loop body
LE: loop exit
PB: predicated region body
PF: predicated region fallthrough
CT: control target
= control target key end

     0   :  { %s691_s12 = smov 0   ;;  %s693_s13 = smov 0   ;;  %s816_s0 = inlined_call_operand.vmem [shape: bf16[16,128], index: 0, kind: input, shape index: {}]   ;;  %s817_s1 = inlined_call_operand.vmem [shape: bf16[128,512], index: 1, kind: input, shape index: {}]   ;;  %s818_s2 = inlined_call_operand.vmem [shape: f32[16,1], index: 2, kind: input, shape index: {}]   ;;  %s819_s3 = inlined_call_operand.vmem [shape: bf16[16,512], index: 3, kind: output, shape index: {}]  }
   0x1   :  { %s695_s14 = smov 0  }
   0x2 LB: > { %s518_s15 = sadd.s32 4294967295, %s668_s14   ;;  %s708_s16 = sadd.s32 1, %s668_s14   ;;  %s668_s14 = sphi %s695_s14, %s823_s14   ;;  %s664_s13 = sphi %s693_s13, %s822_s13   ;;  %s660_s12 = sphi %s691_s12, %s821_s12  }
   0x3   : > { %s38_s17 = ssub.s32 %s668_s14, %s708_s16  ;;  %s41_s18 = sadd.s32 1, %s664_s13 }
   0x4   : > { %p39_p0 = scmp.eq.s32.totalorder %s38_s17, 0  ;;  %p48_p1 = scmp.ne.s32.totalorder %s664_s13, %s660_s12 }
   0x5   : > { %p49_p2 = scmp.eq.s32.totalorder %s668_s14, 0  ;;  %p99_p3 = scmp.eq.s32.totalorder %s518_s15, 1 }
   0x6   : > { %s719_s19 = scalar_select %p39_p0, %s664_s13, %s41_s18  }
   0x7   : > { %p50_p4 = por %p49_p2, %p48_p1  ;;  %p721_p5 = por %p99_p3, %p48_p1 }
   0x8   : > { %p521_p6 = scmp.ge.s32.totalorder %s668_s14, 2 }
   0xa   : > { %127 = sbr.rel (%p521_p6) target bundleno = 35 (0x23), region = 24 }
   0xf   : > { %130 = sbr.rel (!%p50_p4) target bundleno = 35 (0x23), region = 28  ;;  %s132_s21 = sand.u32 (%p50_p4), 1, %s664_s13  }
  0x10   : > { %s601_s22 = sshll.u32 (%p50_p4), %s668_s14, 3  ;;  %s522_s23 = sshll.u32 (%p50_p4), %s132_s21, 7 }
  0x11   : > { %s731_s26 = scalar_lea.vmem (%p50_p4), %s817_s1, %s601_s22  ;;  %s134_s27 = scalar_lea.vmem (%p50_p4), [#allocation2], %s522_s23 }
  0x12   : > { %v196_v0 = vld [vmem:[%s731_s26] sm:$0xff] (%p50_p4)  ;;  %v198_v1 = vld [vmem:[%s731_s26 + $0x10] sm:$0xff] (%p50_p4) }
  0x13   : > { %v200_v2 = vld [vmem:[%s731_s26 + $0x20] sm:$0xff] (%p50_p4)  ;;  %197 = vst [vmem:[%s134_s27] sm:$0xff] (%p50_p4), %v196_v0  ;;  %v202_v3 = vld [vmem:[%s731_s26 + $0x30] sm:$0xff] (%p50_p4) }
  0x14   : > { %199 = vst [vmem:[%s134_s27 + $0x8] sm:$0xff] %v198_v1  ;;  %v204_v4 = vld [vmem:[%s731_s26 + $0x40] sm:$0xff]  ;;  %v206_v5 = vld [vmem:[%s731_s26 + $0x50] sm:$0xff] }
  0x15   : > { %201 = vst [vmem:[%s134_s27 + $0x10] sm:$0xff] %v200_v2  ;;  %v208_v6 = vld [vmem:[%s731_s26 + $0x60] sm:$0xff]  ;;  %v210_v7 = vld [vmem:[%s731_s26 + $0x70] sm:$0xff] }
  0x16   : > { %203 = vst [vmem:[%s134_s27 + $0x18] sm:$0xff] %v202_v3  ;;  %v212_v8 = vld [vmem:[%s731_s26 + $0x80] sm:$0xff]  ;;  %v214_v9 = vld [vmem:[%s731_s26 + $0x90] sm:$0xff] }
  0x17   : > { %205 = vst [vmem:[%s134_s27 + $0x20] sm:$0xff] %v204_v4  ;;  %v216_v10 = vld [vmem:[%s731_s26 + $0xa0] sm:$0xff]  ;;  %v218_v11 = vld [vmem:[%s731_s26 + $0xb0] sm:$0xff] }
  0x18   : > { %207 = vst [vmem:[%s134_s27 + $0x28] sm:$0xff] %v206_v5  ;;  %v220_v12 = vld [vmem:[%s731_s26 + $0xc0] sm:$0xff]  ;;  %v222_v13 = vld [vmem:[%s731_s26 + $0xd0] sm:$0xff] }
  0x19   : > { %209 = vst [vmem:[%s134_s27 + $0x30] sm:$0xff] %v208_v6  ;;  %v224_v14 = vld [vmem:[%s731_s26 + $0xe0] sm:$0xff]  ;;  %v226_v15 = vld [vmem:[%s731_s26 + $0xf0] sm:$0xff] }
  0x1a   : > { %211 = vst [vmem:[%s134_s27 + $0x38] sm:$0xff] %v210_v7 }
  0x1b   : > { %213 = vst [vmem:[%s134_s27 + $0x40] sm:$0xff] %v212_v8 }
  0x1c   : > { %215 = vst [vmem:[%s134_s27 + $0x48] sm:$0xff] %v214_v9 }
  0x1d   : > { %217 = vst [vmem:[%s134_s27 + $0x50] sm:$0xff] %v216_v10 }
  0x1e   : > { %219 = vst [vmem:[%s134_s27 + $0x58] sm:$0xff] %v218_v11 }
  0x1f   : > { %221 = vst [vmem:[%s134_s27 + $0x60] sm:$0xff] %v220_v12 }
  0x20   : > { %223 = vst [vmem:[%s134_s27 + $0x68] sm:$0xff] %v222_v13 }
  0x21   : > { %225 = vst [vmem:[%s134_s27 + $0x70] sm:$0xff] %v224_v14 }
  0x22   : > { %227 = vst [vmem:[%s134_s27 + $0x78] sm:$0xff] %v226_v15 }
  0x23 PF: > { %p525_p7 = scmp.ge.s32.totalorder %s668_s14, 1  ;;  %p232_p8 = scmp.lt.s32.totalorder %s668_s14, 3 }
  0x25   : > { %p233_p9 = pnand %p525_p7, %p232_p8 }
  0x26   : > { %s239_s28 = sand.u32 (!%p233_p9), 1, %s660_s12  }
  0x27   : > { %236 = sbr.rel (%p233_p9) target bundleno = 228 (0xe4), region = 66  ;;  %s526_s29 = sshll.u32 (!%p233_p9), %s239_s28, 7 }
  0x28   : > { %s754_s30 = scalar_lea.vmem (!%p233_p9), [#allocation2], %s526_s29  ;;  %s527_s10 = sshll.u32 (!%p233_p9), %s239_s28, 4 }
  0x29   : > { %s260_s11 = scalar_lea.vmem (!%p233_p9), [#allocation3], %s527_s10 }
  0x2c   : > { %v590_v16 = vld [vmem:[%s754_s30 + $0x70] sm:$0xf]  ;;  %v618_v17 = vld [vmem:[%s754_s30 + $0x74] sm:$0xf0]  ;;  %v617_v18 = vld [vmem:[%s754_s30 + $0x74] sm:$0xf] }
  0x2d   : > { %v591_v19 = vor.u32 %v618_v17, %v590_v16  ;;  %v592_v20 = vld [vmem:[%s754_s30 + $0x78] sm:$0xf0]  ;;  %v582_v21 = vld [vmem:[%s754_s30 + $0x60] sm:$0xf]  ;;  %v616_v22 = vld [vmem:[%s754_s30 + $0x64] sm:$0xf0] }
  0x2e   : > { %v595_v23 = vor.u32 %v617_v18, %v592_v20  ;;  %v615_v24 = vld [vmem:[%s754_s30 + $0x64] sm:$0xf]  ;;  %v584_v25 = vld [vmem:[%s754_s30 + $0x68] sm:$0xf0]  ;;  %v583_v26 = vor.u32 %v616_v22, %v582_v21  ;;  %v574_v28 = vld [vmem:[%s754_s30 + $0x50] sm:$0xf] }
  0x2f   : > { %379 = vmatpush.bf16.msra.mxu0 %v591_v19  ;;  %v587_v27 = vor.u32 %v615_v24, %v584_v25  ;;  %v614_v29 = vld [vmem:[%s754_s30 + $0x54] sm:$0xf0]  ;;  %v613_v30 = vld [vmem:[%s754_s30 + $0x54] sm:$0xf]  ;;  %v576_v31 = vld [vmem:[%s754_s30 + $0x58] sm:$0xf0] }
  0x30   : > { %393 = vmatpush.bf16.msra.mxu1 %v595_v23  ;;  %v575_v32 = vor.u32 %v614_v29, %v574_v28  ;;  %v579_v33 = vor.u32 %v613_v30, %v576_v31  ;;  %v566_v34 = vld [vmem:[%s754_s30 + $0x40] sm:$0xf]  ;;  %v612_v35 = vld [vmem:[%s754_s30 + $0x44] sm:$0xf0]  ;;  %v611_v36 = vld [vmem:[%s754_s30 + $0x44] sm:$0xf] }
  0x31   : > { %v568_v37 = vld [vmem:[%s754_s30 + $0x48] sm:$0xf0]  ;;  %v567_v38 = vor.u32 %v612_v35, %v566_v34  ;;  %v670_v39 = vmov 0   ;;  %v281_v40 = vld [vmem:[%s818_s2] sm:$0xff]  ;;  %v558_v42 = vld [vmem:[%s754_s30 + $0x30] sm:$0xf] }
  0x32   : > { %645 = vset.pattern.permute.xlu0 %v670_v39  ;;  %v571_v41 = vor.u32 %v611_v36, %v568_v37  ;;  %v610_v43 = vld [vmem:[%s754_s30 + $0x34] sm:$0xf0]  ;;  %v609_v44 = vld [vmem:[%s754_s30 + $0x34] sm:$0xf]  ;;  %v560_v45 = vld [vmem:[%s754_s30 + $0x38] sm:$0xf0] }
  0x33   : > { %380 = vmatpush.bf16.msra.mxu0 %v583_v26  ;;  %285 = vperm.xlu0 %645, %v281_v40   ;;  %v559_v46 = vor.u32 %v610_v43, %v558_v42  ;;  %v563_v47 = vor.u32 %v609_v44, %v560_v45  ;;  %v550_v48 = vld [vmem:[%s754_s30 + $0x20] sm:$0xf]  ;;  %v608_v49 = vld [vmem:[%s754_s30 + $0x24] sm:$0xf0]  ;;  %v607_v50 = vld [vmem:[%s754_s30 + $0x24] sm:$0xf] }
  0x34   : > { %394 = vmatpush.bf16.msra.mxu1 %v587_v27  ;;  %v552_v51 = vld [vmem:[%s754_s30 + $0x28] sm:$0xf0]  ;;  %v551_v53 = vor.u32 %v608_v49, %v550_v48  ;;  %v542_v55 = vld [vmem:[%s754_s30 + $0x10] sm:$0xf]  ;;  %v606_v56 = vld [vmem:[%s754_s30 + $0x14] sm:$0xf0] }
  0x35   : > { %v282_v52 = vld [vmem:[%s818_s2 + $0x8] sm:$0xff]  ;;  %v555_v54 = vor.u32 %v607_v50, %v552_v51  ;;  %v605_v57 = vld [vmem:[%s754_s30 + $0x14] sm:$0xf]  ;;  %v544_v58 = vld [vmem:[%s754_s30 + $0x18] sm:$0xf0]  ;;  %v543_v59 = vor.u32 %v606_v56, %v542_v55  ;;  %s619_s12 = sshll.u32 (%p721_p5), %s518_s15, 3 }
  0x36   : > { %v547_v60 = vor.u32 %v605_v57, %v544_v58  ;;  %v534_v61 = vld [vmem:[%s754_s30] sm:$0xf]  ;;  %v604_v62 = vld [vmem:[%s754_s30 + $0x4] sm:$0xf0]  ;;  %v603_v63 = vld [vmem:[%s754_s30 + $0x4] sm:$0xf]  ;;  %s424_s21 = scalar_lea.vmem (%p721_p5), %s819_s3, %s619_s12 }
  0x37   : > { %381 = vmatpush.bf16.msra.mxu0 %v575_v32  ;;  %v536_v0 = vld [vmem:[%s754_s30 + $0x8] sm:$0xf0]  ;;  %v535_v1 = vor.u32 %v604_v62, %v534_v61  ;;  %v602_v3 = vld [vmem:[%s816_s0] sm:$0xff] }
  0x38   : > { %395 = vmatpush.bf16.msra.mxu1 %v579_v33  ;;  %v539_v2 = vor.u32 %v603_v63, %v536_v0 }
  0x3b   : > { %382 = vmatpush.bf16.msra.mxu0 %v567_v38  ;;  %290 = vperm.xlu0 %645, %v282_v52  }
  0x3c   : > { %396 = vmatpush.bf16.msra.mxu1 %v571_v41 }
  0x3f   : > { %383 = vmatpush.bf16.msra.mxu0 %v559_v46 }
  0x40   : > { %397 = vmatpush.bf16.msra.mxu1 %v563_v47 }
  0x43   : > { %384 = vmatpush.bf16.msra.mxu0 %v551_v53 }
  0x44   : > { %398 = vmatpush.bf16.msra.mxu1 %v555_v54 }
  0x47   : > { %385 = vmatpush.bf16.msra.mxu0 %v543_v59 }
  0x48   : > { %399 = vmatpush.bf16.msra.mxu1 %v547_v60 }
  0x4b   : > { %386 = vmatpush.bf16.msra.mxu0 %v535_v1 }
  0x4c   : > { %400 = vmatpush.bf16.msra.mxu1 %v539_v2 }
  0x4e   : > { %387 = vmatmul.bf16.vlgmr.msra.gmra.mxu0 %v602_v3 }
  0x4f   : > { %401 = vmatmul.bf16.vlgmr.msra.gmra.mxu1 %v602_v3 }
  0xa5   : > { %v286_v4 = vpop.permute.xlu0 %285 }
  0xad   : > { %v291_v12 = vpop.permute.xlu0 %290 }
  0xcb   : > { %v388_v5 = vpop.f32.mrf.mxu0 }
  0xcc   : > { %v389_v6 = vadd.f32 %v388_v5, %v286_v4  ;;  %v402_v7 = vpop.f32.mrf.mxu1 }
  0xcd   : > { %v403_v8 = vadd.f32 %v402_v7, %v286_v4 }
  0xce   : > { %v407_v9 = vmax.f32 %v389_v6, 0.0 }
  0xcf   : > { %v408_v10 = vmax.f32 %v403_v8, 0.0 }
  0xd1   : > { %v411_v11 = vpack.c.bf16 %v408_v10, %v407_v9 }
  0xd3   : > { %413 = vst [vmem:[%s260_s11] sm:$0xff] %v411_v11  ;;  %v390_v13 = vpop.f32.mrf.mxu0 }
  0xd4   : > { %v391_v14 = vadd.f32 %v390_v13, %v291_v12  ;;  %v404_v15 = vpop.f32.mrf.mxu1 }
  0xd5   : > { %v405_v16 = vadd.f32 %v404_v15, %v291_v12 }
  0xd6   : > { %v409_v17 = vmax.f32 %v391_v14, 0.0 }
  0xd7   : > { %v410_v18 = vmax.f32 %v405_v16, 0.0  ;;  %421 = sbr.rel (!%p721_p5) target bundleno = 228 (0xe4), region = 74 }
  0xd9   : > { %v412_v19 = vpack.c.bf16 %v410_v18, %v409_v17 }
  0xda   : > { %v455_v20 = vld [vmem:[%s260_s11] sm:$0xff] (%p721_p5) }
  0xdb   : > { %414 = vst [vmem:[%s260_s11 + $0x8] sm:$0xff] %v412_v19 }
  0xdc   : > { %456 = vst [vmem:[%s424_s21] sm:$0xff] %v455_v20 }
  0xe2   : > { %v457_v21 = vld [vmem:[%s260_s11 + $0x8] sm:$0xff] }
  0xe3   : > { %458 = vst [vmem:[%s424_s21 + $0x10] sm:$0xff] %v457_v21 }
  0xe4 PF: > { %p10_p10 = scmp.ge.s32.totalorder %s708_s16, 4   ;;  %s821_s12 = smov %s664_s13 }
  0xe5   : > { %s822_s13 = smov %s719_s19  ;;  %s823_s14 = smov %s708_s16 }
  0xe6   :  { %12 = sbr.rel (!%p10_p10) target bundleno = 2 (0x2), region = 143 }

// kernel: discriminator_forward.9
= control target key start
LH: loop header
LB: loop body
LE: loop exit
PB: predicated region body
PF: predicated region fallthrough
CT: control target
= control target key end

     0   :  { %v374_v4 = vmov 0   ;;  %s485_s1 = inlined_call_operand.vmem [shape: bf16[256,128], index: 1, kind: input, shape index: {}]   ;;  %s486_s2 = inlined_call_operand.vmem [shape: f32[32,1], index: 2, kind: input, shape index: {}]   ;;  %s487_s0 = inlined_call_operand.vmem [shape: bf16[32,256], index: 0, kind: input, shape index: {}]   ;;  %s488_s3 = inlined_call_operand.vmem [shape: bf16[32,128], index: 3, kind: output, shape index: {}]  }
   0x1   :  { %v335_v0 = vld [vmem:[%s485_s1 + $0x38] sm:$0xff]  ;;  %v334_v2 = vld [vmem:[%s485_s1 + $0x30] sm:$0xff]  ;;  %373 = vset.pattern.permute.xlu1 %v374_v4  ;;  %372 = vset.pattern.permute.xlu0 %v374_v4  ;;  %v333_v5 = vld [vmem:[%s485_s1 + $0x28] sm:$0xff] }
   0x2   :  { %v343_v1 = vld [vmem:[%s485_s1 + $0x78] sm:$0xff]  ;;  %190 = vmatpush.bf16.msra.mxu0 %v335_v0  ;;  %355 = vmatpush.bf16.msra.mxu2 %v335_v0  ;;  %v342_v3 = vld [vmem:[%s485_s1 + $0x70] sm:$0xff]  ;;  %v341_v6 = vld [vmem:[%s485_s1 + $0x68] sm:$0xff] }
   0x3   :  { %209 = vmatpush.bf16.msra.mxu1 %v343_v1  ;;  %363 = vmatpush.bf16.msra.mxu3 %v343_v1  ;;  %v52_v7 = vld [vmem:[%s486_s2 + $0x10] sm:$0xff]  ;;  %v50_v8 = vld [vmem:[%s486_s2] sm:$0xff]  ;;  %v331_v11 = vld [vmem:[%s485_s1 + $0x18] sm:$0xff] }
   0x4   :  { %66 = vperm.xlu1 %373, %v52_v7   ;;  %56 = vperm.xlu0 %372, %v50_v8   ;;  %v332_v9 = vld [vmem:[%s485_s1 + $0x20] sm:$0xff]  ;;  %v53_v12 = vld [vmem:[%s486_s2 + $0x18] sm:$0xff]  ;;  %v51_v13 = vld [vmem:[%s486_s2 + $0x8] sm:$0xff] }
   0x5   :  { %v340_v10 = vld [vmem:[%s485_s1 + $0x60] sm:$0xff]  ;;  %v339_v14 = vld [vmem:[%s485_s1 + $0x58] sm:$0xff]  ;;  %v330_v15 = vld [vmem:[%s485_s1 + $0x10] sm:$0xff] }
   0x6   :  { %191 = vmatpush.bf16.msra.mxu0 %v334_v2  ;;  %356 = vmatpush.bf16.msra.mxu2 %v334_v2  ;;  %v338_v16 = vld [vmem:[%s485_s1 + $0x50] sm:$0xff]  ;;  %v329_v17 = vld [vmem:[%s485_s1 + $0x8] sm:$0xff]  ;;  %v328_v19 = vld [vmem:[%s485_s1] sm:$0xff] }
   0x7   :  { %210 = vmatpush.bf16.msra.mxu1 %v342_v3  ;;  %364 = vmatpush.bf16.msra.mxu3 %v342_v3  ;;  %v337_v18 = vld [vmem:[%s485_s1 + $0x48] sm:$0xff]  ;;  %v336_v20 = vld [vmem:[%s485_s1 + $0x40] sm:$0xff]  ;;  %v254_v23 = vld [vmem:[%s487_s0 + $0x10] sm:$0xf] }
   0x8   :  { %v246_v21 = vld [vmem:[%s487_s0] sm:$0xf]  ;;  %v325_v22 = vld [vmem:[%s487_s0 + $0x4] sm:$0xf0]  ;;  %v327_v24 = vld [vmem:[%s487_s0 + $0x14] sm:$0xf0] }
   0x9   :  { %v324_v25 = vld [vmem:[%s487_s0 + $0x4] sm:$0xf]  ;;  %v248_v26 = vld [vmem:[%s487_s0 + $0x8] sm:$0xf0]  ;;  %v326_v27 = vld [vmem:[%s487_s0 + $0x14] sm:$0xf]  ;;  %v247_v29 = vor.u32 %v325_v22, %v246_v21  ;;  %v255_v30 = vor.u32 %v327_v24, %v254_v23 }
   0xa   :  { %192 = vmatpush.bf16.msra.mxu0 %v333_v5  ;;  %357 = vmatpush.bf16.msra.mxu2 %v333_v5  ;;  %v256_v28 = vld [vmem:[%s487_s0 + $0x18] sm:$0xf0]  ;;  %v251_v31 = vor.u32 %v324_v25, %v248_v26 }
   0xb   :  { %211 = vmatpush.bf16.msra.mxu1 %v341_v6  ;;  %365 = vmatpush.bf16.msra.mxu3 %v341_v6  ;;  %v259_v32 = vor.u32 %v326_v27, %v256_v28 }
   0xc   :  { %71 = vperm.xlu1 %373, %v53_v12   ;;  %61 = vperm.xlu0 %372, %v51_v13  }
   0xe   :  { %193 = vmatpush.bf16.msra.mxu0 %v332_v9  ;;  %358 = vmatpush.bf16.msra.mxu2 %v332_v9 }
   0xf   :  { %212 = vmatpush.bf16.msra.mxu1 %v340_v10  ;;  %366 = vmatpush.bf16.msra.mxu3 %v340_v10 }
  0x12   :  { %194 = vmatpush.bf16.msra.mxu0 %v331_v11  ;;  %359 = vmatpush.bf16.msra.mxu2 %v331_v11 }
  0x13   :  { %213 = vmatpush.bf16.msra.mxu1 %v339_v14  ;;  %367 = vmatpush.bf16.msra.mxu3 %v339_v14 }
  0x16   :  { %195 = vmatpush.bf16.msra.mxu0 %v330_v15  ;;  %360 = vmatpush.bf16.msra.mxu2 %v330_v15 }
  0x17   :  { %214 = vmatpush.bf16.msra.mxu1 %v338_v16  ;;  %368 = vmatpush.bf16.msra.mxu3 %v338_v16 }
  0x1a   :  { %196 = vmatpush.bf16.msra.mxu0 %v329_v17  ;;  %361 = vmatpush.bf16.msra.mxu2 %v329_v17 }
  0x1b   :  { %215 = vmatpush.bf16.msra.mxu1 %v337_v18  ;;  %369 = vmatpush.bf16.msra.mxu3 %v337_v18 }
  0x1e   :  { %197 = vmatpush.bf16.msra.mxu0 %v328_v19  ;;  %362 = vmatpush.bf16.msra.mxu2 %v328_v19 }
  0x1f   :  { %216 = vmatpush.bf16.msra.mxu1 %v336_v20  ;;  %370 = vmatpush.bf16.msra.mxu3 %v336_v20 }
  0x21   :  { %198 = vmatmul.bf16.vlgmr.msra.gmra.mxu0 %v247_v29  ;;  %203 = vmatmul.bf16.vlgmr.msra.gmra.mxu2 %v255_v30 }
  0x22   :  { %217 = vmatmul.bf16.vlgmr.msra.gmra.mxu1 %v251_v31  ;;  %222 = vmatmul.bf16.vlgmr.msra.gmra.mxu3 %v259_v32 }
  0x76   :  { %v57_v33 = vpop.permute.xlu0 %56  ;;  %v67_v36 = vpop.permute.xlu1 %66 }
  0x7e   :  { %v62_v40 = vpop.permute.xlu0 %61  ;;  %v72_v49 = vpop.permute.xlu1 %71 }
  0x9e   :  { %v199_v34 = vpop.f32.mrf.mxu0 }
  0x9f   :  { %v218_v35 = vpop.f32.mrf.mxu1  ;;  %v200_v37 = vadd.f32 %v199_v34, %v57_v33 }
  0xa1   :  { %v219_v42 = vadd.f32 %v218_v35, %v200_v37 }
  0xa3   :  { %v228_v47 = vmax.f32 %v219_v42, 0.0 }
  0xa4   :  { %v204_v38 = vpop.f32.mrf.mxu2 }
  0xa5   :  { %v223_v39 = vpop.f32.mrf.mxu3  ;;  %v205_v45 = vadd.f32 %v204_v38, %v67_v36 }
  0xa6   :  { %v201_v41 = vpop.f32.mrf.mxu0 }
  0xa7   :  { %v202_v43 = vadd.f32 %v201_v41, %v62_v40  ;;  %v220_v44 = vpop.f32.mrf.mxu1  ;;  %v224_v51 = vadd.f32 %v223_v39, %v205_v45 }
  0xa9   :  { %v221_v46 = vadd.f32 %v220_v44, %v202_v43  ;;  %v230_v56 = vmax.f32 %v224_v51, 0.0 }
  0xab   :  { %v229_v48 = vmax.f32 %v221_v46, 0.0 }
  0xac   :  { %v206_v50 = vpop.f32.mrf.mxu2 }
  0xad   :  { %v347_v52 = vpack.c.bf16 %v229_v48, %v228_v47  ;;  %v207_v53 = vadd.f32 %v206_v50, %v72_v49  ;;  %v225_v54 = vpop.f32.mrf.mxu3 }
  0xaf   :  { %348 = vst [vmem:[%s488_s3] sm:$0xff] %v347_v52   ;;  %v226_v55 = vadd.f32 %v225_v54, %v207_v53 }
  0xb1   :  { %v231_v57 = vmax.f32 %v226_v55, 0.0 }
  0xb3   :  { %v352_v58 = vpack.c.bf16 %v231_v57, %v230_v56 }
  0xb5   :  { %354 = vst [vmem:[%s488_s3 + $0x8] sm:$0xff] %v352_v58  }

// kernel: discriminator_forward.10
= control target key start
LH: loop header
LB: loop body
LE: loop exit
PB: predicated region body
PF: predicated region fallthrough
CT: control target
= control target key end

     0   :  { %v803_v8 = vmov 0   ;;  %vm546_vm0 = vcmask 257024   ;;  %s1072_s1 = inlined_call_operand.vmem [shape: bf16[512,32], index: 1, kind: input, shape index: {}]   ;;  %s1073_s2 = inlined_call_operand.vmem [shape: f32[64,1], index: 2, kind: input, shape index: {}]   ;;  %s1074_s0 = inlined_call_operand.vmem [shape: bf16[64,512], index: 0, kind: input, shape index: {}]   ;;  %s1075_s3 = inlined_call_operand.vmem [shape: bf16[64,32], index: 3, kind: output, shape index: {}]  }
   0x1   :  { %v774_v0 = vld [vmem:[%s1072_s1 + $0x38] sm:$0xff]  ;;  %v773_v4 = vld [vmem:[%s1072_s1 + $0x30] sm:$0xff]  ;;  %800 = vset.pattern.permute.xlu0 %v803_v8  ;;  %801 = vset.pattern.permute.xlu1 %v803_v8  ;;  %v772_v9 = vld [vmem:[%s1072_s1 + $0x28] sm:$0xff] }
   0x2   :  { %v782_v1 = vld [vmem:[%s1072_s1 + $0x78] sm:$0xff]  ;;  %414 = vmatpush.bf16.msra.mxu0 %v774_v0  ;;  %v781_v5 = vld [vmem:[%s1072_s1 + $0x70] sm:$0xff]  ;;  %802 = vset.pattern.permute.xlu2 %v803_v8  ;;  %v780_v10 = vld [vmem:[%s1072_s1 + $0x68] sm:$0xff] }
   0x3   :  { %v790_v2 = vld [vmem:[%s1072_s1 + $0xb8] sm:$0xff]  ;;  %443 = vmatpush.bf16.msra.mxu1 %v782_v1  ;;  %v789_v6 = vld [vmem:[%s1072_s1 + $0xb0] sm:$0xff]  ;;  %v788_v11 = vld [vmem:[%s1072_s1 + $0xa8] sm:$0xff] }
   0x4   :  { %v798_v3 = vld [vmem:[%s1072_s1 + $0xf8] sm:$0xff]  ;;  %472 = vmatpush.bf16.msra.mxu2 %v790_v2  ;;  %v797_v7 = vld [vmem:[%s1072_s1 + $0xf0] sm:$0xff]  ;;  %v796_v12 = vld [vmem:[%s1072_s1 + $0xe8] sm:$0xff] }
   0x5   :  { %501 = vmatpush.bf16.msra.mxu3 %v798_v3  ;;  %v771_v13 = vld [vmem:[%s1072_s1 + $0x20] sm:$0xff]  ;;  %v770_v18 = vld [vmem:[%s1072_s1 + $0x18] sm:$0xff]  ;;  %v769_v22 = vld [vmem:[%s1072_s1 + $0x10] sm:$0xff] }
   0x6   :  { %415 = vmatpush.bf16.msra.mxu0 %v773_v4  ;;  %v779_v14 = vld [vmem:[%s1072_s1 + $0x60] sm:$0xff]  ;;  %v778_v19 = vld [vmem:[%s1072_s1 + $0x58] sm:$0xff]  ;;  %v777_v23 = vld [vmem:[%s1072_s1 + $0x50] sm:$0xff] }
   0x7   :  { %444 = vmatpush.bf16.msra.mxu1 %v781_v5  ;;  %v787_v15 = vld [vmem:[%s1072_s1 + $0xa0] sm:$0xff]  ;;  %v786_v20 = vld [vmem:[%s1072_s1 + $0x98] sm:$0xff]  ;;  %v96_v24 = vld [vmem:[%s1073_s2 + $0x10] sm:$0xff] }
   0x8   :  { %473 = vmatpush.bf16.msra.mxu2 %v789_v6  ;;  %v795_v16 = vld [vmem:[%s1072_s1 + $0xe0] sm:$0xff]  ;;  %v794_v21 = vld [vmem:[%s1072_s1 + $0xd8] sm:$0xff]  ;;  %v785_v25 = vld [vmem:[%s1072_s1 + $0x90] sm:$0xff]  ;;  %114 = vperm.xlu1 %801, %v96_v24  }
   0x9   :  { %502 = vmatpush.bf16.msra.mxu3 %v797_v7  ;;  %v94_v17 = vld [vmem:[%s1073_s2] sm:$0xff]  ;;  %v793_v26 = vld [vmem:[%s1072_s1 + $0xd0] sm:$0xff]  ;;  %v95_v27 = vld [vmem:[%s1073_s2 + $0x8] sm:$0xff] }
   0xa   :  { %416 = vmatpush.bf16.msra.mxu0 %v772_v9  ;;  %104 = vperm.xlu0 %800, %v94_v17   ;;  %v768_v28 = vld [vmem:[%s1072_s1 + $0x8] sm:$0xff]  ;;  %v767_v32 = vld [vmem:[%s1072_s1] sm:$0xff]  ;;  %v753_v37 = vld [vmem:[%s1074_s0 + $0xc] sm:$0xf0] }
   0xb   :  { %445 = vmatpush.bf16.msra.mxu1 %v780_v10  ;;  %v776_v29 = vld [vmem:[%s1072_s1 + $0x48] sm:$0xff]  ;;  %v775_v33 = vld [vmem:[%s1072_s1 + $0x40] sm:$0xff]  ;;  %v563_v39 = vld [vmem:[%s1074_s0 + $0x10] sm:$0xf0] }
   0xc   :  { %474 = vmatpush.bf16.msra.mxu2 %v788_v11  ;;  %v784_v30 = vld [vmem:[%s1072_s1 + $0x88] sm:$0xff]  ;;  %v783_v34 = vld [vmem:[%s1072_s1 + $0x80] sm:$0xff]  ;;  %v754_v41 = vld [vmem:[%s1074_s0 + $0x14] sm:$0xf0] }
   0xd   :  { %503 = vmatpush.bf16.msra.mxu3 %v796_v12  ;;  %v792_v31 = vld [vmem:[%s1072_s1 + $0xc8] sm:$0xff]  ;;  %v791_v35 = vld [vmem:[%s1072_s1 + $0xc0] sm:$0xff]  ;;  %v571_v43 = vld [vmem:[%s1074_s0 + $0x18] sm:$0xf0] }
   0xe   :  { %417 = vmatpush.bf16.msra.mxu0 %v771_v13  ;;  %v561_v36 = vld [vmem:[%s1074_s0] sm:$0xf]  ;;  %v751_v38 = vld [vmem:[%s1074_s0 + $0x4] sm:$0xf]  ;;  %v569_v40 = vld [vmem:[%s1074_s0 + $0x8] sm:$0xf] }
   0xf   :  { %446 = vmatpush.bf16.msra.mxu1 %v779_v14  ;;  %v752_v42 = vld [vmem:[%s1074_s0 + $0xc] sm:$0xf]  ;;  %v562_v44 = vor.u32 %v753_v37, %v561_v36  ;;  %v566_v45 = vor.u32 %v751_v38, %v563_v39  ;;  %v570_v46 = vor.u32 %v754_v41, %v569_v40  ;;  %v97_v48 = vld [vmem:[%s1073_s2 + $0x18] sm:$0xff]  ;;  %v577_v49 = vld [vmem:[%s1074_s0 + $0x20] sm:$0xf] }
  0x10   :  { %475 = vmatpush.bf16.msra.mxu2 %v787_v15  ;;  %v574_v47 = vor.u32 %v752_v42, %v571_v43  ;;  %119 = vperm.xlu1 %801, %v97_v48   ;;  %v757_v50 = vld [vmem:[%s1074_s0 + $0x2c] sm:$0xf0]  ;;  %v755_v51 = vld [vmem:[%s1074_s0 + $0x24] sm:$0xf]  ;;  %v579_v52 = vld [vmem:[%s1074_s0 + $0x30] sm:$0xf0] }
  0x11   :  { %504 = vmatpush.bf16.msra.mxu3 %v795_v16  ;;  %v585_v53 = vld [vmem:[%s1074_s0 + $0x28] sm:$0xf]  ;;  %v758_v54 = vld [vmem:[%s1074_s0 + $0x34] sm:$0xf0]  ;;  %v756_v55 = vld [vmem:[%s1074_s0 + $0x2c] sm:$0xf]  ;;  %v578_v57 = vor.u32 %v757_v50, %v577_v49  ;;  %v582_v58 = vor.u32 %v755_v51, %v579_v52 }
  0x12   :  { %418 = vmatpush.bf16.msra.mxu0 %v770_v18  ;;  %109 = vperm.xlu0 %800, %v95_v27   ;;  %v587_v56 = vld [vmem:[%s1074_s0 + $0x38] sm:$0xf0]  ;;  %v586_v59 = vor.u32 %v758_v54, %v585_v53  ;;  %v100_v62 = vld [vmem:[%s1073_s2 + $0x30] sm:$0xff]  ;;  %v98_v63 = vld [vmem:[%s1073_s2 + $0x20] sm:$0xff] }
  0x13   :  { %447 = vmatpush.bf16.msra.mxu1 %v778_v19  ;;  %v590_v60 = vor.u32 %v756_v55, %v587_v56  ;;  %v101_v61 = vld [vmem:[%s1073_s2 + $0x38] sm:$0xff]  ;;  %124 = vperm.xlu2 %802, %v98_v63   ;;  %v593_v0 = vld [vmem:[%s1074_s0 + $0x40] sm:$0xf]  ;;  %v761_v1 = vld [vmem:[%s1074_s0 + $0x4c] sm:$0xf0] }
  0x14   :  { %476 = vmatpush.bf16.msra.mxu2 %v786_v20  ;;  %v99_v2 = vld [vmem:[%s1073_s2 + $0x28] sm:$0xff]  ;;  %v759_v3 = vld [vmem:[%s1074_s0 + $0x44] sm:$0xf]  ;;  %v595_v4 = vld [vmem:[%s1074_s0 + $0x50] sm:$0xf0]  ;;  %v594_v9 = vor.u32 %v761_v1, %v593_v0 }
  0x15   :  { %505 = vmatpush.bf16.msra.mxu3 %v794_v21  ;;  %v601_v5 = vld [vmem:[%s1074_s0 + $0x48] sm:$0xf]  ;;  %v762_v6 = vld [vmem:[%s1074_s0 + $0x54] sm:$0xf0]  ;;  %v760_v7 = vld [vmem:[%s1074_s0 + $0x4c] sm:$0xf]  ;;  %v598_v10 = vor.u32 %v759_v3, %v595_v4 }
  0x16   :  { %419 = vmatpush.bf16.msra.mxu0 %v769_v22  ;;  %v603_v8 = vld [vmem:[%s1074_s0 + $0x58] sm:$0xf0]  ;;  %v602_v11 = vor.u32 %v762_v6, %v601_v5  ;;  %v609_v13 = vld [vmem:[%s1074_s0 + $0x60] sm:$0xf]  ;;  %v765_v14 = vld [vmem:[%s1074_s0 + $0x6c] sm:$0xf0] }
  0x17   :  { %448 = vmatpush.bf16.msra.mxu1 %v777_v23  ;;  %v606_v12 = vor.u32 %v760_v7, %v603_v8  ;;  %v763_v15 = vld [vmem:[%s1074_s0 + $0x64] sm:$0xf]  ;;  %v611_v16 = vld [vmem:[%s1074_s0 + $0x70] sm:$0xf0]  ;;  %v617_v17 = vld [vmem:[%s1074_s0 + $0x68] sm:$0xf]  ;;  %v610_v21 = vor.u32 %v765_v14, %v609_v13 }
  0x18   :  { %477 = vmatpush.bf16.msra.mxu2 %v785_v25  ;;  %139 = vperm.xlu1 %801, %v101_v61   ;;  %v766_v18 = vld [vmem:[%s1074_s0 + $0x74] sm:$0xf0]  ;;  %v764_v19 = vld [vmem:[%s1074_s0 + $0x6c] sm:$0xf]  ;;  %v619_v20 = vld [vmem:[%s1074_s0 + $0x78] sm:$0xf0]  ;;  %v614_v22 = vor.u32 %v763_v15, %v611_v16 }
  0x19   :  { %506 = vmatpush.bf16.msra.mxu3 %v793_v26  ;;  %v618_v23 = vor.u32 %v766_v18, %v617_v17  ;;  %v622_v24 = vor.u32 %v764_v19, %v619_v20 }
  0x1a   :  { %420 = vmatpush.bf16.msra.mxu0 %v768_v28  ;;  %134 = vperm.xlu0 %800, %v100_v62  }
  0x1b   :  { %449 = vmatpush.bf16.msra.mxu1 %v776_v29  ;;  %129 = vperm.xlu2 %802, %v99_v2  }
  0x1c   :  { %478 = vmatpush.bf16.msra.mxu2 %v784_v30 }
  0x1d   :  { %507 = vmatpush.bf16.msra.mxu3 %v792_v31 }
  0x1e   :  { %421 = vmatpush.bf16.msra.mxu0 %v767_v32 }
  0x1f   :  { %450 = vmatpush.bf16.msra.mxu1 %v775_v33 }
  0x20   :  { %479 = vmatpush.bf16.msra.mxu2 %v783_v34 }
  0x21   :  { %508 = vmatpush.bf16.msra.mxu3 %v791_v35  ;;  %422 = vmatmul.bf16.vlgmr.msra.gmra.mxu0 %v562_v44 }
  0x22   :  { %451 = vmatmul.bf16.vlgmr.msra.gmra.mxu1 %v566_v45 }
  0x23   :  { %480 = vmatmul.bf16.vlgmr.msra.gmra.mxu2 %v570_v46 }
  0x24   :  { %509 = vmatmul.bf16.vlgmr.msra.gmra.mxu3 %v574_v47 }
  0x31   :  { %427 = vmatmul.bf16.gmra.mxu0 %v578_v57 }
  0x32   :  { %456 = vmatmul.bf16.gmra.mxu1 %v582_v58 }
  0x33   :  { %485 = vmatmul.bf16.gmra.mxu2 %v586_v59 }
  0x34   :  { %514 = vmatmul.bf16.gmra.mxu3 %v590_v60 }
  0x41   :  { %432 = vmatmul.bf16.gmra.mxu0 %v594_v9 }
  0x42   :  { %461 = vmatmul.bf16.gmra.mxu1 %v598_v10 }
  0x43   :  { %490 = vmatmul.bf16.gmra.mxu2 %v602_v11 }
  0x44   :  { %519 = vmatmul.bf16.gmra.mxu3 %v606_v12 }
  0x51   :  { %437 = vmatmul.bf16.gmra.mxu0 %v610_v21 }
  0x52   :  { %466 = vmatmul.bf16.gmra.mxu1 %v614_v22 }
  0x53   :  { %495 = vmatmul.bf16.gmra.mxu2 %v618_v23 }
  0x54   :  { %524 = vmatmul.bf16.gmra.mxu3 %v622_v24 }
  0x6d   :  { %v125_v61 = vpop.permute.xlu2 %124 }
  0x75   :  { %v130_v10 = vpop.permute.xlu2 %129 }
  0x7a   :  { %v115_v39 = vpop.permute.xlu1 %114 }
  0x7c   :  { %v105_v25 = vpop.permute.xlu0 %104 }
  0x82   :  { %v120_v52 = vpop.permute.xlu1 %119 }
  0x84   :  { %v110_v30 = vpop.permute.xlu0 %109 }
  0x9e   :  { %v423_v26 = vpop.f32.mrf.mxu0 }
  0x9f   :  { %v452_v27 = vpop.f32.mrf.mxu1  ;;  %v424_v28 = vadd.f32 %v423_v26, %v105_v25  ;;  %v135_v25 = vpop.permute.xlu0 %134 }
  0xa1   :  { %v453_v29 = vadd.f32 %v452_v27, %v424_v28 }
  0xa6   :  { %v481_v31 = vpop.f32.mrf.mxu2  ;;  %v425_v34 = vpop.f32.mrf.mxu0 }
  0xa7   :  { %v510_v32 = vpop.f32.mrf.mxu3  ;;  %v482_v33 = vadd.f32 %v481_v31, %v453_v29  ;;  %v454_v35 = vpop.f32.mrf.mxu1  ;;  %v426_v37 = vadd.f32 %v425_v34, %v110_v30 }
  0xa9   :  { %v511_v36 = vadd.f32 %v510_v32, %v482_v33  ;;  %v455_v41 = vadd.f32 %v454_v35, %v426_v37 }
  0xab   :  { %v530_v38 = vmax.f32 %v511_v36, 0.0  ;;  %v140_v36 = vpop.permute.xlu1 %139 }
  0xad   :  { %v538_v40 = vpack.c.bf16 %v530_v38, %v530_v38 }
  0xae   :  { %v483_v42 = vpop.f32.mrf.mxu2  ;;  %v428_v45 = vpop.f32.mrf.mxu0 }
  0xaf   :  { %v512_v43 = vpop.f32.mrf.mxu3  ;;  %547 = vst.msk [vmem:[%s1075_s3] sm:$0xf] %vm546_vm0, %v538_v40  ;;  %v484_v44 = vadd.f32 %v483_v42, %v455_v41  ;;  %v457_v46 = vpop.f32.mrf.mxu1  ;;  %v429_v47 = vadd.f32 %v428_v45, %v115_v39 }
  0xb1   :  { %v513_v48 = vadd.f32 %v512_v43, %v484_v44  ;;  %v458_v50 = vadd.f32 %v457_v46, %v429_v47 }
  0xb3   :  { %v531_v49 = vmax.f32 %v513_v48, 0.0 }
  0xb5   :  { %v539_v51 = vpack.c.bf16 %v531_v49, %v531_v49 }
  0xb6   :  { %v486_v53 = vpop.f32.mrf.mxu2  ;;  %v430_v56 = vpop.f32.mrf.mxu0 }
  0xb7   :  { %v515_v54 = vpop.f32.mrf.mxu3  ;;  %548 = vst.msk [vmem:[%s1075_s3 + $0x4] sm:$0xf] %vm546_vm0, %v539_v51  ;;  %v487_v55 = vadd.f32 %v486_v53, %v458_v50  ;;  %v459_v57 = vpop.f32.mrf.mxu1  ;;  %v431_v59 = vadd.f32 %v430_v56, %v120_v52 }
  0xb9   :  { %v516_v58 = vadd.f32 %v515_v54, %v487_v55  ;;  %v460_v63 = vadd.f32 %v459_v57, %v431_v59 }
  0xbb   :  { %v532_v60 = vmax.f32 %v516_v58, 0.0 }
  0xbd   :  { %v540_v62 = vpack.c.bf16 %v532_v60, %v532_v60 }
  0xbe   :  { %v488_v0 = vpop.f32.mrf.mxu2  ;;  %v433_v3 = vpop.f32.mrf.mxu0 }
  0xbf   :  { %v517_v1 = vpop.f32.mrf.mxu3  ;;  %549 = vst.msk [vmem:[%s1075_s3 + $0x8] sm:$0xf] %vm546_vm0, %v540_v62  ;;  %v489_v2 = vadd.f32 %v488_v0, %v460_v63  ;;  %v462_v4 = vpop.f32.mrf.mxu1  ;;  %v434_v5 = vadd.f32 %v433_v3, %v125_v61 }
  0xc1   :  { %v518_v6 = vadd.f32 %v517_v1, %v489_v2  ;;  %v463_v8 = vadd.f32 %v462_v4, %v434_v5 }
  0xc3   :  { %v533_v7 = vmax.f32 %v518_v6, 0.0 }
  0xc5   :  { %v541_v9 = vpack.c.bf16 %v533_v7, %v533_v7 }
  0xc6   :  { %v491_v11 = vpop.f32.mrf.mxu2  ;;  %v435_v14 = vpop.f32.mrf.mxu0 }
  0xc7   :  { %v520_v12 = vpop.f32.mrf.mxu3  ;;  %550 = vst.msk [vmem:[%s1075_s3 + $0xc] sm:$0xf] %vm546_vm0, %v541_v9  ;;  %v492_v13 = vadd.f32 %v491_v11, %v463_v8  ;;  %v464_v15 = vpop.f32.mrf.mxu1  ;;  %v436_v17 = vadd.f32 %v435_v14, %v130_v10 }
  0xc9   :  { %v521_v16 = vadd.f32 %v520_v12, %v492_v13  ;;  %v465_v20 = vadd.f32 %v464_v15, %v436_v17 }
  0xcb   :  { %v534_v18 = vmax.f32 %v521_v16, 0.0 }
  0xcd   :  { %v542_v19 = vpack.c.bf16 %v534_v18, %v534_v18 }
  0xce   :  { %v493_v21 = vpop.f32.mrf.mxu2  ;;  %v438_v24 = vpop.f32.mrf.mxu0 }
  0xcf   :  { %v522_v22 = vpop.f32.mrf.mxu3  ;;  %551 = vst.msk [vmem:[%s1075_s3 + $0x10] sm:$0xf] %vm546_vm0, %v542_v19  ;;  %v494_v23 = vadd.f32 %v493_v21, %v465_v20  ;;  %v439_v27 = vadd.f32 %v438_v24, %v135_v25  ;;  %v467_v28 = vpop.f32.mrf.mxu1 }
  0xd1   :  { %v523_v26 = vadd.f32 %v522_v22, %v494_v23  ;;  %v468_v31 = vadd.f32 %v467_v28, %v439_v27 }
  0xd3   :  { %v535_v29 = vmax.f32 %v523_v26, 0.0 }
  0xd5   :  { %v543_v30 = vpack.c.bf16 %v535_v29, %v535_v29 }
  0xd6   :  { %v496_v32 = vpop.f32.mrf.mxu2  ;;  %v440_v35 = vpop.f32.mrf.mxu0 }
  0xd7   :  { %v525_v33 = vpop.f32.mrf.mxu3  ;;  %552 = vst.msk [vmem:[%s1075_s3 + $0x14] sm:$0xf] %vm546_vm0, %v543_v30  ;;  %v497_v34 = vadd.f32 %v496_v32, %v468_v31  ;;  %v441_v38 = vadd.f32 %v440_v35, %v140_v36  ;;  %v469_v40 = vpop.f32.mrf.mxu1 }
  0xd9   :  { %v526_v37 = vadd.f32 %v525_v33, %v497_v34  ;;  %v470_v42 = vadd.f32 %v469_v40, %v441_v38 }
  0xdb   :  { %v536_v39 = vmax.f32 %v526_v37, 0.0 }
  0xdd   :  { %v544_v41 = vpack.c.bf16 %v536_v39, %v536_v39 }
  0xde   :  { %v498_v43 = vpop.f32.mrf.mxu2 }
  0xdf   :  { %553 = vst.msk [vmem:[%s1075_s3 + $0x18] sm:$0xf] %vm546_vm0, %v544_v41  ;;  %v499_v44 = vadd.f32 %v498_v43, %v470_v42  ;;  %v527_v45 = vpop.f32.mrf.mxu3 }
  0xe1   :  { %v528_v46 = vadd.f32 %v527_v45, %v499_v44 }
  0xe3   :  { %v537_v47 = vmax.f32 %v528_v46, 0.0 }
  0xe5   :  { %v545_v48 = vpack.c.bf16 %v537_v47, %v537_v47 }
  0xe7   :  { %554 = vst.msk [vmem:[%s1075_s3 + $0x1c] sm:$0xf] %vm546_vm0, %v545_v48 }

// kernel: discriminator_forward.11
= control target key start
LH: loop header
LB: loop body
LE: loop exit
PB: predicated region body
PF: predicated region fallthrough
CT: control target
= control target key end

     0   :  { %v1020_v41 = vmov 0   ;;  %vm687_vm3 = vcmask 15360   ;;  %s1251_s1 = inlined_call_operand.vmem [shape: bf16[1024,2], index: 1, kind: input, shape index: {}]   ;;  %s1252_s0 = inlined_call_operand.vmem [shape: bf16[8,1024], index: 0, kind: input, shape index: {}]   ;;  %s1253_s2 = inlined_call_operand.vmem [shape: f32[8,1], index: 2, kind: input, shape index: {}]   ;;  %s1254_s3 = inlined_call_operand.vmem [shape: f32[8,2], index: 3, kind: output, shape index: {}]  }
   0x1   :  { %v957_v0 = vld [vmem:[%s1251_s1 + $0x38] sm:$0xff]  ;;  %v956_v4 = vld [vmem:[%s1251_s1 + $0x30] sm:$0xff]  ;;  %v955_v8 = vld [vmem:[%s1251_s1 + $0x28] sm:$0xff]  ;;  %1015 = vset.pattern.permute.xlu0 %v1020_v41 }
   0x2   :  { %v965_v1 = vld [vmem:[%s1251_s1 + $0x78] sm:$0xff]  ;;  %564 = vmatpush.bf16.msra.mxu0 %v957_v0  ;;  %v964_v5 = vld [vmem:[%s1251_s1 + $0x70] sm:$0xff]  ;;  %v963_v9 = vld [vmem:[%s1251_s1 + $0x68] sm:$0xff] }
   0x3   :  { %v973_v2 = vld [vmem:[%s1251_s1 + $0xb8] sm:$0xff]  ;;  %577 = vmatpush.bf16.msra.mxu1 %v965_v1  ;;  %v972_v6 = vld [vmem:[%s1251_s1 + $0xb0] sm:$0xff]  ;;  %v971_v10 = vld [vmem:[%s1251_s1 + $0xa8] sm:$0xff] }
   0x4   :  { %v981_v3 = vld [vmem:[%s1251_s1 + $0xf8] sm:$0xff]  ;;  %590 = vmatpush.bf16.msra.mxu2 %v973_v2  ;;  %v980_v7 = vld [vmem:[%s1251_s1 + $0xf0] sm:$0xff]  ;;  %v979_v11 = vld [vmem:[%s1251_s1 + $0xe8] sm:$0xff] }
   0x5   :  { %603 = vmatpush.bf16.msra.mxu3 %v981_v3  ;;  %v954_v12 = vld [vmem:[%s1251_s1 + $0x20] sm:$0xff]  ;;  %v953_v16 = vld [vmem:[%s1251_s1 + $0x18] sm:$0xff]  ;;  %v952_v20 = vld [vmem:[%s1251_s1 + $0x10] sm:$0xff] }
   0x6   :  { %565 = vmatpush.bf16.msra.mxu0 %v956_v4  ;;  %v962_v13 = vld [vmem:[%s1251_s1 + $0x60] sm:$0xff]  ;;  %v961_v17 = vld [vmem:[%s1251_s1 + $0x58] sm:$0xff]  ;;  %v960_v21 = vld [vmem:[%s1251_s1 + $0x50] sm:$0xff] }
   0x7   :  { %578 = vmatpush.bf16.msra.mxu1 %v964_v5  ;;  %v970_v14 = vld [vmem:[%s1251_s1 + $0xa0] sm:$0xff]  ;;  %v969_v18 = vld [vmem:[%s1251_s1 + $0x98] sm:$0xff]  ;;  %v968_v22 = vld [vmem:[%s1251_s1 + $0x90] sm:$0xff] }
   0x8   :  { %591 = vmatpush.bf16.msra.mxu2 %v972_v6  ;;  %v978_v15 = vld [vmem:[%s1251_s1 + $0xe0] sm:$0xff]  ;;  %v977_v19 = vld [vmem:[%s1251_s1 + $0xd8] sm:$0xff]  ;;  %v976_v23 = vld [vmem:[%s1251_s1 + $0xd0] sm:$0xff] }
   0x9   :  { %604 = vmatpush.bf16.msra.mxu3 %v980_v7  ;;  %v951_v24 = vld [vmem:[%s1251_s1 + $0x8] sm:$0xff]  ;;  %v14_v29 = vld [vmem:[%s1252_s0] sm:$0xff]  ;;  %v989_v39 = vld [vmem:[%s1251_s1 + $0x138] sm:$0xff] }
   0xa   :  { %566 = vmatpush.bf16.msra.mxu0 %v955_v8  ;;  %v959_v25 = vld [vmem:[%s1251_s1 + $0x48] sm:$0xff]  ;;  %v950_v30 = vld [vmem:[%s1251_s1] sm:$0xff]  ;;  %v156_v33 = vunpack.c.l.b16 %v14_v29  ;;  %v157_v38 = vunpack.c.h.b16 %v14_v29  ;;  %v997_v40 = vld [vmem:[%s1251_s1 + $0x178] sm:$0xff] }
   0xb   :  { %579 = vmatpush.bf16.msra.mxu1 %v963_v9  ;;  %v967_v26 = vld [vmem:[%s1251_s1 + $0x88] sm:$0xff]  ;;  %v958_v31 = vld [vmem:[%s1251_s1 + $0x40] sm:$0xff]  ;;  %v1005_v42 = vld [vmem:[%s1251_s1 + $0x1b8] sm:$0xff] }
   0xc   :  { %592 = vmatpush.bf16.msra.mxu2 %v971_v10  ;;  %v975_v27 = vld [vmem:[%s1251_s1 + $0xc8] sm:$0xff]  ;;  %v146_v34 = vld [vmem:[%s1253_s2] sm:$0xff]  ;;  %v1013_v43 = vld [vmem:[%s1251_s1 + $0x1f8] sm:$0xff]  ;;  %v164_v45 = vpack.c.b16 %v156_v33, %v156_v33  ;;  %v165_v47 = vpack.c.b16 %v157_v38, %v157_v38 }
   0xd   :  { %605 = vmatpush.bf16.msra.mxu3 %v979_v11  ;;  %v15_v28 = vld [vmem:[%s1252_s0 + $0x8] sm:$0xff]  ;;  %v966_v35 = vld [vmem:[%s1251_s1 + $0x80] sm:$0xff]  ;;  %149 = vperm.xlu0 %1015, %v146_v34   ;;  %v988_v48 = vld [vmem:[%s1251_s1 + $0x130] sm:$0xff] }
   0xe   :  { %567 = vmatpush.bf16.msra.mxu0 %v954_v12  ;;  %v158_v32 = vunpack.c.l.b16 %v15_v28  ;;  %v974_v36 = vld [vmem:[%s1251_s1 + $0xc0] sm:$0xff]  ;;  %v159_v37 = vunpack.c.h.b16 %v15_v28  ;;  %v996_v49 = vld [vmem:[%s1251_s1 + $0x170] sm:$0xff]  ;;  %v987_v52 = vld [vmem:[%s1251_s1 + $0x128] sm:$0xff] }
   0xf   :  { %580 = vmatpush.bf16.msra.mxu1 %v962_v13  ;;  %v1004_v50 = vld [vmem:[%s1251_s1 + $0x1b0] sm:$0xff]  ;;  %v995_v53 = vld [vmem:[%s1251_s1 + $0x168] sm:$0xff]  ;;  %v986_v56 = vld [vmem:[%s1251_s1 + $0x120] sm:$0xff] }
  0x10   :  { %593 = vmatpush.bf16.msra.mxu2 %v970_v14  ;;  %v166_v44 = vpack.c.b16 %v158_v32, %v158_v32  ;;  %v167_v46 = vpack.c.b16 %v159_v37, %v159_v37  ;;  %v1012_v51 = vld [vmem:[%s1251_s1 + $0x1f0] sm:$0xff]  ;;  %v1003_v54 = vld [vmem:[%s1251_s1 + $0x1a8] sm:$0xff]  ;;  %v994_v57 = vld [vmem:[%s1251_s1 + $0x160] sm:$0xff] }
  0x11   :  { %606 = vmatpush.bf16.msra.mxu3 %v978_v15  ;;  %v1011_v55 = vld [vmem:[%s1251_s1 + $0x1e8] sm:$0xff]  ;;  %v1002_v58 = vld [vmem:[%s1251_s1 + $0x1a0] sm:$0xff]  ;;  %v985_v60 = vld [vmem:[%s1251_s1 + $0x118] sm:$0xff] }
  0x12   :  { %568 = vmatpush.bf16.msra.mxu0 %v953_v16  ;;  %v1010_v59 = vld [vmem:[%s1251_s1 + $0x1e0] sm:$0xff]  ;;  %v993_v61 = vld [vmem:[%s1251_s1 + $0x158] sm:$0xff]  ;;  %v984_v0 = vld [vmem:[%s1251_s1 + $0x110] sm:$0xff] }
  0x13   :  { %581 = vmatpush.bf16.msra.mxu1 %v961_v17  ;;  %v1001_v62 = vld [vmem:[%s1251_s1 + $0x198] sm:$0xff]  ;;  %v992_v1 = vld [vmem:[%s1251_s1 + $0x150] sm:$0xff]  ;;  %v983_v4 = vld [vmem:[%s1251_s1 + $0x108] sm:$0xff] }
  0x14   :  { %594 = vmatpush.bf16.msra.mxu2 %v969_v18  ;;  %v1009_v63 = vld [vmem:[%s1251_s1 + $0x1d8] sm:$0xff]  ;;  %v1000_v2 = vld [vmem:[%s1251_s1 + $0x190] sm:$0xff]  ;;  %v991_v5 = vld [vmem:[%s1251_s1 + $0x148] sm:$0xff] }
  0x15   :  { %607 = vmatpush.bf16.msra.mxu3 %v977_v19  ;;  %v1008_v3 = vld [vmem:[%s1251_s1 + $0x1d0] sm:$0xff]  ;;  %v999_v7 = vld [vmem:[%s1251_s1 + $0x188] sm:$0xff]  ;;  %v17_v9 = vld [vmem:[%s1252_s0 + $0x18] sm:$0xff] }
  0x16   :  { %569 = vmatpush.bf16.msra.mxu0 %v952_v20  ;;  %v16_v6 = vld [vmem:[%s1252_s0 + $0x10] sm:$0xff]  ;;  %v1007_v8 = vld [vmem:[%s1251_s1 + $0x1c8] sm:$0xff]  ;;  %v982_v12 = vld [vmem:[%s1251_s1 + $0x100] sm:$0xff]  ;;  %v162_v14 = vunpack.c.l.b16 %v17_v9  ;;  %v163_v15 = vunpack.c.h.b16 %v17_v9 }
  0x17   :  { %582 = vmatpush.bf16.msra.mxu1 %v960_v21  ;;  %v160_v10 = vunpack.c.l.b16 %v16_v6  ;;  %v161_v11 = vunpack.c.h.b16 %v16_v6  ;;  %v990_v13 = vld [vmem:[%s1251_s1 + $0x140] sm:$0xff] }
  0x18   :  { %595 = vmatpush.bf16.msra.mxu2 %v968_v22  ;;  %v998_v16 = vld [vmem:[%s1251_s1 + $0x180] sm:$0xff]  ;;  %v170_v20 = vpack.c.b16 %v162_v14, %v162_v14  ;;  %v171_v21 = vpack.c.b16 %v163_v15, %v163_v15 }
  0x19   :  { %608 = vmatpush.bf16.msra.mxu3 %v976_v23  ;;  %v1006_v17 = vld [vmem:[%s1251_s1 + $0x1c0] sm:$0xff]  ;;  %v168_v18 = vpack.c.b16 %v160_v10, %v160_v10  ;;  %v169_v19 = vpack.c.b16 %v161_v11, %v161_v11 }
  0x1a   :  { %570 = vmatpush.bf16.msra.mxu0 %v951_v24 }
  0x1b   :  { %583 = vmatpush.bf16.msra.mxu1 %v959_v25 }
  0x1c   :  { %596 = vmatpush.bf16.msra.mxu2 %v967_v26 }
  0x1d   :  { %609 = vmatpush.bf16.msra.mxu3 %v975_v27 }
  0x1e   :  { %571 = vmatpush.bf16.msra.mxu0 %v950_v30 }
  0x1f   :  { %584 = vmatpush.bf16.msra.mxu1 %v958_v31 }
  0x20   :  { %597 = vmatpush.bf16.msra.mxu2 %v966_v35 }
  0x21   :  { %610 = vmatpush.bf16.msra.mxu3 %v974_v36  ;;  %572 = vmatmul.bf16.vlgmr.msra.gmra.mxu0 %v164_v45 }
  0x22   :  { %616 = vmatpush.bf16.msrb.mxu0 %v989_v39  ;;  %585 = vmatmul.bf16.vlgmr.msra.gmra.mxu1 %v165_v47 }
  0x23   :  { %629 = vmatpush.bf16.msrb.mxu1 %v997_v40  ;;  %598 = vmatmul.bf16.vlgmr.msra.gmra.mxu2 %v166_v44 }
  0x24   :  { %642 = vmatpush.bf16.msrb.mxu2 %v1005_v42  ;;  %611 = vmatmul.bf16.vlgmr.msra.gmra.mxu3 %v167_v46 }
  0x25   :  { %655 = vmatpush.bf16.msrb.mxu3 %v1013_v43 }
  0x26   :  { %617 = vmatpush.bf16.msrb.mxu0 %v988_v48 }
  0x27   :  { %630 = vmatpush.bf16.msrb.mxu1 %v996_v49 }
  0x28   :  { %643 = vmatpush.bf16.msrb.mxu2 %v1004_v50 }
  0x29   :  { %656 = vmatpush.bf16.msrb.mxu3 %v1012_v51 }
  0x2a   :  { %618 = vmatpush.bf16.msrb.mxu0 %v987_v52 }
  0x2b   :  { %631 = vmatpush.bf16.msrb.mxu1 %v995_v53 }
  0x2c   :  { %644 = vmatpush.bf16.msrb.mxu2 %v1003_v54 }
  0x2d   :  { %657 = vmatpush.bf16.msrb.mxu3 %v1011_v55 }
  0x2e   :  { %619 = vmatpush.bf16.msrb.mxu0 %v986_v56 }
  0x2f   :  { %632 = vmatpush.bf16.msrb.mxu1 %v994_v57 }
  0x30   :  { %645 = vmatpush.bf16.msrb.mxu2 %v1002_v58 }
  0x31   :  { %658 = vmatpush.bf16.msrb.mxu3 %v1010_v59 }
  0x32   :  { %620 = vmatpush.bf16.msrb.mxu0 %v985_v60 }
  0x33   :  { %633 = vmatpush.bf16.msrb.mxu1 %v993_v61 }
  0x34   :  { %646 = vmatpush.bf16.msrb.mxu2 %v1001_v62 }
  0x35   :  { %659 = vmatpush.bf16.msrb.mxu3 %v1009_v63 }
  0x36   :  { %621 = vmatpush.bf16.msrb.mxu0 %v984_v0 }
  0x37   :  { %634 = vmatpush.bf16.msrb.mxu1 %v992_v1 }
  0x38   :  { %647 = vmatpush.bf16.msrb.mxu2 %v1000_v2 }
  0x39   :  { %660 = vmatpush.bf16.msrb.mxu3 %v1008_v3 }
  0x3a   :  { %622 = vmatpush.bf16.msrb.mxu0 %v983_v4 }
  0x3b   :  { %635 = vmatpush.bf16.msrb.mxu1 %v991_v5 }
  0x3c   :  { %648 = vmatpush.bf16.msrb.mxu2 %v999_v7 }
  0x3d   :  { %661 = vmatpush.bf16.msrb.mxu3 %v1007_v8 }
  0x3e   :  { %623 = vmatpush.bf16.msrb.mxu0 %v982_v12 }
  0x3f   :  { %636 = vmatpush.bf16.msrb.mxu1 %v990_v13 }
  0x40   :  { %649 = vmatpush.bf16.msrb.mxu2 %v998_v16 }
  0x41   :  { %662 = vmatpush.bf16.msrb.mxu3 %v1006_v17  ;;  %624 = vmatmul.bf16.vlgmr.msrb.gmra.mxu0 %v168_v18 }
  0x42   :  { %637 = vmatmul.bf16.vlgmr.msrb.gmra.mxu1 %v169_v19 }
  0x43   :  { %650 = vmatmul.bf16.vlgmr.msrb.gmra.mxu2 %v170_v20 }
  0x44   :  { %663 = vmatmul.bf16.vlgmr.msrb.gmra.mxu3 %v171_v21 }
  0x7f   :  { %v150_v28 = vpop.permute.xlu0 %149 }
  0x9e   :  { %v573_v22 = vpop.f32.mrf.mxu0 }
  0x9f   :  { %v586_v23 = vpop.f32.mrf.mxu1  ;;  %v574_v31 = vadd.f32 %v573_v22, %v150_v28 }
  0xa1   :  { %v587_v32 = vadd.f32 %v586_v23, %v574_v31 }
  0xa6   :  { %v599_v24 = vpop.f32.mrf.mxu2  ;;  %v575_v26 = vpop.f32.mrf.mxu0 }
  0xa7   :  { %v612_v25 = vpop.f32.mrf.mxu3  ;;  %v588_v27 = vpop.f32.mrf.mxu1  ;;  %v600_v33 = vadd.f32 %v599_v24, %v587_v32 }
  0xa9   :  { %v613_v34 = vadd.f32 %v612_v25, %v600_v33 }
  0xae   :  { %v601_v29 = vpop.f32.mrf.mxu2 }
  0xaf   :  { %v614_v30 = vpop.f32.mrf.mxu3 }
  0xbe   :  { %v625_v35 = vpop.f32.mrf.mxu0 }
  0xbf   :  { %v638_v36 = vpop.f32.mrf.mxu1  ;;  %v626_v37 = vadd.f32 %v625_v35, %v613_v34 }
  0xc1   :  { %v639_v38 = vadd.f32 %v638_v36, %v626_v37 }
  0xc6   :  { %v651_v39 = vpop.f32.mrf.mxu2  ;;  %v627_v42 = vpop.f32.mrf.mxu0 }
  0xc7   :  { %v664_v40 = vpop.f32.mrf.mxu3  ;;  %v652_v41 = vadd.f32 %v651_v39, %v639_v38  ;;  %v640_v43 = vpop.f32.mrf.mxu1 }
  0xc9   :  { %v665_v44 = vadd.f32 %v664_v40, %v652_v41 }
  0xcb   :  { %v949_v45 = vmul.f32 -1.442695, %v665_v44 }
  0xcd   :  { %1016 = vpow2.f32 %v949_v45 }
  0xce   :  { %v653_v46 = vpop.f32.mrf.mxu2 }
  0xcf   :  { %v666_v47 = vpop.f32.mrf.mxu3 }
  0xd3   :  { %v1017_v48 = vpop.eup %1016 }
  0xd4   :  { %v671_v49 = vadd.f32 1.0, %v1017_v48 }
  0xd6   :  { %1018 = vrcp.f32 %v671_v49  ;;  %v683_v53 = vand.u32 2147483648, %v671_v49  ;;  %v681_v55 = vand.u32 2147483647, %v671_v49  ;;  %vm677_vm1 = vweird.f32 %v671_v49 }
  0xd8   :  { %v684_v57 = vor.u32 1.1754944e-38, %v683_v53  ;;  %vm682_vm4 = vcmp.eq.f32.partialorder %v681_v55, 8.507059e+37 }
  0xdc   :  { %v1019_v50 = vpop.eup %1018 }
  0xdd   :  { %v673_v51 = vmul.f32 %v1019_v50, %v671_v49  ;;  %vm678_vm0 = vweird.f32 %v1019_v50 }
  0xde   :  { %vm679_vm2 = vmor %vm677_vm1, %vm678_vm0 }
  0xdf   :  { %v674_v52 = vsub.f32 1.0, %v673_v51 }
  0xe1   :  { %v675_v54 = vmul.f32 %v1019_v50, %v674_v52 }
  0xe3   :  { %v676_v56 = vadd.f32 %v1019_v50, %v675_v54 }
  0xe5   :  { %v680_v58 = vsel %vm679_vm2, %v1019_v50, %v676_v56 }
  0xe6   :  { %v685_v59 = vsel %vm682_vm4, %v684_v57, %v680_v58 }
  0xe7   :  { %688 = vst.msk [vmem:[%s1254_s3] sm:$0xff] %vm687_vm3, %v685_v59 }

</bundles_post_ra>
